<compile_context>
chip_gen: v5e
topology: v5e:2x2
jax: 0.10.0
libtpu: 0.0.40
codegen_flags: <defaults>
</compile_context>

<pallas_src>
import functools

import jax
import jax.numpy as jnp
from jax import lax
from jax.experimental import pallas as pl
from jax.experimental.pallas import tpu as pltpu

_BIG = 1e8      # matches the 100000000.0 init in compute_softdtw
_LANES = 128    # TPU lane width


def _round_up(v, m):
    return ((v + m - 1) // m) * m


# ----------------------------------------------------------------------------
# pltpu.roll capability / direction probe (cached).  Returns:
#   "jnp"  -> pltpu.roll(x, s, axis) == jnp.roll(x, s, axis)
#   "rev"  -> opposite direction
#   None   -> unavailable / unexpected -> use the misaligned-load fallback.
# ----------------------------------------------------------------------------
_ROLL_MODE_CACHE = []


def _roll_semantics():
    if _ROLL_MODE_CACHE:
        return _ROLL_MODE_CACHE[0]
    mode = None
    try:
        def _probe_kernel(x_ref, o_ref):
            o_ref[...] = pltpu.roll(x_ref[...], 1, axis=0)

        xp = jnp.arange(16 * 128, dtype=jnp.float32).reshape(16, 128)
        out = pl.pallas_call(
            _probe_kernel,
            out_shape=jax.ShapeDtypeStruct((16, 128), jnp.float32),
        )(xp)
        out = jax.block_until_ready(out)
        if bool(jnp.array_equal(out, jnp.roll(xp, 1, axis=0))):
            mode = "jnp"
        elif bool(jnp.array_equal(out, jnp.roll(xp, -1, axis=0))):
            mode = "rev"
        else:
            mode = None
    except Exception:
        mode = None
    _ROLL_MODE_CACHE.append(mode)
    return mode


# ----------------------------------------------------------------------------
# Kernel
# ----------------------------------------------------------------------------
def _softdtw_kernel(x_ref, y_ref, out_ref, r_ref, *, gamma, N, M, C, L, BLK,
                    roll_shift):
    """Anti-diagonal wavefront soft-DTW forward for one 128-lane batch chunk.

    x_ref : (C, L, BLK)   x2[:, q, :] = x[:, q-1, :] for q in [1, N], else 0
    y_ref : (C, YR, BLK)  y2[:, N+m, :] = y[:, M-1-m, :] for m in [0, M), else 0
    out_ref: (1, BLK)     R[N, M] per lane (batch element)
    r_ref : (2*LP, BLK)   two rolling diagonals; slot s at rows [s*LP,(s+1)*LP);
                          logical row q of a diagonal sits at phys s*LP + 8 + q.
                          Rows [s*LP, s*LP+8) are a permanent _BIG border (only
                          needed by the misaligned-load fallback path).

    Row q of diagonal d holds R[q, d-q]; boundary / out-of-range rows hold
    _BIG, reproducing compute_softdtw's 1e8 border initialization exactly.
    Post-wrapper-swap N <= M, so L = min(N,M)+1 (padded to 8).
    """
    LP = L + 8
    inv_g = 1.0 / gamma

    # Hoisted, d-independent pieces (review item: mask hoisting).
    q_iota = lax.broadcasted_iota(jnp.int32, (L, BLK), 0)     # logical row = i
    row_ok = (q_iota >= 1) & (q_iota <= N)
    big = jnp.full((L, BLK), _BIG, dtype=jnp.float32)

    # ---- init: diag d=0 -> slot 0 (R[0,0] = 0), diag d=1 -> slot 1 (all _BIG)
    r_ref[...] = jnp.full((2 * LP, BLK), _BIG, dtype=jnp.float32)
    r_ref[pl.ds(8, 1), :] = jnp.zeros((1, BLK), dtype=jnp.float32)  # R[0,0]=0

    def emit_diag(d, base_new, base_prev, phase):
        """Compute diagonal d.  base_new/base_prev are STATIC slot offsets."""
        # previous diagonal d-1:  p1[q]    = R[q,   j-1]
        #                         p1_up[q] = R[q-1, j  ]
        # diagonal d-2 (in the slot being overwritten):
        #                         p2_up[q] = R[q-1, j-1]
        p1 = r_ref[pl.ds(base_prev + 8, L), :]
        if roll_shift is None:
            # fallback: misaligned (+7) loads through the _BIG border.
            p1_up = r_ref[pl.ds(base_prev + 7, L), :]
            p2_up = r_ref[pl.ds(base_new + 7, L), :]
        else:
            # aligned loads + XLU shift-by-one; the wrapped row 0 is garbage
            # but row 0 is always masked to _BIG below, so it is never used.
            p1_up = pltpu.roll(p1, roll_shift, axis=0)
            p2_up = pltpu.roll(r_ref[pl.ds(base_new + 8, L), :],
                               roll_shift, axis=0)

        z0 = p2_up * (-inv_g)
        z1 = p1_up * (-inv_g)
        z2 = p1 * (-inv_g)
        zmax = jnp.maximum(jnp.maximum(z0, z1), z2)
        zsum = (jnp.exp(z0 - zmax) + jnp.exp(z1 - zmax) + jnp.exp(z2 - zmax))
        smin = (jnp.log(zsum) + zmax) * (-gamma)

        # D[i-1, j-1] along this diagonal, accumulated over channels as
        # lane-dense (L, BLK) VPU work.
        ystart = (N + M) - d
        dacc = jnp.zeros((L, BLK), dtype=jnp.float32)
        for c in range(C):                      # static unroll over channels
            diff = x_ref[c] - y_ref[c, pl.ds(ystart, L), :]
            dacc = dacc + diff * diff

        # Per-phase minimal validity mask (j = d - q):
        #   A (d <= N):        j<=M always; only j>=1  <=> q <  d
        #   B (N+1<=d<=M+1):   both bounds automatic -> static row mask only
        #   C (d >= M+2):      j>=1 always; only j<=M  <=> q >= d-M
        if phase == "B":
            valid = row_ok
        elif phase == "A":
            valid = row_ok & (q_iota < d)
        else:  # "C"
            valid = row_ok & (q_iota >= d - M)

        r_ref[pl.ds(base_new + 8, L), :] = jnp.where(valid, dacc + smin, big)

    def emit_phase(d_lo, d_hi, phase):
        """Emit diagonals d_lo..d_hi (inclusive) with static slot bases."""
        count = d_hi - d_lo + 1
        if count <= 0:
            return
        if count <= 8:
            # short phase: fully static unroll (static d -> static ystart/mask)
            for d in range(d_lo, d_hi + 1):
                emit_diag(d, (d % 2) * LP, ((d + 1) % 2) * LP, phase)
            return
        n_pairs = count // 2
        s_even = (d_lo % 2) * LP           # slot of 1st diag in each pair
        s_odd = ((d_lo + 1) % 2) * LP      # slot of 2nd diag in each pair

        def pair_body(t, carry):
            d0 = d_lo + 2 * t              # parity(d0) == parity(d_lo): static
            emit_diag(d0, s_even, s_odd, phase)
            emit_diag(d0 + 1, s_odd, s_even, phase)
            return carry

        lax.fori_loop(0, n_pairs, pair_body, 0)
        if count % 2 == 1:
            d = d_hi                       # static python int
            emit_diag(d, (d % 2) * LP, ((d + 1) % 2) * LP, phase)

    # Phases (post-swap N <= M): growing band, full band, shrinking band.
    emit_phase(2, N, "A")
    emit_phase(N + 1, M + 1, "B")
    emit_phase(M + 2, N + M, "C")

    # result R[N, M] sits on diagonal d = N + M at logical row q = N.
    base_last = ((N + M) % 2) * LP         # static python int
    out_ref[...] = r_ref[pl.ds(base_last + 8 + N, 1), :]


# ----------------------------------------------------------------------------
# Wrapper
# ----------------------------------------------------------------------------
def _softdtw_single(x, y, gamma):
    """x: (B, N, C), y: (B, M, C)  ->  (B,) soft-DTW(x, y) forward values."""
    B, N, C = x.shape
    B2, M, C2 = y.shape
    assert B == B2 and C == C2, (x.shape, y.shape)

    # Orient the wavefront rows along the SHORTER sequence (soft-DTW is
    # symmetric in its two arguments), so per-step slab work ~ min(N, M).
    if M < N:
        x, y = y, x
        N, M = M, N

    BLK = _LANES
    Bpad = _round_up(max(B, 1), BLK)
    L = _round_up(N + 1, 8)                 # rows 0..N (row 0 = boundary)
    LP = L + 8
    YR = _round_up(N + M + L - 2, 8)        # reversed-y diagonal window

    xt = jnp.transpose(x, (2, 1, 0)).astype(jnp.float32)   # (C, N, B)
    yt = jnp.transpose(y, (2, 1, 0)).astype(jnp.float32)   # (C, M, B)

    # x2[:, q, :] = x[:, q-1, :]  for q in [1, N]
    x2 = jnp.zeros((C, L, Bpad), jnp.float32)
    x2 = x2.at[:, 1:N + 1, :B].set(xt)
    # y2[:, N+m, :] = y[:, M-1-m, :]  for m in [0, M)   (reversed y)
    y2 = jnp.zeros((C, YR, Bpad), jnp.float32)
    y2 = y2.at[:, N:N + M, :B].set(yt[:, ::-1, :])

    roll_mode = _roll_semantics()
    if roll_mode == "jnp":
        roll_shift = 1
    elif roll_mode == "rev":
        roll_shift = L - 1                  # rotate by -1 under "rev" semantics
    else:
        roll_shift = None                   # misaligned-load fallback

    kernel = functools.partial(_softdtw_kernel, gamma=float(gamma),
                               N=N, M=M, C=C, L=L, BLK=BLK,
                               roll_shift=roll_shift)

    # per-program VMEM estimate: double-buffered input blocks + scratch + out.
    need = 4 * BLK * (2 * C * (L + YR) + 2 * LP + 2)
    cparams = {"dimension_semantics": ("parallel",)}
    if need > (12 << 20):
        # Clamp to the physical VMEM of the current chip (v7x: 64 MiB/core),
        # leaving headroom for Mosaic-internal scratch and output buffering.
        try:
            info = pltpu.get_tpu_info()
            cap = int(getattr(info, "vmem_capacity_bytes", 0)) or None
        except Exception:
            cap = None
        if not cap:
            cap = 64 << 20                  # conservative (v7x per-core VMEM)
        cap = min(cap, 128 << 20)
        limit = min(need + (8 << 20), cap - (4 << 20))
        cparams["vmem_limit_bytes"] = int(max(limit, 16 << 20))

    out = pl.pallas_call(
        kernel,
        out_shape=jax.ShapeDtypeStruct((1, Bpad), jnp.float32),
        grid=(Bpad // BLK,),
        in_specs=[
            pl.BlockSpec((C, L, BLK), lambda b: (0, 0, b)),
            pl.BlockSpec((C, YR, BLK), lambda b: (0, 0, b)),
        ],
        out_specs=pl.BlockSpec((1, BLK), lambda b: (0, b)),
        scratch_shapes=[pltpu.VMEM((2 * LP, BLK), jnp.float32)],
        compiler_params=pltpu.CompilerParams(**cparams),
    )(x2, y2)
    return out[0, :B]


def soft_dtw(x, y, gamma=1.0, normalize=False):
    """Equivalent of SoftDTW(gamma, normalize).forward(x, y)."""
    if not normalize:
        return _softdtw_single(x, y, gamma)
    if x.shape[1] == y.shape[1]:
        # Fuse the xy / xx / yy problems into one kernel call over a 3x batch
        # (better 128-lane / TensorCore occupancy for small B, one padded HBM
        # copy instead of three).
        B = x.shape[0]
        xs = jnp.concatenate([x, x, y], axis=0)
        ys = jnp.concatenate([y, x, y], axis=0)
        out = _softdtw_single(xs, ys, gamma)
        out_xy, out_xx, out_yy = out[:B], out[B:2 * B], out[2 * B:]
    else:
        out_xy = _softdtw_single(x, y, gamma)
        out_xx = _softdtw_single(x, x, gamma)
        out_yy = _softdtw_single(y, y, gamma)
    return out_xy - 0.5 * (out_xx + out_yy)


# ----------------------- pure-JAX reference (for checking) ------------------
def _soft_dtw_ref(x, y, gamma):
    x = x.astype(jnp.float32)
    y = y.astype(jnp.float32)
    D = jnp.sum((x[:, :, None, :] - y[:, None, :, :]) ** 2, axis=-1)  # (B,N,M)
    B, N, M = D.shape
    R = jnp.full((B, N + 2, M + 2), _BIG, dtype=jnp.float32)
    R = R.at[:, 0, 0].set(0.0)

    def body(k, R):
        j = 1 + k // N
        i = 1 + k % N
        r0 = -lax.dynamic_slice(R, (0, i - 1, j - 1), (B, 1, 1))[:, 0, 0] / gamma
        r1 = -lax.dynamic_slice(R, (0, i - 1, j), (B, 1, 1))[:, 0, 0] / gamma
        r2 = -lax.dynamic_slice(R, (0, i, j - 1), (B, 1, 1))[:, 0, 0] / gamma
        rmax = jnp.maximum(jnp.maximum(r0, r1), r2)
        rsum = jnp.exp(r0 - rmax) + jnp.exp(r1 - rmax) + jnp.exp(r2 - rmax)
        sm = -gamma * (jnp.log(rsum) + rmax)
        d = lax.dynamic_slice(D, (0, i - 1, j - 1), (B, 1, 1))[:, 0, 0]
        upd = (d + sm).reshape(B, 1, 1)
        return lax.dynamic_update_slice(R, upd, (0, i, j))

    R = lax.fori_loop(0, N * M, body, R)
    return R[:, N, M]


if __name__ == "__main__":
    key = jax.random.PRNGKey(0)
    k1, k2, k3, k4 = jax.random.split(key, 4)

    # Case 1: square problem, normalize=False (the default forward path).
    B, T1, T2, C = 2, 8, 8, 4
    x = jax.random.normal(k1, (B, T1, C), dtype=jnp.float32)
    y = jax.random.normal(k2, (B, T2, C), dtype=jnp.float32)
    out = jax.block_until_ready(soft_dtw(x, y, gamma=1.0, normalize=False))
    ref = jax.block_until_ready(_soft_dtw_ref(x, y, 1.0))
    assert out.shape == (B,), out.shape
    assert jnp.allclose(out, ref, rtol=1e-3, atol=1e-3), (out, ref)

    # Case 2: rectangular, non-multiple-of-8 lengths (exercises the
    # shorter-sequence swap), normalize=True with separate calls.
    B2, T1b, T2b, C2 = 3, 9, 5, 3
    x2 = jax.random.normal(k3, (B2, T1b, C2), dtype=jnp.float32)
    y2 = jax.random.normal(k4, (B2, T2b, C2), dtype=jnp.float32)
    out2 = jax.block_until_ready(soft_dtw(x2, y2, gamma=0.5, normalize=True))
    ref2 = (_soft_dtw_ref(x2, y2, 0.5)
            - 0.5 * (_soft_dtw_ref(x2, x2, 0.5) + _soft_dtw_ref(y2, y2, 0.5)))
    ref2 = jax.block_until_ready(ref2)
    assert out2.shape == (B2,), out2.shape
    assert jnp.allclose(out2, ref2, rtol=1e-3, atol=1e-3), (out2, ref2)

    # Case 3: square + normalize=True (exercises the fused 3-in-1 batched call).
    out3 = jax.block_until_ready(soft_dtw(x, y, gamma=1.0, normalize=True))
    ref3 = (_soft_dtw_ref(x, y, 1.0)
            - 0.5 * (_soft_dtw_ref(x, x, 1.0) + _soft_dtw_ref(y, y, 1.0)))
    ref3 = jax.block_until_ready(ref3)
    assert out3.shape == (B,), out3.shape
    assert jnp.allclose(out3, ref3, rtol=1e-3, atol=1e-3), (out3, ref3)

    print("KERNEL_OK")
</pallas_src>

<mosaic_0001>
module attributes {stable_mosaic.version = 11 : i64} {
  func.func @_probe_kernel(%arg0: memref<16x128xf32, #tpu.memory_space<vmem>>, %arg1: memref<16x128xf32, #tpu.memory_space<vmem>>) attributes {dimension_semantics = [], scalar_prefetch = 0 : i64, scratch_operands = 0 : i64, tpu.core_type = #tpu.core_type<tc>} {
    %c0 = arith.constant 0 : index
    %c0_0 = arith.constant 0 : index
    %0 = vector.load %arg0[%c0, %c0_0] : memref<16x128xf32, #tpu.memory_space<vmem>>, vector<16x128xf32>
    %c1_i32 = arith.constant 1 : i32
    %1 = tpu.dynamic_rotate %0 by %c1_i32 dim 0 : vector<16x128xf32>, i32 -> vector<16x128xf32>
    %c0_1 = arith.constant 0 : index
    %c0_2 = arith.constant 0 : index
    %2 = vector.load %arg1[%c0_1, %c0_2] : memref<16x128xf32, #tpu.memory_space<vmem>>, vector<16x128xf32>
    tpu.vector_store %arg1[%c0_1, %c0_2], %1 {strides = array<i32>} : memref<16x128xf32, #tpu.memory_space<vmem>>, vector<16x128xf32>,
    return
  }
}

module attributes {stable_mosaic.version = 11 : i64} {
  func.func @_softdtw_kernel(%arg0: i32, %arg1: memref<4x16x128xf32, #tpu.memory_space<vmem>>, %arg2: memref<4x32x128xf32, #tpu.memory_space<vmem>>, %arg3: memref<1x128xf32, #tpu.memory_space<vmem>>, %arg4: memref<48x128xf32, #tpu.memory_space<vmem>>) attributes {dimension_semantics = [#tpu.dimension_semantics<parallel>], iteration_bounds = array<i64: 1>, scalar_prefetch = 0 : i64, scratch_operands = 1 : i64, tpu.core_type = #tpu.core_type<tc>, window_params = [{transform_indices = @transform_0, window_bounds = array<i64: 4, 16, 128>}, {transform_indices = @transform_1, window_bounds = array<i64: 4, 32, 128>}, {transform_indices = @transform_2, window_bounds = array<i64: 1, 128>}]} {
    %0 = tpu.iota {dimensions = array<i32: 0>} : vector<16x128xi32>
    %c1_i32 = arith.constant 1 : i32
    %1 = vector.broadcast %c1_i32 : i32 to vector<16x128xi32>
    %2 = arith.cmpi sge, %0, %1 : vector<16x128xi32>
    %c8_i32 = arith.constant 8 : i32
    %3 = vector.broadcast %c8_i32 : i32 to vector<16x128xi32>
    %4 = arith.cmpi sle, %0, %3 : vector<16x128xi32>
    %5 = arith.andi %2, %4 : vector<16x128xi1>
    %cst = arith.constant 1.000000e+08 : f32
    %6 = vector.broadcast %cst : f32 to vector<16x128xf32>
    %cst_0 = arith.constant 1.000000e+08 : f32
    %7 = vector.broadcast %cst_0 : f32 to vector<48x128xf32>
    %c0 = arith.constant 0 : index
    %c0_1 = arith.constant 0 : index
    %8 = vector.load %arg4[%c0, %c0_1] : memref<48x128xf32, #tpu.memory_space<vmem>>, vector<48x128xf32>
    tpu.vector_store %arg4[%c0, %c0_1], %7 {strides = array<i32>} : memref<48x128xf32, #tpu.memory_space<vmem>>, vector<48x128xf32>,
    %cst_2 = arith.constant 0.000000e+00 : f32
    %9 = vector.broadcast %cst_2 : f32 to vector<1x128xf32>
    %c8 = arith.constant 8 : index
    %c0_3 = arith.constant 0 : index
    %10 = vector.load %arg4[%c8, %c0_3] : memref<48x128xf32, #tpu.memory_space<vmem>>, vector<1x128xf32>
    tpu.vector_store %arg4[%c8, %c0_3], %9 {strides = array<i32>} : memref<48x128xf32, #tpu.memory_space<vmem>>, vector<1x128xf32>,
    %c32 = arith.constant 32 : index
    %c0_4 = arith.constant 0 : index
    %11 = vector.load %arg4[%c32, %c0_4] : memref<48x128xf32, #tpu.memory_space<vmem>>, vector<16x128xf32>
    %c31 = arith.constant 31 : index
    %c0_5 = arith.constant 0 : index
    %12 = vector.load %arg4[%c31, %c0_5] : memref<48x128xf32, #tpu.memory_space<vmem>>, vector<16x128xf32>
    %c7 = arith.constant 7 : index
    %c0_6 = arith.constant 0 : index
    %13 = vector.load %arg4[%c7, %c0_6] : memref<48x128xf32, #tpu.memory_space<vmem>>, vector<16x128xf32>
    %cst_7 = arith.constant -1.000000e+00 : f32
    %14 = vector.broadcast %cst_7 : f32 to vector<16x128xf32>
    %15 = arith.mulf %13, %14 : vector<16x128xf32>
    %cst_8 = arith.constant -1.000000e+00 : f32
    %16 = vector.broadcast %cst_8 : f32 to vector<16x128xf32>
    %17 = arith.mulf %12, %16 : vector<16x128xf32>
    %cst_9 = arith.constant -1.000000e+00 : f32
    %18 = vector.broadcast %cst_9 : f32 to vector<16x128xf32>
    %19 = arith.mulf %11, %18 : vector<16x128xf32>
    %20 = arith.maximumf %15, %17 : vector<16x128xf32>
    %21 = arith.maximumf %20, %19 : vector<16x128xf32>
    %22 = arith.subf %15, %21 : vector<16x128xf32>
    %23 = math.exp %22 : vector<16x128xf32>
    %24 = arith.subf %17, %21 : vector<16x128xf32>
    %25 = math.exp %24 : vector<16x128xf32>
    %26 = arith.addf %23, %25 : vector<16x128xf32>
    %27 = arith.subf %19, %21 : vector<16x128xf32>
    %28 = math.exp %27 : vector<16x128xf32>
    %29 = arith.addf %26, %28 : vector<16x128xf32>
    %30 = math.log %29 : vector<16x128xf32>
    %31 = arith.addf %30, %21 : vector<16x128xf32>
    %cst_10 = arith.constant -1.000000e+00 : f32
    %32 = vector.broadcast %cst_10 : f32 to vector<16x128xf32>
    %33 = arith.mulf %31, %32 : vector<16x128xf32>
    %cst_11 = arith.constant 0.000000e+00 : f32
    %34 = vector.broadcast %cst_11 : f32 to vector<16x128xf32>
    %c0_12 = arith.constant 0 : index
    %c0_13 = arith.constant 0 : index
    %c0_14 = arith.constant 0 : index
    %35 = vector.load %arg1[%c0_12, %c0_13, %c0_14] : memref<4x16x128xf32, #tpu.memory_space<vmem>>, vector<1x16x128xf32>
    %36 = vector.shape_cast %35 : vector<1x16x128xf32> to vector<16x128xf32>
    %c0_15 = arith.constant 0 : index
    %c14 = arith.constant 14 : index
    %c0_16 = arith.constant 0 : index
    %37 = vector.load %arg2[%c0_15, %c14, %c0_16] : memref<4x32x128xf32, #tpu.memory_space<vmem>>, vector<1x16x128xf32>
    %38 = vector.shape_cast %37 : vector<1x16x128xf32> to vector<16x128xf32>
    %39 = arith.subf %36, %38 : vector<16x128xf32>
    %40 = arith.mulf %39, %39 : vector<16x128xf32>
    %41 = arith.addf %34, %40 : vector<16x128xf32>
    %c1 = arith.constant 1 : index
    %c0_17 = arith.constant 0 : index
    %c0_18 = arith.constant 0 : index
    %42 = vector.load %arg1[%c1, %c0_17, %c0_18] : memref<4x16x128xf32, #tpu.memory_space<vmem>>, vector<1x16x128xf32>
    %43 = vector.shape_cast %42 : vector<1x16x128xf32> to vector<16x128xf32>
    %c1_19 = arith.constant 1 : index
    %c14_20 = arith.constant 14 : index
    %c0_21 = arith.constant 0 : index
    %44 = vector.load %arg2[%c1_19, %c14_20, %c0_21] : memref<4x32x128xf32, #tpu.memory_space<vmem>>, vector<1x16x128xf32>
    %45 = vector.shape_cast %44 : vector<1x16x128xf32> to vector<16x128xf32>
    %46 = arith.subf %43, %45 : vector<16x128xf32>
    %47 = arith.mulf %46, %46 : vector<16x128xf32>
    %48 = arith.addf %41, %47 : vector<16x128xf32>
    %c2 = arith.constant 2 : index
    %c0_22 = arith.constant 0 : index
    %c0_23 = arith.constant 0 : index
    %49 = vector.load %arg1[%c2, %c0_22, %c0_23] : memref<4x16x128xf32, #tpu.memory_space<vmem>>, vector<1x16x128xf32>
    %50 = vector.shape_cast %49 : vector<1x16x128xf32> to vector<16x128xf32>
    %c2_24 = arith.constant 2 : index
    %c14_25 = arith.constant 14 : index
    %c0_26 = arith.constant 0 : index
    %51 = vector.load %arg2[%c2_24, %c14_25, %c0_26] : memref<4x32x128xf32, #tpu.memory_space<vmem>>, vector<1x16x128xf32>
    %52 = vector.shape_cast %51 : vector<1x16x128xf32> to vector<16x128xf32>
    %53 = arith.subf %50, %52 : vector<16x128xf32>
    %54 = arith.mulf %53, %53 : vector<16x128xf32>
    %55 = arith.addf %48, %54 : vector<16x128xf32>
    %c3 = arith.constant 3 : index
    %c0_27 = arith.constant 0 : index
    %c0_28 = arith.constant 0 : index
    %56 = vector.load %arg1[%c3, %c0_27, %c0_28] : memref<4x16x128xf32, #tpu.memory_space<vmem>>, vector<1x16x128xf32>
    %57 = vector.shape_cast %56 : vector<1x16x128xf32> to vector<16x128xf32>
    %c3_29 = arith.constant 3 : index
    %c14_30 = arith.constant 14 : index
    %c0_31 = arith.constant 0 : index
    %58 = vector.load %arg2[%c3_29, %c14_30, %c0_31] : memref<4x32x128xf32, #tpu.memory_space<vmem>>, vector<1x16x128xf32>
    %59 = vector.shape_cast %58 : vector<1x16x128xf32> to vector<16x128xf32>
    %60 = arith.subf %57, %59 : vector<16x128xf32>
    %61 = arith.mulf %60, %60 : vector<16x128xf32>
    %62 = arith.addf %55, %61 : vector<16x128xf32>
    %c2_i32 = arith.constant 2 : i32
    %63 = vector.broadcast %c2_i32 : i32 to vector<16x128xi32>
    %64 = arith.cmpi slt, %0, %63 : vector<16x128xi32>
    %65 = arith.andi %5, %64 : vector<16x128xi1>
    %66 = arith.addf %62, %33 : vector<16x128xf32>
    %67 = arith.select %65, %66, %6 : vector<16x128xi1>, vector<16x128xf32>
    %c8_32 = arith.constant 8 : index
    %c0_33 = arith.constant 0 : index
    %68 = vector.load %arg4[%c8_32, %c0_33] : memref<48x128xf32, #tpu.memory_space<vmem>>, vector<16x128xf32>
    tpu.vector_store %arg4[%c8_32, %c0_33], %67 {strides = array<i32>} : memref<48x128xf32, #tpu.memory_space<vmem>>, vector<16x128xf32>,
    %c8_34 = arith.constant 8 : index
    %c0_35 = arith.constant 0 : index
    %69 = vector.load %arg4[%c8_34, %c0_35] : memref<48x128xf32, #tpu.memory_space<vmem>>, vector<16x128xf32>
    %c7_36 = arith.constant 7 : index
    %c0_37 = arith.constant 0 : index
    %70 = vector.load %arg4[%c7_36, %c0_37] : memref<48x128xf32, #tpu.memory_space<vmem>>, vector<16x128xf32>
    %c31_38 = arith.constant 31 : index
    %c0_39 = arith.constant 0 : index
    %71 = vector.load %arg4[%c31_38, %c0_39] : memref<48x128xf32, #tpu.memory_space<vmem>>, vector<16x128xf32>
    %cst_40 = arith.constant -1.000000e+00 : f32
    %72 = vector.broadcast %cst_40 : f32 to vector<16x128xf32>
    %73 = arith.mulf %71, %72 : vector<16x128xf32>
    %cst_41 = arith.constant -1.000000e+00 : f32
    %74 = vector.broadcast %cst_41 : f32 to vector<16x128xf32>
    %75 = arith.mulf %70, %74 : vector<16x128xf32>
    %cst_42 = arith.constant -1.000000e+00 : f32
    %76 = vector.broadcast %cst_42 : f32 to vector<16x128xf32>
    %77 = arith.mulf %69, %76 : vector<16x128xf32>
    %78 = arith.maximumf %73, %75 : vector<16x128xf32>
    %79 = arith.maximumf %78, %77 : vector<16x128xf32>
    %80 = arith.subf %73, %79 : vector<16x128xf32>
    %81 = math.exp %80 : vector<16x128xf32>
    %82 = arith.subf %75, %79 : vector<16x128xf32>
    %83 = math.exp %82 : vector<16x128xf32>
    %84 = arith.addf %81, %83 : vector<16x128xf32>
    %85 = arith.subf %77, %79 : vector<16x128xf32>
    %86 = math.exp %85 : vector<16x128xf32>
    %87 = arith.addf %84, %86 : vector<16x128xf32>
    %88 = math.log %87 : vector<16x128xf32>
    %89 = arith.addf %88, %79 : vector<16x128xf32>
    %cst_43 = arith.constant -1.000000e+00 : f32
    %90 = vector.broadcast %cst_43 : f32 to vector<16x128xf32>
    %91 = arith.mulf %89, %90 : vector<16x128xf32>
    %cst_44 = arith.constant 0.000000e+00 : f32
    %92 = vector.broadcast %cst_44 : f32 to vector<16x128xf32>
    %c0_45 = arith.constant 0 : index
    %c0_46 = arith.constant 0 : index
    %c0_47 = arith.constant 0 : index
    %93 = vector.load %arg1[%c0_45, %c0_46, %c0_47] : memref<4x16x128xf32, #tpu.memory_space<vmem>>, vector<1x16x128xf32>
    %94 = vector.shape_cast %93 : vector<1x16x128xf32> to vector<16x128xf32>
    %c0_48 = arith.constant 0 : index
    %c13 = arith.constant 13 : index
    %c0_49 = arith.constant 0 : index
    %95 = vector.load %arg2[%c0_48, %c13, %c0_49] : memref<4x32x128xf32, #tpu.memory_space<vmem>>, vector<1x16x128xf32>
    %96 = vector.shape_cast %95 : vector<1x16x128xf32> to vector<16x128xf32>
    %97 = arith.subf %94, %96 : vector<16x128xf32>
    %98 = arith.mulf %97, %97 : vector<16x128xf32>
    %99 = arith.addf %92, %98 : vector<16x128xf32>
    %c1_50 = arith.constant 1 : index
    %c0_51 = arith.constant 0 : index
    %c0_52 = arith.constant 0 : index
    %100 = vector.load %arg1[%c1_50, %c0_51, %c0_52] : memref<4x16x128xf32, #tpu.memory_space<vmem>>, vector<1x16x128xf32>
    %101 = vector.shape_cast %100 : vector<1x16x128xf32> to vector<16x128xf32>
    %c1_53 = arith.constant 1 : index
    %c13_54 = arith.constant 13 : index
    %c0_55 = arith.constant 0 : index
    %102 = vector.load %arg2[%c1_53, %c13_54, %c0_55] : memref<4x32x128xf32, #tpu.memory_space<vmem>>, vector<1x16x128xf32>
    %103 = vector.shape_cast %102 : vector<1x16x128xf32> to vector<16x128xf32>
    %104 = arith.subf %101, %103 : vector<16x128xf32>
    %105 = arith.mulf %104, %104 : vector<16x128xf32>
    %106 = arith.addf %99, %105 : vector<16x128xf32>
    %c2_56 = arith.constant 2 : index
    %c0_57 = arith.constant 0 : index
    %c0_58 = arith.constant 0 : index
    %107 = vector.load %arg1[%c2_56, %c0_57, %c0_58] : memref<4x16x128xf32, #tpu.memory_space<vmem>>, vector<1x16x128xf32>
    %108 = vector.shape_cast %107 : vector<1x16x128xf32> to vector<16x128xf32>
    %c2_59 = arith.constant 2 : index
    %c13_60 = arith.constant 13 : index
    %c0_61 = arith.constant 0 : index
    %109 = vector.load %arg2[%c2_59, %c13_60, %c0_61] : memref<4x32x128xf32, #tpu.memory_space<vmem>>, vector<1x16x128xf32>
    %110 = vector.shape_cast %109 : vector<1x16x128xf32> to vector<16x128xf32>
    %111 = arith.subf %108, %110 : vector<16x128xf32>
    %112 = arith.mulf %111, %111 : vector<16x128xf32>
    %113 = arith.addf %106, %112 : vector<16x128xf32>
    %c3_62 = arith.constant 3 : index
    %c0_63 = arith.constant 0 : index
    %c0_64 = arith.constant 0 : index
    %114 = vector.load %arg1[%c3_62, %c0_63, %c0_64] : memref<4x16x128xf32, #tpu.memory_space<vmem>>, vector<1x16x128xf32>
    %115 = vector.shape_cast %114 : vector<1x16x128xf32> to vector<16x128xf32>
    %c3_65 = arith.constant 3 : index
    %c13_66 = arith.constant 13 : index
    %c0_67 = arith.constant 0 : index
    %116 = vector.load %arg2[%c3_65, %c13_66, %c0_67] : memref<4x32x128xf32, #tpu.memory_space<vmem>>, vector<1x16x128xf32>
    %117 = vector.shape_cast %116 : vector<1x16x128xf32> to vector<16x128xf32>
    %118 = arith.subf %115, %117 : vector<16x128xf32>
    %119 = arith.mulf %118, %118 : vector<16x128xf32>
    %120 = arith.addf %113, %119 : vector<16x128xf32>
    %c3_i32 = arith.constant 3 : i32
    %121 = vector.broadcast %c3_i32 : i32 to vector<16x128xi32>
    %122 = arith.cmpi slt, %0, %121 : vector<16x128xi32>
    %123 = arith.andi %5, %122 : vector<16x128xi1>
    %124 = arith.addf %120, %91 : vector<16x128xf32>
    %125 = arith.select %123, %124, %6 : vector<16x128xi1>, vector<16x128xf32>
    %c32_68 = arith.constant 32 : index
    %c0_69 = arith.constant 0 : index
    %126 = vector.load %arg4[%c32_68, %c0_69] : memref<48x128xf32, #tpu.memory_space<vmem>>, vector<16x128xf32>
    tpu.vector_store %arg4[%c32_68, %c0_69], %125 {strides = array<i32>} : memref<48x128xf32, #tpu.memory_space<vmem>>, vector<16x128xf32>,
    %c32_70 = arith.constant 32 : index
    %c0_71 = arith.constant 0 : index
    %127 = vector.load %arg4[%c32_70, %c0_71] : memref<48x128xf32, #tpu.memory_space<vmem>>, vector<16x128xf32>
    %c31_72 = arith.constant 31 : index
    %c0_73 = arith.constant 0 : index
    %128 = vector.load %arg4[%c31_72, %c0_73] : memref<48x128xf32, #tpu.memory_space<vmem>>, vector<16x128xf32>
    %c7_74 = arith.constant 7 : index
    %c0_75 = arith.constant 0 : index
    %129 = vector.load %arg4[%c7_74, %c0_75] : memref<48x128xf32, #tpu.memory_space<vmem>>, vector<16x128xf32>
    %cst_76 = arith.constant -1.000000e+00 : f32
    %130 = vector.broadcast %cst_76 : f32 to vector<16x128xf32>
    %131 = arith.mulf %129, %130 : vector<16x128xf32>
    %cst_77 = arith.constant -1.000000e+00 : f32
    %132 = vector.broadcast %cst_77 : f32 to vector<16x128xf32>
    %133 = arith.mulf %128, %132 : vector<16x128xf32>
    %cst_78 = arith.constant -1.000000e+00 : f32
    %134 = vector.broadcast %cst_78 : f32 to vector<16x128xf32>
    %135 = arith.mulf %127, %134 : vector<16x128xf32>
    %136 = arith.maximumf %131, %133 : vector<16x128xf32>
    %137 = arith.maximumf %136, %135 : vector<16x128xf32>
    %138 = arith.subf %131, %137 : vector<16x128xf32>
    %139 = math.exp %138 : vector<16x128xf32>
    %140 = arith.subf %133, %137 : vector<16x128xf32>
    %141 = math.exp %140 : vector<16x128xf32>
    %142 = arith.addf %139, %141 : vector<16x128xf32>
    %143 = arith.subf %135, %137 : vector<16x128xf32>
    %144 = math.exp %143 : vector<16x128xf32>
    %145 = arith.addf %142, %144 : vector<16x128xf32>
    %146 = math.log %145 : vector<16x128xf32>
    %147 = arith.addf %146, %137 : vector<16x128xf32>
    %cst_79 = arith.constant -1.000000e+00 : f32
    %148 = vector.broadcast %cst_79 : f32 to vector<16x128xf32>
    %149 = arith.mulf %147, %148 : vector<16x128xf32>
    %cst_80 = arith.constant 0.000000e+00 : f32
    %150 = vector.broadcast %cst_80 : f32 to vector<16x128xf32>
    %c0_81 = arith.constant 0 : index
    %c0_82 = arith.constant 0 : index
    %c0_83 = arith.constant 0 : index
    %151 = vector.load %arg1[%c0_81, %c0_82, %c0_83] : memref<4x16x128xf32, #tpu.memory_space<vmem>>, vector<1x16x128xf32>
    %152 = vector.shape_cast %151 : vector<1x16x128xf32> to vector<16x128xf32>
    %c0_84 = arith.constant 0 : index
    %c12 = arith.constant 12 : index
    %c0_85 = arith.constant 0 : index
    %153 = vector.load %arg2[%c0_84, %c12, %c0_85] : memref<4x32x128xf32, #tpu.memory_space<vmem>>, vector<1x16x128xf32>
    %154 = vector.shape_cast %153 : vector<1x16x128xf32> to vector<16x128xf32>
    %155 = arith.subf %152, %154 : vector<16x128xf32>
    %156 = arith.mulf %155, %155 : vector<16x128xf32>
    %157 = arith.addf %150, %156 : vector<16x128xf32>
    %c1_86 = arith.constant 1 : index
    %c0_87 = arith.constant 0 : index
    %c0_88 = arith.constant 0 : index
    %158 = vector.load %arg1[%c1_86, %c0_87, %c0_88] : memref<4x16x128xf32, #tpu.memory_space<vmem>>, vector<1x16x128xf32>
    %159 = vector.shape_cast %158 : vector<1x16x128xf32> to vector<16x128xf32>
    %c1_89 = arith.constant 1 : index
    %c12_90 = arith.constant 12 : index
    %c0_91 = arith.constant 0 : index
    %160 = vector.load %arg2[%c1_89, %c12_90, %c0_91] : memref<4x32x128xf32, #tpu.memory_space<vmem>>, vector<1x16x128xf32>
    %161 = vector.shape_cast %160 : vector<1x16x128xf32> to vector<16x128xf32>
    %162 = arith.subf %159, %161 : vector<16x128xf32>
    %163 = arith.mulf %162, %162 : vector<16x128xf32>
    %164 = arith.addf %157, %163 : vector<16x128xf32>
    %c2_92 = arith.constant 2 : index
    %c0_93 = arith.constant 0 : index
    %c0_94 = arith.constant 0 : index
    %165 = vector.load %arg1[%c2_92, %c0_93, %c0_94] : memref<4x16x128xf32, #tpu.memory_space<vmem>>, vector<1x16x128xf32>
    %166 = vector.shape_cast %165 : vector<1x16x128xf32> to vector<16x128xf32>
    %c2_95 = arith.constant 2 : index
    %c12_96 = arith.constant 12 : index
    %c0_97 = arith.constant 0 : index
    %167 = vector.load %arg2[%c2_95, %c12_96, %c0_97] : memref<4x32x128xf32, #tpu.memory_space<vmem>>, vector<1x16x128xf32>
    %168 = vector.shape_cast %167 : vector<1x16x128xf32> to vector<16x128xf32>
    %169 = arith.subf %166, %168 : vector<16x128xf32>
    %170 = arith.mulf %169, %169 : vector<16x128xf32>
    %171 = arith.addf %164, %170 : vector<16x128xf32>
    %c3_98 = arith.constant 3 : index
    %c0_99 = arith.constant 0 : index
    %c0_100 = arith.constant 0 : index
    %172 = vector.load %arg1[%c3_98, %c0_99, %c0_100] : memref<4x16x128xf32, #tpu.memory_space<vmem>>, vector<1x16x128xf32>
    %173 = vector.shape_cast %172 : vector<1x16x128xf32> to vector<16x128xf32>
    %c3_101 = arith.constant 3 : index
    %c12_102 = arith.constant 12 : index
    %c0_103 = arith.constant 0 : index
    %174 = vector.load %arg2[%c3_101, %c12_102, %c0_103] : memref<4x32x128xf32, #tpu.memory_space<vmem>>, vector<1x16x128xf32>
    %175 = vector.shape_cast %174 : vector<1x16x128xf32> to vector<16x128xf32>
    %176 = arith.subf %173, %175 : vector<16x128xf32>
    %177 = arith.mulf %176, %176 : vector<16x128xf32>
    %178 = arith.addf %171, %177 : vector<16x128xf32>
    %c4_i32 = arith.constant 4 : i32
    %179 = vector.broadcast %c4_i32 : i32 to vector<16x128xi32>
    %180 = arith.cmpi slt, %0, %179 : vector<16x128xi32>
    %181 = arith.andi %5, %180 : vector<16x128xi1>
    %182 = arith.addf %178, %149 : vector<16x128xf32>
    %183 = arith.select %181, %182, %6 : vector<16x128xi1>, vector<16x128xf32>
    %c8_104 = arith.constant 8 : index
    %c0_105 = arith.constant 0 : index
    %184 = vector.load %arg4[%c8_104, %c0_105] : memref<48x128xf32, #tpu.memory_space<vmem>>, vector<16x128xf32>
    tpu.vector_store %arg4[%c8_104, %c0_105], %183 {strides = array<i32>} : memref<48x128xf32, #tpu.memory_space<vmem>>, vector<16x128xf32>,
    %c8_106 = arith.constant 8 : index
    %c0_107 = arith.constant 0 : index
    %185 = vector.load %arg4[%c8_106, %c0_107] : memref<48x128xf32, #tpu.memory_space<vmem>>, vector<16x128xf32>
    %c7_108 = arith.constant 7 : index
    %c0_109 = arith.constant 0 : index
    %186 = vector.load %arg4[%c7_108, %c0_109] : memref<48x128xf32, #tpu.memory_space<vmem>>, vector<16x128xf32>
    %c31_110 = arith.constant 31 : index
    %c0_111 = arith.constant 0 : index
    %187 = vector.load %arg4[%c31_110, %c0_111] : memref<48x128xf32, #tpu.memory_space<vmem>>, vector<16x128xf32>
    %cst_112 = arith.constant -1.000000e+00 : f32
    %188 = vector.broadcast %cst_112 : f32 to vector<16x128xf32>
    %189 = arith.mulf %187, %188 : vector<16x128xf32>
    %cst_113 = arith.constant -1.000000e+00 : f32
    %190 = vector.broadcast %cst_113 : f32 to vector<16x128xf32>
    %191 = arith.mulf %186, %190 : vector<16x128xf32>
    %cst_114 = arith.constant -1.000000e+00 : f32
    %192 = vector.broadcast %cst_114 : f32 to vector<16x128xf32>
    %193 = arith.mulf %185, %192 : vector<16x128xf32>
    %194 = arith.maximumf %189, %191 : vector<16x128xf32>
    %195 = arith.maximumf %194, %193 : vector<16x128xf32>
    %196 = arith.subf %189, %195 : vector<16x128xf32>
    %197 = math.exp %196 : vector<16x128xf32>
    %198 = arith.subf %191, %195 : vector<16x128xf32>
    %199 = math.exp %198 : vector<16x128xf32>
    %200 = arith.addf %197, %199 : vector<16x128xf32>
    %201 = arith.subf %193, %195 : vector<16x128xf32>
    %202 = math.exp %201 : vector<16x128xf32>
    %203 = arith.addf %200, %202 : vector<16x128xf32>
    %204 = math.log %203 : vector<16x128xf32>
    %205 = arith.addf %204, %195 : vector<16x128xf32>
    %cst_115 = arith.constant -1.000000e+00 : f32
    %206 = vector.broadcast %cst_115 : f32 to vector<16x128xf32>
    %207 = arith.mulf %205, %206 : vector<16x128xf32>
    %cst_116 = arith.constant 0.000000e+00 : f32
    %208 = vector.broadcast %cst_116 : f32 to vector<16x128xf32>
    %c0_117 = arith.constant 0 : index
    %c0_118 = arith.constant 0 : index
    %c0_119 = arith.constant 0 : index
    %209 = vector.load %arg1[%c0_117, %c0_118, %c0_119] : memref<4x16x128xf32, #tpu.memory_space<vmem>>, vector<1x16x128xf32>
    %210 = vector.shape_cast %209 : vector<1x16x128xf32> to vector<16x128xf32>
    %c0_120 = arith.constant 0 : index
    %c11 = arith.constant 11 : index
    %c0_121 = arith.constant 0 : index
    %211 = vector.load %arg2[%c0_120, %c11, %c0_121] : memref<4x32x128xf32, #tpu.memory_space<vmem>>, vector<1x16x128xf32>
    %212 = vector.shape_cast %211 : vector<1x16x128xf32> to vector<16x128xf32>
    %213 = arith.subf %210, %212 : vector<16x128xf32>
    %214 = arith.mulf %213, %213 : vector<16x128xf32>
    %215 = arith.addf %208, %214 : vector<16x128xf32>
    %c1_122 = arith.constant 1 : index
    %c0_123 = arith.constant 0 : index
    %c0_124 = arith.constant 0 : index
    %216 = vector.load %arg1[%c1_122, %c0_123, %c0_124] : memref<4x16x128xf32, #tpu.memory_space<vmem>>, vector<1x16x128xf32>
    %217 = vector.shape_cast %216 : vector<1x16x128xf32> to vector<16x128xf32>
    %c1_125 = arith.constant 1 : index
    %c11_126 = arith.constant 11 : index
    %c0_127 = arith.constant 0 : index
    %218 = vector.load %arg2[%c1_125, %c11_126, %c0_127] : memref<4x32x128xf32, #tpu.memory_space<vmem>>, vector<1x16x128xf32>
    %219 = vector.shape_cast %218 : vector<1x16x128xf32> to vector<16x128xf32>
    %220 = arith.subf %217, %219 : vector<16x128xf32>
    %221 = arith.mulf %220, %220 : vector<16x128xf32>
    %222 = arith.addf %215, %221 : vector<16x128xf32>
    %c2_128 = arith.constant 2 : index
    %c0_129 = arith.constant 0 : index
    %c0_130 = arith.constant 0 : index
    %223 = vector.load %arg1[%c2_128, %c0_129, %c0_130] : memref<4x16x128xf32, #tpu.memory_space<vmem>>, vector<1x16x128xf32>
    %224 = vector.shape_cast %223 : vector<1x16x128xf32> to vector<16x128xf32>
    %c2_131 = arith.constant 2 : index
    %c11_132 = arith.constant 11 : index
    %c0_133 = arith.constant 0 : index
    %225 = vector.load %arg2[%c2_131, %c11_132, %c0_133] : memref<4x32x128xf32, #tpu.memory_space<vmem>>, vector<1x16x128xf32>
    %226 = vector.shape_cast %225 : vector<1x16x128xf32> to vector<16x128xf32>
    %227 = arith.subf %224, %226 : vector<16x128xf32>
    %228 = arith.mulf %227, %227 : vector<16x128xf32>
    %229 = arith.addf %222, %228 : vector<16x128xf32>
    %c3_134 = arith.constant 3 : index
    %c0_135 = arith.constant 0 : index
    %c0_136 = arith.constant 0 : index
    %230 = vector.load %arg1[%c3_134, %c0_135, %c0_136] : memref<4x16x128xf32, #tpu.memory_space<vmem>>, vector<1x16x128xf32>
    %231 = vector.shape_cast %230 : vector<1x16x128xf32> to vector<16x128xf32>
    %c3_137 = arith.constant 3 : index
    %c11_138 = arith.constant 11 : index
    %c0_139 = arith.constant 0 : index
    %232 = vector.load %arg2[%c3_137, %c11_138, %c0_139] : memref<4x32x128xf32, #tpu.memory_space<vmem>>, vector<1x16x128xf32>
    %233 = vector.shape_cast %232 : vector<1x16x128xf32> to vector<16x128xf32>
    %234 = arith.subf %231, %233 : vector<16x128xf32>
    %235 = arith.mulf %234, %234 : vector<16x128xf32>
    %236 = arith.addf %229, %235 : vector<16x128xf32>
    %c5_i32 = arith.constant 5 : i32
    %237 = vector.broadcast %c5_i32 : i32 to vector<16x128xi32>
    %238 = arith.cmpi slt, %0, %237 : vector<16x128xi32>
    %239 = arith.andi %5, %238 : vector<16x128xi1>
    %240 = arith.addf %236, %207 : vector<16x128xf32>
    %241 = arith.select %239, %240, %6 : vector<16x128xi1>, vector<16x128xf32>
    %c32_140 = arith.constant 32 : index
    %c0_141 = arith.constant 0 : index
    %242 = vector.load %arg4[%c32_140, %c0_141] : memref<48x128xf32, #tpu.memory_space<vmem>>, vector<16x128xf32>
    tpu.vector_store %arg4[%c32_140, %c0_141], %241 {strides = array<i32>} : memref<48x128xf32, #tpu.memory_space<vmem>>, vector<16x128xf32>,
    %c32_142 = arith.constant 32 : index
    %c0_143 = arith.constant 0 : index
    %243 = vector.load %arg4[%c32_142, %c0_143] : memref<48x128xf32, #tpu.memory_space<vmem>>, vector<16x128xf32>
    %c31_144 = arith.constant 31 : index
    %c0_145 = arith.constant 0 : index
    %244 = vector.load %arg4[%c31_144, %c0_145] : memref<48x128xf32, #tpu.memory_space<vmem>>, vector<16x128xf32>
    %c7_146 = arith.constant 7 : index
    %c0_147 = arith.constant 0 : index
    %245 = vector.load %arg4[%c7_146, %c0_147] : memref<48x128xf32, #tpu.memory_space<vmem>>, vector<16x128xf32>
    %cst_148 = arith.constant -1.000000e+00 : f32
    %246 = vector.broadcast %cst_148 : f32 to vector<16x128xf32>
    %247 = arith.mulf %245, %246 : vector<16x128xf32>
    %cst_149 = arith.constant -1.000000e+00 : f32
    %248 = vector.broadcast %cst_149 : f32 to vector<16x128xf32>
    %249 = arith.mulf %244, %248 : vector<16x128xf32>
    %cst_150 = arith.constant -1.000000e+00 : f32
    %250 = vector.broadcast %cst_150 : f32 to vector<16x128xf32>
    %251 = arith.mulf %243, %250 : vector<16x128xf32>
    %252 = arith.maximumf %247, %249 : vector<16x128xf32>
    %253 = arith.maximumf %252, %251 : vector<16x128xf32>
    %254 = arith.subf %247, %253 : vector<16x128xf32>
    %255 = math.exp %254 : vector<16x128xf32>
    %256 = arith.subf %249, %253 : vector<16x128xf32>
    %257 = math.exp %256 : vector<16x128xf32>
    %258 = arith.addf %255, %257 : vector<16x128xf32>
    %259 = arith.subf %251, %253 : vector<16x128xf32>
    %260 = math.exp %259 : vector<16x128xf32>
    %261 = arith.addf %258, %260 : vector<16x128xf32>
    %262 = math.log %261 : vector<16x128xf32>
    %263 = arith.addf %262, %253 : vector<16x128xf32>
    %cst_151 = arith.constant -1.000000e+00 : f32
    %264 = vector.broadcast %cst_151 : f32 to vector<16x128xf32>
    %265 = arith.mulf %263, %264 : vector<16x128xf32>
    %cst_152 = arith.constant 0.000000e+00 : f32
    %266 = vector.broadcast %cst_152 : f32 to vector<16x128xf32>
    %c0_153 = arith.constant 0 : index
    %c0_154 = arith.constant 0 : index
    %c0_155 = arith.constant 0 : index
    %267 = vector.load %arg1[%c0_153, %c0_154, %c0_155] : memref<4x16x128xf32, #tpu.memory_space<vmem>>, vector<1x16x128xf32>
    %268 = vector.shape_cast %267 : vector<1x16x128xf32> to vector<16x128xf32>
    %c0_156 = arith.constant 0 : index
    %c10 = arith.constant 10 : index
    %c0_157 = arith.constant 0 : index
    %269 = vector.load %arg2[%c0_156, %c10, %c0_157] : memref<4x32x128xf32, #tpu.memory_space<vmem>>, vector<1x16x128xf32>
    %270 = vector.shape_cast %269 : vector<1x16x128xf32> to vector<16x128xf32>
    %271 = arith.subf %268, %270 : vector<16x128xf32>
    %272 = arith.mulf %271, %271 : vector<16x128xf32>
    %273 = arith.addf %266, %272 : vector<16x128xf32>
    %c1_158 = arith.constant 1 : index
    %c0_159 = arith.constant 0 : index
    %c0_160 = arith.constant 0 : index
    %274 = vector.load %arg1[%c1_158, %c0_159, %c0_160] : memref<4x16x128xf32, #tpu.memory_space<vmem>>, vector<1x16x128xf32>
    %275 = vector.shape_cast %274 : vector<1x16x128xf32> to vector<16x128xf32>
    %c1_161 = arith.constant 1 : index
    %c10_162 = arith.constant 10 : index
    %c0_163 = arith.constant 0 : index
    %276 = vector.load %arg2[%c1_161, %c10_162, %c0_163] : memref<4x32x128xf32, #tpu.memory_space<vmem>>, vector<1x16x128xf32>
    %277 = vector.shape_cast %276 : vector<1x16x128xf32> to vector<16x128xf32>
    %278 = arith.subf %275, %277 : vector<16x128xf32>
    %279 = arith.mulf %278, %278 : vector<16x128xf32>
    %280 = arith.addf %273, %279 : vector<16x128xf32>
    %c2_164 = arith.constant 2 : index
    %c0_165 = arith.constant 0 : index
    %c0_166 = arith.constant 0 : index
    %281 = vector.load %arg1[%c2_164, %c0_165, %c0_166] : memref<4x16x128xf32, #tpu.memory_space<vmem>>, vector<1x16x128xf32>
    %282 = vector.shape_cast %281 : vector<1x16x128xf32> to vector<16x128xf32>
    %c2_167 = arith.constant 2 : index
    %c10_168 = arith.constant 10 : index
    %c0_169 = arith.constant 0 : index
    %283 = vector.load %arg2[%c2_167, %c10_168, %c0_169] : memref<4x32x128xf32, #tpu.memory_space<vmem>>, vector<1x16x128xf32>
    %284 = vector.shape_cast %283 : vector<1x16x128xf32> to vector<16x128xf32>
    %285 = arith.subf %282, %284 : vector<16x128xf32>
    %286 = arith.mulf %285, %285 : vector<16x128xf32>
    %287 = arith.addf %280, %286 : vector<16x128xf32>
    %c3_170 = arith.constant 3 : index
    %c0_171 = arith.constant 0 : index
    %c0_172 = arith.constant 0 : index
    %288 = vector.load %arg1[%c3_170, %c0_171, %c0_172] : memref<4x16x128xf32, #tpu.memory_space<vmem>>, vector<1x16x128xf32>
    %289 = vector.shape_cast %288 : vector<1x16x128xf32> to vector<16x128xf32>
    %c3_173 = arith.constant 3 : index
    %c10_174 = arith.constant 10 : index
    %c0_175 = arith.constant 0 : index
    %290 = vector.load %arg2[%c3_173, %c10_174, %c0_175] : memref<4x32x128xf32, #tpu.memory_space<vmem>>, vector<1x16x128xf32>
    %291 = vector.shape_cast %290 : vector<1x16x128xf32> to vector<16x128xf32>
    %292 = arith.subf %289, %291 : vector<16x128xf32>
    %293 = arith.mulf %292, %292 : vector<16x128xf32>
    %294 = arith.addf %287, %293 : vector<16x128xf32>
    %c6_i32 = arith.constant 6 : i32
    %295 = vector.broadcast %c6_i32 : i32 to vector<16x128xi32>
    %296 = arith.cmpi slt, %0, %295 : vector<16x128xi32>
    %297 = arith.andi %5, %296 : vector<16x128xi1>
    %298 = arith.addf %294, %265 : vector<16x128xf32>
    %299 = arith.select %297, %298, %6 : vector<16x128xi1>, vector<16x128xf32>
    %c8_176 = arith.constant 8 : index
    %c0_177 = arith.constant 0 : index
    %300 = vector.load %arg4[%c8_176, %c0_177] : memref<48x128xf32, #tpu.memory_space<vmem>>, vector<16x128xf32>
    tpu.vector_store %arg4[%c8_176, %c0_177], %299 {strides = array<i32>} : memref<48x128xf32, #tpu.memory_space<vmem>>, vector<16x128xf32>,
    %c8_178 = arith.constant 8 : index
    %c0_179 = arith.constant 0 : index
    %301 = vector.load %arg4[%c8_178, %c0_179] : memref<48x128xf32, #tpu.memory_space<vmem>>, vector<16x128xf32>
    %c7_180 = arith.constant 7 : index
    %c0_181 = arith.constant 0 : index
    %302 = vector.load %arg4[%c7_180, %c0_181] : memref<48x128xf32, #tpu.memory_space<vmem>>, vector<16x128xf32>
    %c31_182 = arith.constant 31 : index
    %c0_183 = arith.constant 0 : index
    %303 = vector.load %arg4[%c31_182, %c0_183] : memref<48x128xf32, #tpu.memory_space<vmem>>, vector<16x128xf32>
    %cst_184 = arith.constant -1.000000e+00 : f32
    %304 = vector.broadcast %cst_184 : f32 to vector<16x128xf32>
    %305 = arith.mulf %303, %304 : vector<16x128xf32>
    %cst_185 = arith.constant -1.000000e+00 : f32
    %306 = vector.broadcast %cst_185 : f32 to vector<16x128xf32>
    %307 = arith.mulf %302, %306 : vector<16x128xf32>
    %cst_186 = arith.constant -1.000000e+00 : f32
    %308 = vector.broadcast %cst_186 : f32 to vector<16x128xf32>
    %309 = arith.mulf %301, %308 : vector<16x128xf32>
    %310 = arith.maximumf %305, %307 : vector<16x128xf32>
    %311 = arith.maximumf %310, %309 : vector<16x128xf32>
    %312 = arith.subf %305, %311 : vector<16x128xf32>
    %313 = math.exp %312 : vector<16x128xf32>
    %314 = arith.subf %307, %311 : vector<16x128xf32>
    %315 = math.exp %314 : vector<16x128xf32>
    %316 = arith.addf %313, %315 : vector<16x128xf32>
    %317 = arith.subf %309, %311 : vector<16x128xf32>
    %318 = math.exp %317 : vector<16x128xf32>
    %319 = arith.addf %316, %318 : vector<16x128xf32>
    %320 = math.log %319 : vector<16x128xf32>
    %321 = arith.addf %320, %311 : vector<16x128xf32>
    %cst_187 = arith.constant -1.000000e+00 : f32
    %322 = vector.broadcast %cst_187 : f32 to vector<16x128xf32>
    %323 = arith.mulf %321, %322 : vector<16x128xf32>
    %cst_188 = arith.constant 0.000000e+00 : f32
    %324 = vector.broadcast %cst_188 : f32 to vector<16x128xf32>
    %c0_189 = arith.constant 0 : index
    %c0_190 = arith.constant 0 : index
    %c0_191 = arith.constant 0 : index
    %325 = vector.load %arg1[%c0_189, %c0_190, %c0_191] : memref<4x16x128xf32, #tpu.memory_space<vmem>>, vector<1x16x128xf32>
    %326 = vector.shape_cast %325 : vector<1x16x128xf32> to vector<16x128xf32>
    %c0_192 = arith.constant 0 : index
    %c9 = arith.constant 9 : index
    %c0_193 = arith.constant 0 : index
    %327 = vector.load %arg2[%c0_192, %c9, %c0_193] : memref<4x32x128xf32, #tpu.memory_space<vmem>>, vector<1x16x128xf32>
    %328 = vector.shape_cast %327 : vector<1x16x128xf32> to vector<16x128xf32>
    %329 = arith.subf %326, %328 : vector<16x128xf32>
    %330 = arith.mulf %329, %329 : vector<16x128xf32>
    %331 = arith.addf %324, %330 : vector<16x128xf32>
    %c1_194 = arith.constant 1 : index
    %c0_195 = arith.constant 0 : index
    %c0_196 = arith.constant 0 : index
    %332 = vector.load %arg1[%c1_194, %c0_195, %c0_196] : memref<4x16x128xf32, #tpu.memory_space<vmem>>, vector<1x16x128xf32>
    %333 = vector.shape_cast %332 : vector<1x16x128xf32> to vector<16x128xf32>
    %c1_197 = arith.constant 1 : index
    %c9_198 = arith.constant 9 : index
    %c0_199 = arith.constant 0 : index
    %334 = vector.load %arg2[%c1_197, %c9_198, %c0_199] : memref<4x32x128xf32, #tpu.memory_space<vmem>>, vector<1x16x128xf32>
    %335 = vector.shape_cast %334 : vector<1x16x128xf32> to vector<16x128xf32>
    %336 = arith.subf %333, %335 : vector<16x128xf32>
    %337 = arith.mulf %336, %336 : vector<16x128xf32>
    %338 = arith.addf %331, %337 : vector<16x128xf32>
    %c2_200 = arith.constant 2 : index
    %c0_201 = arith.constant 0 : index
    %c0_202 = arith.constant 0 : index
    %339 = vector.load %arg1[%c2_200, %c0_201, %c0_202] : memref<4x16x128xf32, #tpu.memory_space<vmem>>, vector<1x16x128xf32>
    %340 = vector.shape_cast %339 : vector<1x16x128xf32> to vector<16x128xf32>
    %c2_203 = arith.constant 2 : index
    %c9_204 = arith.constant 9 : index
    %c0_205 = arith.constant 0 : index
    %341 = vector.load %arg2[%c2_203, %c9_204, %c0_205] : memref<4x32x128xf32, #tpu.memory_space<vmem>>, vector<1x16x128xf32>
    %342 = vector.shape_cast %341 : vector<1x16x128xf32> to vector<16x128xf32>
    %343 = arith.subf %340, %342 : vector<16x128xf32>
    %344 = arith.mulf %343, %343 : vector<16x128xf32>
    %345 = arith.addf %338, %344 : vector<16x128xf32>
    %c3_206 = arith.constant 3 : index
    %c0_207 = arith.constant 0 : index
    %c0_208 = arith.constant 0 : index
    %346 = vector.load %arg1[%c3_206, %c0_207, %c0_208] : memref<4x16x128xf32, #tpu.memory_space<vmem>>, vector<1x16x128xf32>
    %347 = vector.shape_cast %346 : vector<1x16x128xf32> to vector<16x128xf32>
    %c3_209 = arith.constant 3 : index
    %c9_210 = arith.constant 9 : index
    %c0_211 = arith.constant 0 : index
    %348 = vector.load %arg2[%c3_209, %c9_210, %c0_211] : memref<4x32x128xf32, #tpu.memory_space<vmem>>, vector<1x16x128xf32>
    %349 = vector.shape_cast %348 : vector<1x16x128xf32> to vector<16x128xf32>
    %350 = arith.subf %347, %349 : vector<16x128xf32>
    %351 = arith.mulf %350, %350 : vector<16x128xf32>
    %352 = arith.addf %345, %351 : vector<16x128xf32>
    %c7_i32 = arith.constant 7 : i32
    %353 = vector.broadcast %c7_i32 : i32 to vector<16x128xi32>
    %354 = arith.cmpi slt, %0, %353 : vector<16x128xi32>
    %355 = arith.andi %5, %354 : vector<16x128xi1>
    %356 = arith.addf %352, %323 : vector<16x128xf32>
    %357 = arith.select %355, %356, %6 : vector<16x128xi1>, vector<16x128xf32>
    %c32_212 = arith.constant 32 : index
    %c0_213 = arith.constant 0 : index
    %358 = vector.load %arg4[%c32_212, %c0_213] : memref<48x128xf32, #tpu.memory_space<vmem>>, vector<16x128xf32>
    tpu.vector_store %arg4[%c32_212, %c0_213], %357 {strides = array<i32>} : memref<48x128xf32, #tpu.memory_space<vmem>>, vector<16x128xf32>,
    %c32_214 = arith.constant 32 : index
    %c0_215 = arith.constant 0 : index
    %359 = vector.load %arg4[%c32_214, %c0_215] : memref<48x128xf32, #tpu.memory_space<vmem>>, vector<16x128xf32>
    %c31_216 = arith.constant 31 : index
    %c0_217 = arith.constant 0 : index
    %360 = vector.load %arg4[%c31_216, %c0_217] : memref<48x128xf32, #tpu.memory_space<vmem>>, vector<16x128xf32>
    %c7_218 = arith.constant 7 : index
    %c0_219 = arith.constant 0 : index
    %361 = vector.load %arg4[%c7_218, %c0_219] : memref<48x128xf32, #tpu.memory_space<vmem>>, vector<16x128xf32>
    %cst_220 = arith.constant -1.000000e+00 : f32
    %362 = vector.broadcast %cst_220 : f32 to vector<16x128xf32>
    %363 = arith.mulf %361, %362 : vector<16x128xf32>
    %cst_221 = arith.constant -1.000000e+00 : f32
    %364 = vector.broadcast %cst_221 : f32 to vector<16x128xf32>
    %365 = arith.mulf %360, %364 : vector<16x128xf32>
    %cst_222 = arith.constant -1.000000e+00 : f32
    %366 = vector.broadcast %cst_222 : f32 to vector<16x128xf32>
    %367 = arith.mulf %359, %366 : vector<16x128xf32>
    %368 = arith.maximumf %363, %365 : vector<16x128xf32>
    %369 = arith.maximumf %368, %367 : vector<16x128xf32>
    %370 = arith.subf %363, %369 : vector<16x128xf32>
    %371 = math.exp %370 : vector<16x128xf32>
    %372 = arith.subf %365, %369 : vector<16x128xf32>
    %373 = math.exp %372 : vector<16x128xf32>
    %374 = arith.addf %371, %373 : vector<16x128xf32>
    %375 = arith.subf %367, %369 : vector<16x128xf32>
    %376 = math.exp %375 : vector<16x128xf32>
    %377 = arith.addf %374, %376 : vector<16x128xf32>
    %378 = math.log %377 : vector<16x128xf32>
    %379 = arith.addf %378, %369 : vector<16x128xf32>
    %cst_223 = arith.constant -1.000000e+00 : f32
    %380 = vector.broadcast %cst_223 : f32 to vector<16x128xf32>
    %381 = arith.mulf %379, %380 : vector<16x128xf32>
    %cst_224 = arith.constant 0.000000e+00 : f32
    %382 = vector.broadcast %cst_224 : f32 to vector<16x128xf32>
    %c0_225 = arith.constant 0 : index
    %c0_226 = arith.constant 0 : index
    %c0_227 = arith.constant 0 : index
    %383 = vector.load %arg1[%c0_225, %c0_226, %c0_227] : memref<4x16x128xf32, #tpu.memory_space<vmem>>, vector<1x16x128xf32>
    %384 = vector.shape_cast %383 : vector<1x16x128xf32> to vector<16x128xf32>
    %c0_228 = arith.constant 0 : index
    %c8_229 = arith.constant 8 : index
    %c0_230 = arith.constant 0 : index
    %385 = vector.load %arg2[%c0_228, %c8_229, %c0_230] : memref<4x32x128xf32, #tpu.memory_space<vmem>>, vector<1x16x128xf32>
    %386 = vector.shape_cast %385 : vector<1x16x128xf32> to vector<16x128xf32>
    %387 = arith.subf %384, %386 : vector<16x128xf32>
    %388 = arith.mulf %387, %387 : vector<16x128xf32>
    %389 = arith.addf %382, %388 : vector<16x128xf32>
    %c1_231 = arith.constant 1 : index
    %c0_232 = arith.constant 0 : index
    %c0_233 = arith.constant 0 : index
    %390 = vector.load %arg1[%c1_231, %c0_232, %c0_233] : memref<4x16x128xf32, #tpu.memory_space<vmem>>, vector<1x16x128xf32>
    %391 = vector.shape_cast %390 : vector<1x16x128xf32> to vector<16x128xf32>
    %c1_234 = arith.constant 1 : index
    %c8_235 = arith.constant 8 : index
    %c0_236 = arith.constant 0 : index
    %392 = vector.load %arg2[%c1_234, %c8_235, %c0_236] : memref<4x32x128xf32, #tpu.memory_space<vmem>>, vector<1x16x128xf32>
    %393 = vector.shape_cast %392 : vector<1x16x128xf32> to vector<16x128xf32>
    %394 = arith.subf %391, %393 : vector<16x128xf32>
    %395 = arith.mulf %394, %394 : vector<16x128xf32>
    %396 = arith.addf %389, %395 : vector<16x128xf32>
    %c2_237 = arith.constant 2 : index
    %c0_238 = arith.constant 0 : index
    %c0_239 = arith.constant 0 : index
    %397 = vector.load %arg1[%c2_237, %c0_238, %c0_239] : memref<4x16x128xf32, #tpu.memory_space<vmem>>, vector<1x16x128xf32>
    %398 = vector.shape_cast %397 : vector<1x16x128xf32> to vector<16x128xf32>
    %c2_240 = arith.constant 2 : index
    %c8_241 = arith.constant 8 : index
    %c0_242 = arith.constant 0 : index
    %399 = vector.load %arg2[%c2_240, %c8_241, %c0_242] : memref<4x32x128xf32, #tpu.memory_space<vmem>>, vector<1x16x128xf32>
    %400 = vector.shape_cast %399 : vector<1x16x128xf32> to vector<16x128xf32>
    %401 = arith.subf %398, %400 : vector<16x128xf32>
    %402 = arith.mulf %401, %401 : vector<16x128xf32>
    %403 = arith.addf %396, %402 : vector<16x128xf32>
    %c3_243 = arith.constant 3 : index
    %c0_244 = arith.constant 0 : index
    %c0_245 = arith.constant 0 : index
    %404 = vector.load %arg1[%c3_243, %c0_244, %c0_245] : memref<4x16x128xf32, #tpu.memory_space<vmem>>, vector<1x16x128xf32>
    %405 = vector.shape_cast %404 : vector<1x16x128xf32> to vector<16x128xf32>
    %c3_246 = arith.constant 3 : index
    %c8_247 = arith.constant 8 : index
    %c0_248 = arith.constant 0 : index
    %406 = vector.load %arg2[%c3_246, %c8_247, %c0_248] : memref<4x32x128xf32, #tpu.memory_space<vmem>>, vector<1x16x128xf32>
    %407 = vector.shape_cast %406 : vector<1x16x128xf32> to vector<16x128xf32>
    %408 = arith.subf %405, %407 : vector<16x128xf32>
    %409 = arith.mulf %408, %408 : vector<16x128xf32>
    %410 = arith.addf %403, %409 : vector<16x128xf32>
    %c8_i32_249 = arith.constant 8 : i32
    %411 = vector.broadcast %c8_i32_249 : i32 to vector<16x128xi32>
    %412 = arith.cmpi slt, %0, %411 : vector<16x128xi32>
    %413 = arith.andi %5, %412 : vector<16x128xi1>
    %414 = arith.addf %410, %381 : vector<16x128xf32>
    %415 = arith.select %413, %414, %6 : vector<16x128xi1>, vector<16x128xf32>
    %c8_250 = arith.constant 8 : index
    %c0_251 = arith.constant 0 : index
    %416 = vector.load %arg4[%c8_250, %c0_251] : memref<48x128xf32, #tpu.memory_space<vmem>>, vector<16x128xf32>
    tpu.vector_store %arg4[%c8_250, %c0_251], %415 {strides = array<i32>} : memref<48x128xf32, #tpu.memory_space<vmem>>, vector<16x128xf32>,
    %c8_252 = arith.constant 8 : index
    %c0_253 = arith.constant 0 : index
    %417 = vector.load %arg4[%c8_252, %c0_253] : memref<48x128xf32, #tpu.memory_space<vmem>>, vector<16x128xf32>
    %c7_254 = arith.constant 7 : index
    %c0_255 = arith.constant 0 : index
    %418 = vector.load %arg4[%c7_254, %c0_255] : memref<48x128xf32, #tpu.memory_space<vmem>>, vector<16x128xf32>
    %c31_256 = arith.constant 31 : index
    %c0_257 = arith.constant 0 : index
    %419 = vector.load %arg4[%c31_256, %c0_257] : memref<48x128xf32, #tpu.memory_space<vmem>>, vector<16x128xf32>
    %cst_258 = arith.constant -1.000000e+00 : f32
    %420 = vector.broadcast %cst_258 : f32 to vector<16x128xf32>
    %421 = arith.mulf %419, %420 : vector<16x128xf32>
    %cst_259 = arith.constant -1.000000e+00 : f32
    %422 = vector.broadcast %cst_259 : f32 to vector<16x128xf32>
    %423 = arith.mulf %418, %422 : vector<16x128xf32>
    %cst_260 = arith.constant -1.000000e+00 : f32
    %424 = vector.broadcast %cst_260 : f32 to vector<16x128xf32>
    %425 = arith.mulf %417, %424 : vector<16x128xf32>
    %426 = arith.maximumf %421, %423 : vector<16x128xf32>
    %427 = arith.maximumf %426, %425 : vector<16x128xf32>
    %428 = arith.subf %421, %427 : vector<16x128xf32>
    %429 = math.exp %428 : vector<16x128xf32>
    %430 = arith.subf %423, %427 : vector<16x128xf32>
    %431 = math.exp %430 : vector<16x128xf32>
    %432 = arith.addf %429, %431 : vector<16x128xf32>
    %433 = arith.subf %425, %427 : vector<16x128xf32>
    %434 = math.exp %433 : vector<16x128xf32>
    %435 = arith.addf %432, %434 : vector<16x128xf32>
    %436 = math.log %435 : vector<16x128xf32>
    %437 = arith.addf %436, %427 : vector<16x128xf32>
    %cst_261 = arith.constant -1.000000e+00 : f32
    %438 = vector.broadcast %cst_261 : f32 to vector<16x128xf32>
    %439 = arith.mulf %437, %438 : vector<16x128xf32>
    %cst_262 = arith.constant 0.000000e+00 : f32
    %440 = vector.broadcast %cst_262 : f32 to vector<16x128xf32>
    %c0_263 = arith.constant 0 : index
    %c0_264 = arith.constant 0 : index
    %c0_265 = arith.constant 0 : index
    %441 = vector.load %arg1[%c0_263, %c0_264, %c0_265] : memref<4x16x128xf32, #tpu.memory_space<vmem>>, vector<1x16x128xf32>
    %442 = vector.shape_cast %441 : vector<1x16x128xf32> to vector<16x128xf32>
    %c0_266 = arith.constant 0 : index
    %c7_267 = arith.constant 7 : index
    %c0_268 = arith.constant 0 : index
    %443 = vector.load %arg2[%c0_266, %c7_267, %c0_268] : memref<4x32x128xf32, #tpu.memory_space<vmem>>, vector<1x16x128xf32>
    %444 = vector.shape_cast %443 : vector<1x16x128xf32> to vector<16x128xf32>
    %445 = arith.subf %442, %444 : vector<16x128xf32>
    %446 = arith.mulf %445, %445 : vector<16x128xf32>
    %447 = arith.addf %440, %446 : vector<16x128xf32>
    %c1_269 = arith.constant 1 : index
    %c0_270 = arith.constant 0 : index
    %c0_271 = arith.constant 0 : index
    %448 = vector.load %arg1[%c1_269, %c0_270, %c0_271] : memref<4x16x128xf32, #tpu.memory_space<vmem>>, vector<1x16x128xf32>
    %449 = vector.shape_cast %448 : vector<1x16x128xf32> to vector<16x128xf32>
    %c1_272 = arith.constant 1 : index
    %c7_273 = arith.constant 7 : index
    %c0_274 = arith.constant 0 : index
    %450 = vector.load %arg2[%c1_272, %c7_273, %c0_274] : memref<4x32x128xf32, #tpu.memory_space<vmem>>, vector<1x16x128xf32>
    %451 = vector.shape_cast %450 : vector<1x16x128xf32> to vector<16x128xf32>
    %452 = arith.subf %449, %451 : vector<16x128xf32>
    %453 = arith.mulf %452, %452 : vector<16x128xf32>
    %454 = arith.addf %447, %453 : vector<16x128xf32>
    %c2_275 = arith.constant 2 : index
    %c0_276 = arith.constant 0 : index
    %c0_277 = arith.constant 0 : index
    %455 = vector.load %arg1[%c2_275, %c0_276, %c0_277] : memref<4x16x128xf32, #tpu.memory_space<vmem>>, vector<1x16x128xf32>
    %456 = vector.shape_cast %455 : vector<1x16x128xf32> to vector<16x128xf32>
    %c2_278 = arith.constant 2 : index
    %c7_279 = arith.constant 7 : index
    %c0_280 = arith.constant 0 : index
    %457 = vector.load %arg2[%c2_278, %c7_279, %c0_280] : memref<4x32x128xf32, #tpu.memory_space<vmem>>, vector<1x16x128xf32>
    %458 = vector.shape_cast %457 : vector<1x16x128xf32> to vector<16x128xf32>
    %459 = arith.subf %456, %458 : vector<16x128xf32>
    %460 = arith.mulf %459, %459 : vector<16x128xf32>
    %461 = arith.addf %454, %460 : vector<16x128xf32>
    %c3_281 = arith.constant 3 : index
    %c0_282 = arith.constant 0 : index
    %c0_283 = arith.constant 0 : index
    %462 = vector.load %arg1[%c3_281, %c0_282, %c0_283] : memref<4x16x128xf32, #tpu.memory_space<vmem>>, vector<1x16x128xf32>
    %463 = vector.shape_cast %462 : vector<1x16x128xf32> to vector<16x128xf32>
    %c3_284 = arith.constant 3 : index
    %c7_285 = arith.constant 7 : index
    %c0_286 = arith.constant 0 : index
    %464 = vector.load %arg2[%c3_284, %c7_285, %c0_286] : memref<4x32x128xf32, #tpu.memory_space<vmem>>, vector<1x16x128xf32>
    %465 = vector.shape_cast %464 : vector<1x16x128xf32> to vector<16x128xf32>
    %466 = arith.subf %463, %465 : vector<16x128xf32>
    %467 = arith.mulf %466, %466 : vector<16x128xf32>
    %468 = arith.addf %461, %467 : vector<16x128xf32>
    %469 = arith.addf %468, %439 : vector<16x128xf32>
    %470 = arith.select %5, %469, %6 : vector<16x128xi1>, vector<16x128xf32>
    %c32_287 = arith.constant 32 : index
    %c0_288 = arith.constant 0 : index
    %471 = vector.load %arg4[%c32_287, %c0_288] : memref<48x128xf32, #tpu.memory_space<vmem>>, vector<16x128xf32>
    tpu.vector_store %arg4[%c32_287, %c0_288], %470 {strides = array<i32>} : memref<48x128xf32, #tpu.memory_space<vmem>>, vector<16x128xf32>,
    %c32_289 = arith.constant 32 : index
    %c0_290 = arith.constant 0 : index
    %472 = vector.load %arg4[%c32_289, %c0_290] : memref<48x128xf32, #tpu.memory_space<vmem>>, vector<16x128xf32>
    %c31_291 = arith.constant 31 : index
    %c0_292 = arith.constant 0 : index
    %473 = vector.load %arg4[%c31_291, %c0_292] : memref<48x128xf32, #tpu.memory_space<vmem>>, vector<16x128xf32>
    %c7_293 = arith.constant 7 : index
    %c0_294 = arith.constant 0 : index
    %474 = vector.load %arg4[%c7_293, %c0_294] : memref<48x128xf32, #tpu.memory_space<vmem>>, vector<16x128xf32>
    %cst_295 = arith.constant -1.000000e+00 : f32
    %475 = vector.broadcast %cst_295 : f32 to vector<16x128xf32>
    %476 = arith.mulf %474, %475 : vector<16x128xf32>
    %cst_296 = arith.constant -1.000000e+00 : f32
    %477 = vector.broadcast %cst_296 : f32 to vector<16x128xf32>
    %478 = arith.mulf %473, %477 : vector<16x128xf32>
    %cst_297 = arith.constant -1.000000e+00 : f32
    %479 = vector.broadcast %cst_297 : f32 to vector<16x128xf32>
    %480 = arith.mulf %472, %479 : vector<16x128xf32>
    %481 = arith.maximumf %476, %478 : vector<16x128xf32>
    %482 = arith.maximumf %481, %480 : vector<16x128xf32>
    %483 = arith.subf %476, %482 : vector<16x128xf32>
    %484 = math.exp %483 : vector<16x128xf32>
    %485 = arith.subf %478, %482 : vector<16x128xf32>
    %486 = math.exp %485 : vector<16x128xf32>
    %487 = arith.addf %484, %486 : vector<16x128xf32>
    %488 = arith.subf %480, %482 : vector<16x128xf32>
    %489 = math.exp %488 : vector<16x128xf32>
    %490 = arith.addf %487, %489 : vector<16x128xf32>
    %491 = math.log %490 : vector<16x128xf32>
    %492 = arith.addf %491, %482 : vector<16x128xf32>
    %cst_298 = arith.constant -1.000000e+00 : f32
    %493 = vector.broadcast %cst_298 : f32 to vector<16x128xf32>
    %494 = arith.mulf %492, %493 : vector<16x128xf32>
    %cst_299 = arith.constant 0.000000e+00 : f32
    %495 = vector.broadcast %cst_299 : f32 to vector<16x128xf32>
    %c0_300 = arith.constant 0 : index
    %c0_301 = arith.constant 0 : index
    %c0_302 = arith.constant 0 : index
    %496 = vector.load %arg1[%c0_300, %c0_301, %c0_302] : memref<4x16x128xf32, #tpu.memory_space<vmem>>, vector<1x16x128xf32>
    %497 = vector.shape_cast %496 : vector<1x16x128xf32> to vector<16x128xf32>
    %c0_303 = arith.constant 0 : index
    %c6 = arith.constant 6 : index
    %c0_304 = arith.constant 0 : index
    %498 = vector.load %arg2[%c0_303, %c6, %c0_304] : memref<4x32x128xf32, #tpu.memory_space<vmem>>, vector<1x16x128xf32>
    %499 = vector.shape_cast %498 : vector<1x16x128xf32> to vector<16x128xf32>
    %500 = arith.subf %497, %499 : vector<16x128xf32>
    %501 = arith.mulf %500, %500 : vector<16x128xf32>
    %502 = arith.addf %495, %501 : vector<16x128xf32>
    %c1_305 = arith.constant 1 : index
    %c0_306 = arith.constant 0 : index
    %c0_307 = arith.constant 0 : index
    %503 = vector.load %arg1[%c1_305, %c0_306, %c0_307] : memref<4x16x128xf32, #tpu.memory_space<vmem>>, vector<1x16x128xf32>
    %504 = vector.shape_cast %503 : vector<1x16x128xf32> to vector<16x128xf32>
    %c1_308 = arith.constant 1 : index
    %c6_309 = arith.constant 6 : index
    %c0_310 = arith.constant 0 : index
    %505 = vector.load %arg2[%c1_308, %c6_309, %c0_310] : memref<4x32x128xf32, #tpu.memory_space<vmem>>, vector<1x16x128xf32>
    %506 = vector.shape_cast %505 : vector<1x16x128xf32> to vector<16x128xf32>
    %507 = arith.subf %504, %506 : vector<16x128xf32>
    %508 = arith.mulf %507, %507 : vector<16x128xf32>
    %509 = arith.addf %502, %508 : vector<16x128xf32>
    %c2_311 = arith.constant 2 : index
    %c0_312 = arith.constant 0 : index
    %c0_313 = arith.constant 0 : index
    %510 = vector.load %arg1[%c2_311, %c0_312, %c0_313] : memref<4x16x128xf32, #tpu.memory_space<vmem>>, vector<1x16x128xf32>
    %511 = vector.shape_cast %510 : vector<1x16x128xf32> to vector<16x128xf32>
    %c2_314 = arith.constant 2 : index
    %c6_315 = arith.constant 6 : index
    %c0_316 = arith.constant 0 : index
    %512 = vector.load %arg2[%c2_314, %c6_315, %c0_316] : memref<4x32x128xf32, #tpu.memory_space<vmem>>, vector<1x16x128xf32>
    %513 = vector.shape_cast %512 : vector<1x16x128xf32> to vector<16x128xf32>
    %514 = arith.subf %511, %513 : vector<16x128xf32>
    %515 = arith.mulf %514, %514 : vector<16x128xf32>
    %516 = arith.addf %509, %515 : vector<16x128xf32>
    %c3_317 = arith.constant 3 : index
    %c0_318 = arith.constant 0 : index
    %c0_319 = arith.constant 0 : index
    %517 = vector.load %arg1[%c3_317, %c0_318, %c0_319] : memref<4x16x128xf32, #tpu.memory_space<vmem>>, vector<1x16x128xf32>
    %518 = vector.shape_cast %517 : vector<1x16x128xf32> to vector<16x128xf32>
    %c3_320 = arith.constant 3 : index
    %c6_321 = arith.constant 6 : index
    %c0_322 = arith.constant 0 : index
    %519 = vector.load %arg2[%c3_320, %c6_321, %c0_322] : memref<4x32x128xf32, #tpu.memory_space<vmem>>, vector<1x16x128xf32>
    %520 = vector.shape_cast %519 : vector<1x16x128xf32> to vector<16x128xf32>
    %521 = arith.subf %518, %520 : vector<16x128xf32>
    %522 = arith.mulf %521, %521 : vector<16x128xf32>
    %523 = arith.addf %516, %522 : vector<16x128xf32>
    %c2_i32_323 = arith.constant 2 : i32
    %524 = vector.broadcast %c2_i32_323 : i32 to vector<16x128xi32>
    %525 = arith.cmpi sge, %0, %524 : vector<16x128xi32>
    %526 = arith.andi %5, %525 : vector<16x128xi1>
    %527 = arith.addf %523, %494 : vector<16x128xf32>
    %528 = arith.select %526, %527, %6 : vector<16x128xi1>, vector<16x128xf32>
    %c8_324 = arith.constant 8 : index
    %c0_325 = arith.constant 0 : index
    %529 = vector.load %arg4[%c8_324, %c0_325] : memref<48x128xf32, #tpu.memory_space<vmem>>, vector<16x128xf32>
    tpu.vector_store %arg4[%c8_324, %c0_325], %528 {strides = array<i32>} : memref<48x128xf32, #tpu.memory_space<vmem>>, vector<16x128xf32>,
    %c8_326 = arith.constant 8 : index
    %c0_327 = arith.constant 0 : index
    %530 = vector.load %arg4[%c8_326, %c0_327] : memref<48x128xf32, #tpu.memory_space<vmem>>, vector<16x128xf32>
    %c7_328 = arith.constant 7 : index
    %c0_329 = arith.constant 0 : index
    %531 = vector.load %arg4[%c7_328, %c0_329] : memref<48x128xf32, #tpu.memory_space<vmem>>, vector<16x128xf32>
    %c31_330 = arith.constant 31 : index
    %c0_331 = arith.constant 0 : index
    %532 = vector.load %arg4[%c31_330, %c0_331] : memref<48x128xf32, #tpu.memory_space<vmem>>, vector<16x128xf32>
    %cst_332 = arith.constant -1.000000e+00 : f32
    %533 = vector.broadcast %cst_332 : f32 to vector<16x128xf32>
    %534 = arith.mulf %532, %533 : vector<16x128xf32>
    %cst_333 = arith.constant -1.000000e+00 : f32
    %535 = vector.broadcast %cst_333 : f32 to vector<16x128xf32>
    %536 = arith.mulf %531, %535 : vector<16x128xf32>
    %cst_334 = arith.constant -1.000000e+00 : f32
    %537 = vector.broadcast %cst_334 : f32 to vector<16x128xf32>
    %538 = arith.mulf %530, %537 : vector<16x128xf32>
    %539 = arith.maximumf %534, %536 : vector<16x128xf32>
    %540 = arith.maximumf %539, %538 : vector<16x128xf32>
    %541 = arith.subf %534, %540 : vector<16x128xf32>
    %542 = math.exp %541 : vector<16x128xf32>
    %543 = arith.subf %536, %540 : vector<16x128xf32>
    %544 = math.exp %543 : vector<16x128xf32>
    %545 = arith.addf %542, %544 : vector<16x128xf32>
    %546 = arith.subf %538, %540 : vector<16x128xf32>
    %547 = math.exp %546 : vector<16x128xf32>
    %548 = arith.addf %545, %547 : vector<16x128xf32>
    %549 = math.log %548 : vector<16x128xf32>
    %550 = arith.addf %549, %540 : vector<16x128xf32>
    %cst_335 = arith.constant -1.000000e+00 : f32
    %551 = vector.broadcast %cst_335 : f32 to vector<16x128xf32>
    %552 = arith.mulf %550, %551 : vector<16x128xf32>
    %cst_336 = arith.constant 0.000000e+00 : f32
    %553 = vector.broadcast %cst_336 : f32 to vector<16x128xf32>
    %c0_337 = arith.constant 0 : index
    %c0_338 = arith.constant 0 : index
    %c0_339 = arith.constant 0 : index
    %554 = vector.load %arg1[%c0_337, %c0_338, %c0_339] : memref<4x16x128xf32, #tpu.memory_space<vmem>>, vector<1x16x128xf32>
    %555 = vector.shape_cast %554 : vector<1x16x128xf32> to vector<16x128xf32>
    %c0_340 = arith.constant 0 : index
    %c5 = arith.constant 5 : index
    %c0_341 = arith.constant 0 : index
    %556 = vector.load %arg2[%c0_340, %c5, %c0_341] : memref<4x32x128xf32, #tpu.memory_space<vmem>>, vector<1x16x128xf32>
    %557 = vector.shape_cast %556 : vector<1x16x128xf32> to vector<16x128xf32>
    %558 = arith.subf %555, %557 : vector<16x128xf32>
    %559 = arith.mulf %558, %558 : vector<16x128xf32>
    %560 = arith.addf %553, %559 : vector<16x128xf32>
    %c1_342 = arith.constant 1 : index
    %c0_343 = arith.constant 0 : index
    %c0_344 = arith.constant 0 : index
    %561 = vector.load %arg1[%c1_342, %c0_343, %c0_344] : memref<4x16x128xf32, #tpu.memory_space<vmem>>, vector<1x16x128xf32>
    %562 = vector.shape_cast %561 : vector<1x16x128xf32> to vector<16x128xf32>
    %c1_345 = arith.constant 1 : index
    %c5_346 = arith.constant 5 : index
    %c0_347 = arith.constant 0 : index
    %563 = vector.load %arg2[%c1_345, %c5_346, %c0_347] : memref<4x32x128xf32, #tpu.memory_space<vmem>>, vector<1x16x128xf32>
    %564 = vector.shape_cast %563 : vector<1x16x128xf32> to vector<16x128xf32>
    %565 = arith.subf %562, %564 : vector<16x128xf32>
    %566 = arith.mulf %565, %565 : vector<16x128xf32>
    %567 = arith.addf %560, %566 : vector<16x128xf32>
    %c2_348 = arith.constant 2 : index
    %c0_349 = arith.constant 0 : index
    %c0_350 = arith.constant 0 : index
    %568 = vector.load %arg1[%c2_348, %c0_349, %c0_350] : memref<4x16x128xf32, #tpu.memory_space<vmem>>, vector<1x16x128xf32>
    %569 = vector.shape_cast %568 : vector<1x16x128xf32> to vector<16x128xf32>
    %c2_351 = arith.constant 2 : index
    %c5_352 = arith.constant 5 : index
    %c0_353 = arith.constant 0 : index
    %570 = vector.load %arg2[%c2_351, %c5_352, %c0_353] : memref<4x32x128xf32, #tpu.memory_space<vmem>>, vector<1x16x128xf32>
    %571 = vector.shape_cast %570 : vector<1x16x128xf32> to vector<16x128xf32>
    %572 = arith.subf %569, %571 : vector<16x128xf32>
    %573 = arith.mulf %572, %572 : vector<16x128xf32>
    %574 = arith.addf %567, %573 : vector<16x128xf32>
    %c3_354 = arith.constant 3 : index
    %c0_355 = arith.constant 0 : index
    %c0_356 = arith.constant 0 : index
    %575 = vector.load %arg1[%c3_354, %c0_355, %c0_356] : memref<4x16x128xf32, #tpu.memory_space<vmem>>, vector<1x16x128xf32>
    %576 = vector.shape_cast %575 : vector<1x16x128xf32> to vector<16x128xf32>
    %c3_357 = arith.constant 3 : index
    %c5_358 = arith.constant 5 : index
    %c0_359 = arith.constant 0 : index
    %577 = vector.load %arg2[%c3_357, %c5_358, %c0_359] : memref<4x32x128xf32, #tpu.memory_space<vmem>>, vector<1x16x128xf32>
    %578 = vector.shape_cast %577 : vector<1x16x128xf32> to vector<16x128xf32>
    %579 = arith.subf %576, %578 : vector<16x128xf32>
    %580 = arith.mulf %579, %579 : vector<16x128xf32>
    %581 = arith.addf %574, %580 : vector<16x128xf32>
    %c3_i32_360 = arith.constant 3 : i32
    %582 = vector.broadcast %c3_i32_360 : i32 to vector<16x128xi32>
    %583 = arith.cmpi sge, %0, %582 : vector<16x128xi32>
    %584 = arith.andi %5, %583 : vector<16x128xi1>
    %585 = arith.addf %581, %552 : vector<16x128xf32>
    %586 = arith.select %584, %585, %6 : vector<16x128xi1>, vector<16x128xf32>
    %c32_361 = arith.constant 32 : index
    %c0_362 = arith.constant 0 : index
    %587 = vector.load %arg4[%c32_361, %c0_362] : memref<48x128xf32, #tpu.memory_space<vmem>>, vector<16x128xf32>
    tpu.vector_store %arg4[%c32_361, %c0_362], %586 {strides = array<i32>} : memref<48x128xf32, #tpu.memory_space<vmem>>, vector<16x128xf32>,
    %c32_363 = arith.constant 32 : index
    %c0_364 = arith.constant 0 : index
    %588 = vector.load %arg4[%c32_363, %c0_364] : memref<48x128xf32, #tpu.memory_space<vmem>>, vector<16x128xf32>
    %c31_365 = arith.constant 31 : index
    %c0_366 = arith.constant 0 : index
    %589 = vector.load %arg4[%c31_365, %c0_366] : memref<48x128xf32, #tpu.memory_space<vmem>>, vector<16x128xf32>
    %c7_367 = arith.constant 7 : index
    %c0_368 = arith.constant 0 : index
    %590 = vector.load %arg4[%c7_367, %c0_368] : memref<48x128xf32, #tpu.memory_space<vmem>>, vector<16x128xf32>
    %cst_369 = arith.constant -1.000000e+00 : f32
    %591 = vector.broadcast %cst_369 : f32 to vector<16x128xf32>
    %592 = arith.mulf %590, %591 : vector<16x128xf32>
    %cst_370 = arith.constant -1.000000e+00 : f32
    %593 = vector.broadcast %cst_370 : f32 to vector<16x128xf32>
    %594 = arith.mulf %589, %593 : vector<16x128xf32>
    %cst_371 = arith.constant -1.000000e+00 : f32
    %595 = vector.broadcast %cst_371 : f32 to vector<16x128xf32>
    %596 = arith.mulf %588, %595 : vector<16x128xf32>
    %597 = arith.maximumf %592, %594 : vector<16x128xf32>
    %598 = arith.maximumf %597, %596 : vector<16x128xf32>
    %599 = arith.subf %592, %598 : vector<16x128xf32>
    %600 = math.exp %599 : vector<16x128xf32>
    %601 = arith.subf %594, %598 : vector<16x128xf32>
    %602 = math.exp %601 : vector<16x128xf32>
    %603 = arith.addf %600, %602 : vector<16x128xf32>
    %604 = arith.subf %596, %598 : vector<16x128xf32>
    %605 = math.exp %604 : vector<16x128xf32>
    %606 = arith.addf %603, %605 : vector<16x128xf32>
    %607 = math.log %606 : vector<16x128xf32>
    %608 = arith.addf %607, %598 : vector<16x128xf32>
    %cst_372 = arith.constant -1.000000e+00 : f32
    %609 = vector.broadcast %cst_372 : f32 to vector<16x128xf32>
    %610 = arith.mulf %608, %609 : vector<16x128xf32>
    %cst_373 = arith.constant 0.000000e+00 : f32
    %611 = vector.broadcast %cst_373 : f32 to vector<16x128xf32>
    %c0_374 = arith.constant 0 : index
    %c0_375 = arith.constant 0 : index
    %c0_376 = arith.constant 0 : index
    %612 = vector.load %arg1[%c0_374, %c0_375, %c0_376] : memref<4x16x128xf32, #tpu.memory_space<vmem>>, vector<1x16x128xf32>
    %613 = vector.shape_cast %612 : vector<1x16x128xf32> to vector<16x128xf32>
    %c0_377 = arith.constant 0 : index
    %c4 = arith.constant 4 : index
    %c0_378 = arith.constant 0 : index
    %614 = vector.load %arg2[%c0_377, %c4, %c0_378] : memref<4x32x128xf32, #tpu.memory_space<vmem>>, vector<1x16x128xf32>
    %615 = vector.shape_cast %614 : vector<1x16x128xf32> to vector<16x128xf32>
    %616 = arith.subf %613, %615 : vector<16x128xf32>
    %617 = arith.mulf %616, %616 : vector<16x128xf32>
    %618 = arith.addf %611, %617 : vector<16x128xf32>
    %c1_379 = arith.constant 1 : index
    %c0_380 = arith.constant 0 : index
    %c0_381 = arith.constant 0 : index
    %619 = vector.load %arg1[%c1_379, %c0_380, %c0_381] : memref<4x16x128xf32, #tpu.memory_space<vmem>>, vector<1x16x128xf32>
    %620 = vector.shape_cast %619 : vector<1x16x128xf32> to vector<16x128xf32>
    %c1_382 = arith.constant 1 : index
    %c4_383 = arith.constant 4 : index
    %c0_384 = arith.constant 0 : index
    %621 = vector.load %arg2[%c1_382, %c4_383, %c0_384] : memref<4x32x128xf32, #tpu.memory_space<vmem>>, vector<1x16x128xf32>
    %622 = vector.shape_cast %621 : vector<1x16x128xf32> to vector<16x128xf32>
    %623 = arith.subf %620, %622 : vector<16x128xf32>
    %624 = arith.mulf %623, %623 : vector<16x128xf32>
    %625 = arith.addf %618, %624 : vector<16x128xf32>
    %c2_385 = arith.constant 2 : index
    %c0_386 = arith.constant 0 : index
    %c0_387 = arith.constant 0 : index
    %626 = vector.load %arg1[%c2_385, %c0_386, %c0_387] : memref<4x16x128xf32, #tpu.memory_space<vmem>>, vector<1x16x128xf32>
    %627 = vector.shape_cast %626 : vector<1x16x128xf32> to vector<16x128xf32>
    %c2_388 = arith.constant 2 : index
    %c4_389 = arith.constant 4 : index
    %c0_390 = arith.constant 0 : index
    %628 = vector.load %arg2[%c2_388, %c4_389, %c0_390] : memref<4x32x128xf32, #tpu.memory_space<vmem>>, vector<1x16x128xf32>
    %629 = vector.shape_cast %628 : vector<1x16x128xf32> to vector<16x128xf32>
    %630 = arith.subf %627, %629 : vector<16x128xf32>
    %631 = arith.mulf %630, %630 : vector<16x128xf32>
    %632 = arith.addf %625, %631 : vector<16x128xf32>
    %c3_391 = arith.constant 3 : index
    %c0_392 = arith.constant 0 : index
    %c0_393 = arith.constant 0 : index
    %633 = vector.load %arg1[%c3_391, %c0_392, %c0_393] : memref<4x16x128xf32, #tpu.memory_space<vmem>>, vector<1x16x128xf32>
    %634 = vector.shape_cast %633 : vector<1x16x128xf32> to vector<16x128xf32>
    %c3_394 = arith.constant 3 : index
    %c4_395 = arith.constant 4 : index
    %c0_396 = arith.constant 0 : index
    %635 = vector.load %arg2[%c3_394, %c4_395, %c0_396] : memref<4x32x128xf32, #tpu.memory_space<vmem>>, vector<1x16x128xf32>
    %636 = vector.shape_cast %635 : vector<1x16x128xf32> to vector<16x128xf32>
    %637 = arith.subf %634, %636 : vector<16x128xf32>
    %638 = arith.mulf %637, %637 : vector<16x128xf32>
    %639 = arith.addf %632, %638 : vector<16x128xf32>
    %c4_i32_397 = arith.constant 4 : i32
    %640 = vector.broadcast %c4_i32_397 : i32 to vector<16x128xi32>
    %641 = arith.cmpi sge, %0, %640 : vector<16x128xi32>
    %642 = arith.andi %5, %641 : vector<16x128xi1>
    %643 = arith.addf %639, %610 : vector<16x128xf32>
    %644 = arith.select %642, %643, %6 : vector<16x128xi1>, vector<16x128xf32>
    %c8_398 = arith.constant 8 : index
    %c0_399 = arith.constant 0 : index
    %645 = vector.load %arg4[%c8_398, %c0_399] : memref<48x128xf32, #tpu.memory_space<vmem>>, vector<16x128xf32>
    tpu.vector_store %arg4[%c8_398, %c0_399], %644 {strides = array<i32>} : memref<48x128xf32, #tpu.memory_space<vmem>>, vector<16x128xf32>,
    %c8_400 = arith.constant 8 : index
    %c0_401 = arith.constant 0 : index
    %646 = vector.load %arg4[%c8_400, %c0_401] : memref<48x128xf32, #tpu.memory_space<vmem>>, vector<16x128xf32>
    %c7_402 = arith.constant 7 : index
    %c0_403 = arith.constant 0 : index
    %647 = vector.load %arg4[%c7_402, %c0_403] : memref<48x128xf32, #tpu.memory_space<vmem>>, vector<16x128xf32>
    %c31_404 = arith.constant 31 : index
    %c0_405 = arith.constant 0 : index
    %648 = vector.load %arg4[%c31_404, %c0_405] : memref<48x128xf32, #tpu.memory_space<vmem>>, vector<16x128xf32>
    %cst_406 = arith.constant -1.000000e+00 : f32
    %649 = vector.broadcast %cst_406 : f32 to vector<16x128xf32>
    %650 = arith.mulf %648, %649 : vector<16x128xf32>
    %cst_407 = arith.constant -1.000000e+00 : f32
    %651 = vector.broadcast %cst_407 : f32 to vector<16x128xf32>
    %652 = arith.mulf %647, %651 : vector<16x128xf32>
    %cst_408 = arith.constant -1.000000e+00 : f32
    %653 = vector.broadcast %cst_408 : f32 to vector<16x128xf32>
    %654 = arith.mulf %646, %653 : vector<16x128xf32>
    %655 = arith.maximumf %650, %652 : vector<16x128xf32>
    %656 = arith.maximumf %655, %654 : vector<16x128xf32>
    %657 = arith.subf %650, %656 : vector<16x128xf32>
    %658 = math.exp %657 : vector<16x128xf32>
    %659 = arith.subf %652, %656 : vector<16x128xf32>
    %660 = math.exp %659 : vector<16x128xf32>
    %661 = arith.addf %658, %660 : vector<16x128xf32>
    %662 = arith.subf %654, %656 : vector<16x128xf32>
    %663 = math.exp %662 : vector<16x128xf32>
    %664 = arith.addf %661, %663 : vector<16x128xf32>
    %665 = math.log %664 : vector<16x128xf32>
    %666 = arith.addf %665, %656 : vector<16x128xf32>
    %cst_409 = arith.constant -1.000000e+00 : f32
    %667 = vector.broadcast %cst_409 : f32 to vector<16x128xf32>
    %668 = arith.mulf %666, %667 : vector<16x128xf32>
    %cst_410 = arith.constant 0.000000e+00 : f32
    %669 = vector.broadcast %cst_410 : f32 to vector<16x128xf32>
    %c0_411 = arith.constant 0 : index
    %c0_412 = arith.constant 0 : index
    %c0_413 = arith.constant 0 : index
    %670 = vector.load %arg1[%c0_411, %c0_412, %c0_413] : memref<4x16x128xf32, #tpu.memory_space<vmem>>, vector<1x16x128xf32>
    %671 = vector.shape_cast %670 : vector<1x16x128xf32> to vector<16x128xf32>
    %c0_414 = arith.constant 0 : index
    %c3_415 = arith.constant 3 : index
    %c0_416 = arith.constant 0 : index
    %672 = vector.load %arg2[%c0_414, %c3_415, %c0_416] : memref<4x32x128xf32, #tpu.memory_space<vmem>>, vector<1x16x128xf32>
    %673 = vector.shape_cast %672 : vector<1x16x128xf32> to vector<16x128xf32>
    %674 = arith.subf %671, %673 : vector<16x128xf32>
    %675 = arith.mulf %674, %674 : vector<16x128xf32>
    %676 = arith.addf %669, %675 : vector<16x128xf32>
    %c1_417 = arith.constant 1 : index
    %c0_418 = arith.constant 0 : index
    %c0_419 = arith.constant 0 : index
    %677 = vector.load %arg1[%c1_417, %c0_418, %c0_419] : memref<4x16x128xf32, #tpu.memory_space<vmem>>, vector<1x16x128xf32>
    %678 = vector.shape_cast %677 : vector<1x16x128xf32> to vector<16x128xf32>
    %c1_420 = arith.constant 1 : index
    %c3_421 = arith.constant 3 : index
    %c0_422 = arith.constant 0 : index
    %679 = vector.load %arg2[%c1_420, %c3_421, %c0_422] : memref<4x32x128xf32, #tpu.memory_space<vmem>>, vector<1x16x128xf32>
    %680 = vector.shape_cast %679 : vector<1x16x128xf32> to vector<16x128xf32>
    %681 = arith.subf %678, %680 : vector<16x128xf32>
    %682 = arith.mulf %681, %681 : vector<16x128xf32>
    %683 = arith.addf %676, %682 : vector<16x128xf32>
    %c2_423 = arith.constant 2 : index
    %c0_424 = arith.constant 0 : index
    %c0_425 = arith.constant 0 : index
    %684 = vector.load %arg1[%c2_423, %c0_424, %c0_425] : memref<4x16x128xf32, #tpu.memory_space<vmem>>, vector<1x16x128xf32>
    %685 = vector.shape_cast %684 : vector<1x16x128xf32> to vector<16x128xf32>
    %c2_426 = arith.constant 2 : index
    %c3_427 = arith.constant 3 : index
    %c0_428 = arith.constant 0 : index
    %686 = vector.load %arg2[%c2_426, %c3_427, %c0_428] : memref<4x32x128xf32, #tpu.memory_space<vmem>>, vector<1x16x128xf32>
    %687 = vector.shape_cast %686 : vector<1x16x128xf32> to vector<16x128xf32>
    %688 = arith.subf %685, %687 : vector<16x128xf32>
    %689 = arith.mulf %688, %688 : vector<16x128xf32>
    %690 = arith.addf %683, %689 : vector<16x128xf32>
    %c3_429 = arith.constant 3 : index
    %c0_430 = arith.constant 0 : index
    %c0_431 = arith.constant 0 : index
    %691 = vector.load %arg1[%c3_429, %c0_430, %c0_431] : memref<4x16x128xf32, #tpu.memory_space<vmem>>, vector<1x16x128xf32>
    %692 = vector.shape_cast %691 : vector<1x16x128xf32> to vector<16x128xf32>
    %c3_432 = arith.constant 3 : index
    %c3_433 = arith.constant 3 : index
    %c0_434 = arith.constant 0 : index
    %693 = vector.load %arg2[%c3_432, %c3_433, %c0_434] : memref<4x32x128xf32, #tpu.memory_space<vmem>>, vector<1x16x128xf32>
    %694 = vector.shape_cast %693 : vector<1x16x128xf32> to vector<16x128xf32>
    %695 = arith.subf %692, %694 : vector<16x128xf32>
    %696 = arith.mulf %695, %695 : vector<16x128xf32>
    %697 = arith.addf %690, %696 : vector<16x128xf32>
    %c5_i32_435 = arith.constant 5 : i32
    %698 = vector.broadcast %c5_i32_435 : i32 to vector<16x128xi32>
    %699 = arith.cmpi sge, %0, %698 : vector<16x128xi32>
    %700 = arith.andi %5, %699 : vector<16x128xi1>
    %701 = arith.addf %697, %668 : vector<16x128xf32>
    %702 = arith.select %700, %701, %6 : vector<16x128xi1>, vector<16x128xf32>
    %c32_436 = arith.constant 32 : index
    %c0_437 = arith.constant 0 : index
    %703 = vector.load %arg4[%c32_436, %c0_437] : memref<48x128xf32, #tpu.memory_space<vmem>>, vector<16x128xf32>
    tpu.vector_store %arg4[%c32_436, %c0_437], %702 {strides = array<i32>} : memref<48x128xf32, #tpu.memory_space<vmem>>, vector<16x128xf32>,
    %c32_438 = arith.constant 32 : index
    %c0_439 = arith.constant 0 : index
    %704 = vector.load %arg4[%c32_438, %c0_439] : memref<48x128xf32, #tpu.memory_space<vmem>>, vector<16x128xf32>
    %c31_440 = arith.constant 31 : index
    %c0_441 = arith.constant 0 : index
    %705 = vector.load %arg4[%c31_440, %c0_441] : memref<48x128xf32, #tpu.memory_space<vmem>>, vector<16x128xf32>
    %c7_442 = arith.constant 7 : index
    %c0_443 = arith.constant 0 : index
    %706 = vector.load %arg4[%c7_442, %c0_443] : memref<48x128xf32, #tpu.memory_space<vmem>>, vector<16x128xf32>
    %cst_444 = arith.constant -1.000000e+00 : f32
    %707 = vector.broadcast %cst_444 : f32 to vector<16x128xf32>
    %708 = arith.mulf %706, %707 : vector<16x128xf32>
    %cst_445 = arith.constant -1.000000e+00 : f32
    %709 = vector.broadcast %cst_445 : f32 to vector<16x128xf32>
    %710 = arith.mulf %705, %709 : vector<16x128xf32>
    %cst_446 = arith.constant -1.000000e+00 : f32
    %711 = vector.broadcast %cst_446 : f32 to vector<16x128xf32>
    %712 = arith.mulf %704, %711 : vector<16x128xf32>
    %713 = arith.maximumf %708, %710 : vector<16x128xf32>
    %714 = arith.maximumf %713, %712 : vector<16x128xf32>
    %715 = arith.subf %708, %714 : vector<16x128xf32>
    %716 = math.exp %715 : vector<16x128xf32>
    %717 = arith.subf %710, %714 : vector<16x128xf32>
    %718 = math.exp %717 : vector<16x128xf32>
    %719 = arith.addf %716, %718 : vector<16x128xf32>
    %720 = arith.subf %712, %714 : vector<16x128xf32>
    %721 = math.exp %720 : vector<16x128xf32>
    %722 = arith.addf %719, %721 : vector<16x128xf32>
    %723 = math.log %722 : vector<16x128xf32>
    %724 = arith.addf %723, %714 : vector<16x128xf32>
    %cst_447 = arith.constant -1.000000e+00 : f32
    %725 = vector.broadcast %cst_447 : f32 to vector<16x128xf32>
    %726 = arith.mulf %724, %725 : vector<16x128xf32>
    %cst_448 = arith.constant 0.000000e+00 : f32
    %727 = vector.broadcast %cst_448 : f32 to vector<16x128xf32>
    %c0_449 = arith.constant 0 : index
    %c0_450 = arith.constant 0 : index
    %c0_451 = arith.constant 0 : index
    %728 = vector.load %arg1[%c0_449, %c0_450, %c0_451] : memref<4x16x128xf32, #tpu.memory_space<vmem>>, vector<1x16x128xf32>
    %729 = vector.shape_cast %728 : vector<1x16x128xf32> to vector<16x128xf32>
    %c0_452 = arith.constant 0 : index
    %c2_453 = arith.constant 2 : index
    %c0_454 = arith.constant 0 : index
    %730 = vector.load %arg2[%c0_452, %c2_453, %c0_454] : memref<4x32x128xf32, #tpu.memory_space<vmem>>, vector<1x16x128xf32>
    %731 = vector.shape_cast %730 : vector<1x16x128xf32> to vector<16x128xf32>
    %732 = arith.subf %729, %731 : vector<16x128xf32>
    %733 = arith.mulf %732, %732 : vector<16x128xf32>
    %734 = arith.addf %727, %733 : vector<16x128xf32>
    %c1_455 = arith.constant 1 : index
    %c0_456 = arith.constant 0 : index
    %c0_457 = arith.constant 0 : index
    %735 = vector.load %arg1[%c1_455, %c0_456, %c0_457] : memref<4x16x128xf32, #tpu.memory_space<vmem>>, vector<1x16x128xf32>
    %736 = vector.shape_cast %735 : vector<1x16x128xf32> to vector<16x128xf32>
    %c1_458 = arith.constant 1 : index
    %c2_459 = arith.constant 2 : index
    %c0_460 = arith.constant 0 : index
    %737 = vector.load %arg2[%c1_458, %c2_459, %c0_460] : memref<4x32x128xf32, #tpu.memory_space<vmem>>, vector<1x16x128xf32>
    %738 = vector.shape_cast %737 : vector<1x16x128xf32> to vector<16x128xf32>
    %739 = arith.subf %736, %738 : vector<16x128xf32>
    %740 = arith.mulf %739, %739 : vector<16x128xf32>
    %741 = arith.addf %734, %740 : vector<16x128xf32>
    %c2_461 = arith.constant 2 : index
    %c0_462 = arith.constant 0 : index
    %c0_463 = arith.constant 0 : index
    %742 = vector.load %arg1[%c2_461, %c0_462, %c0_463] : memref<4x16x128xf32, #tpu.memory_space<vmem>>, vector<1x16x128xf32>
    %743 = vector.shape_cast %742 : vector<1x16x128xf32> to vector<16x128xf32>
    %c2_464 = arith.constant 2 : index
    %c2_465 = arith.constant 2 : index
    %c0_466 = arith.constant 0 : index
    %744 = vector.load %arg2[%c2_464, %c2_465, %c0_466] : memref<4x32x128xf32, #tpu.memory_space<vmem>>, vector<1x16x128xf32>
    %745 = vector.shape_cast %744 : vector<1x16x128xf32> to vector<16x128xf32>
    %746 = arith.subf %743, %745 : vector<16x128xf32>
    %747 = arith.mulf %746, %746 : vector<16x128xf32>
    %748 = arith.addf %741, %747 : vector<16x128xf32>
    %c3_467 = arith.constant 3 : index
    %c0_468 = arith.constant 0 : index
    %c0_469 = arith.constant 0 : index
    %749 = vector.load %arg1[%c3_467, %c0_468, %c0_469] : memref<4x16x128xf32, #tpu.memory_space<vmem>>, vector<1x16x128xf32>
    %750 = vector.shape_cast %749 : vector<1x16x128xf32> to vector<16x128xf32>
    %c3_470 = arith.constant 3 : index
    %c2_471 = arith.constant 2 : index
    %c0_472 = arith.constant 0 : index
    %751 = vector.load %arg2[%c3_470, %c2_471, %c0_472] : memref<4x32x128xf32, #tpu.memory_space<vmem>>, vector<1x16x128xf32>
    %752 = vector.shape_cast %751 : vector<1x16x128xf32> to vector<16x128xf32>
    %753 = arith.subf %750, %752 : vector<16x128xf32>
    %754 = arith.mulf %753, %753 : vector<16x128xf32>
    %755 = arith.addf %748, %754 : vector<16x128xf32>
    %c6_i32_473 = arith.constant 6 : i32
    %756 = vector.broadcast %c6_i32_473 : i32 to vector<16x128xi32>
    %757 = arith.cmpi sge, %0, %756 : vector<16x128xi32>
    %758 = arith.andi %5, %757 : vector<16x128xi1>
    %759 = arith.addf %755, %726 : vector<16x128xf32>
    %760 = arith.select %758, %759, %6 : vector<16x128xi1>, vector<16x128xf32>
    %c8_474 = arith.constant 8 : index
    %c0_475 = arith.constant 0 : index
    %761 = vector.load %arg4[%c8_474, %c0_475] : memref<48x128xf32, #tpu.memory_space<vmem>>, vector<16x128xf32>
    tpu.vector_store %arg4[%c8_474, %c0_475], %760 {strides = array<i32>} : memref<48x128xf32, #tpu.memory_space<vmem>>, vector<16x128xf32>,
    %c8_476 = arith.constant 8 : index
    %c0_477 = arith.constant 0 : index
    %762 = vector.load %arg4[%c8_476, %c0_477] : memref<48x128xf32, #tpu.memory_space<vmem>>, vector<16x128xf32>
    %c7_478 = arith.constant 7 : index
    %c0_479 = arith.constant 0 : index
    %763 = vector.load %arg4[%c7_478, %c0_479] : memref<48x128xf32, #tpu.memory_space<vmem>>, vector<16x128xf32>
    %c31_480 = arith.constant 31 : index
    %c0_481 = arith.constant 0 : index
    %764 = vector.load %arg4[%c31_480, %c0_481] : memref<48x128xf32, #tpu.memory_space<vmem>>, vector<16x128xf32>
    %cst_482 = arith.constant -1.000000e+00 : f32
    %765 = vector.broadcast %cst_482 : f32 to vector<16x128xf32>
    %766 = arith.mulf %764, %765 : vector<16x128xf32>
    %cst_483 = arith.constant -1.000000e+00 : f32
    %767 = vector.broadcast %cst_483 : f32 to vector<16x128xf32>
    %768 = arith.mulf %763, %767 : vector<16x128xf32>
    %cst_484 = arith.constant -1.000000e+00 : f32
    %769 = vector.broadcast %cst_484 : f32 to vector<16x128xf32>
    %770 = arith.mulf %762, %769 : vector<16x128xf32>
    %771 = arith.maximumf %766, %768 : vector<16x128xf32>
    %772 = arith.maximumf %771, %770 : vector<16x128xf32>
    %773 = arith.subf %766, %772 : vector<16x128xf32>
    %774 = math.exp %773 : vector<16x128xf32>
    %775 = arith.subf %768, %772 : vector<16x128xf32>
    %776 = math.exp %775 : vector<16x128xf32>
    %777 = arith.addf %774, %776 : vector<16x128xf32>
    %778 = arith.subf %770, %772 : vector<16x128xf32>
    %779 = math.exp %778 : vector<16x128xf32>
    %780 = arith.addf %777, %779 : vector<16x128xf32>
    %781 = math.log %780 : vector<16x128xf32>
    %782 = arith.addf %781, %772 : vector<16x128xf32>
    %cst_485 = arith.constant -1.000000e+00 : f32
    %783 = vector.broadcast %cst_485 : f32 to vector<16x128xf32>
    %784 = arith.mulf %782, %783 : vector<16x128xf32>
    %cst_486 = arith.constant 0.000000e+00 : f32
    %785 = vector.broadcast %cst_486 : f32 to vector<16x128xf32>
    %c0_487 = arith.constant 0 : index
    %c0_488 = arith.constant 0 : index
    %c0_489 = arith.constant 0 : index
    %786 = vector.load %arg1[%c0_487, %c0_488, %c0_489] : memref<4x16x128xf32, #tpu.memory_space<vmem>>, vector<1x16x128xf32>
    %787 = vector.shape_cast %786 : vector<1x16x128xf32> to vector<16x128xf32>
    %c0_490 = arith.constant 0 : index
    %c1_491 = arith.constant 1 : index
    %c0_492 = arith.constant 0 : index
    %788 = vector.load %arg2[%c0_490, %c1_491, %c0_492] : memref<4x32x128xf32, #tpu.memory_space<vmem>>, vector<1x16x128xf32>
    %789 = vector.shape_cast %788 : vector<1x16x128xf32> to vector<16x128xf32>
    %790 = arith.subf %787, %789 : vector<16x128xf32>
    %791 = arith.mulf %790, %790 : vector<16x128xf32>
    %792 = arith.addf %785, %791 : vector<16x128xf32>
    %c1_493 = arith.constant 1 : index
    %c0_494 = arith.constant 0 : index
    %c0_495 = arith.constant 0 : index
    %793 = vector.load %arg1[%c1_493, %c0_494, %c0_495] : memref<4x16x128xf32, #tpu.memory_space<vmem>>, vector<1x16x128xf32>
    %794 = vector.shape_cast %793 : vector<1x16x128xf32> to vector<16x128xf32>
    %c1_496 = arith.constant 1 : index
    %c1_497 = arith.constant 1 : index
    %c0_498 = arith.constant 0 : index
    %795 = vector.load %arg2[%c1_496, %c1_497, %c0_498] : memref<4x32x128xf32, #tpu.memory_space<vmem>>, vector<1x16x128xf32>
    %796 = vector.shape_cast %795 : vector<1x16x128xf32> to vector<16x128xf32>
    %797 = arith.subf %794, %796 : vector<16x128xf32>
    %798 = arith.mulf %797, %797 : vector<16x128xf32>
    %799 = arith.addf %792, %798 : vector<16x128xf32>
    %c2_499 = arith.constant 2 : index
    %c0_500 = arith.constant 0 : index
    %c0_501 = arith.constant 0 : index
    %800 = vector.load %arg1[%c2_499, %c0_500, %c0_501] : memref<4x16x128xf32, #tpu.memory_space<vmem>>, vector<1x16x128xf32>
    %801 = vector.shape_cast %800 : vector<1x16x128xf32> to vector<16x128xf32>
    %c2_502 = arith.constant 2 : index
    %c1_503 = arith.constant 1 : index
    %c0_504 = arith.constant 0 : index
    %802 = vector.load %arg2[%c2_502, %c1_503, %c0_504] : memref<4x32x128xf32, #tpu.memory_space<vmem>>, vector<1x16x128xf32>
    %803 = vector.shape_cast %802 : vector<1x16x128xf32> to vector<16x128xf32>
    %804 = arith.subf %801, %803 : vector<16x128xf32>
    %805 = arith.mulf %804, %804 : vector<16x128xf32>
    %806 = arith.addf %799, %805 : vector<16x128xf32>
    %c3_505 = arith.constant 3 : index
    %c0_506 = arith.constant 0 : index
    %c0_507 = arith.constant 0 : index
    %807 = vector.load %arg1[%c3_505, %c0_506, %c0_507] : memref<4x16x128xf32, #tpu.memory_space<vmem>>, vector<1x16x128xf32>
    %808 = vector.shape_cast %807 : vector<1x16x128xf32> to vector<16x128xf32>
    %c3_508 = arith.constant 3 : index
    %c1_509 = arith.constant 1 : index
    %c0_510 = arith.constant 0 : index
    %809 = vector.load %arg2[%c3_508, %c1_509, %c0_510] : memref<4x32x128xf32, #tpu.memory_space<vmem>>, vector<1x16x128xf32>
    %810 = vector.shape_cast %809 : vector<1x16x128xf32> to vector<16x128xf32>
    %811 = arith.subf %808, %810 : vector<16x128xf32>
    %812 = arith.mulf %811, %811 : vector<16x128xf32>
    %813 = arith.addf %806, %812 : vector<16x128xf32>
    %c7_i32_511 = arith.constant 7 : i32
    %814 = vector.broadcast %c7_i32_511 : i32 to vector<16x128xi32>
    %815 = arith.cmpi sge, %0, %814 : vector<16x128xi32>
    %816 = arith.andi %5, %815 : vector<16x128xi1>
    %817 = arith.addf %813, %784 : vector<16x128xf32>
    %818 = arith.select %816, %817, %6 : vector<16x128xi1>, vector<16x128xf32>
    %c32_512 = arith.constant 32 : index
    %c0_513 = arith.constant 0 : index
    %819 = vector.load %arg4[%c32_512, %c0_513] : memref<48x128xf32, #tpu.memory_space<vmem>>, vector<16x128xf32>
    tpu.vector_store %arg4[%c32_512, %c0_513], %818 {strides = array<i32>} : memref<48x128xf32, #tpu.memory_space<vmem>>, vector<16x128xf32>,
    %c32_514 = arith.constant 32 : index
    %c0_515 = arith.constant 0 : index
    %820 = vector.load %arg4[%c32_514, %c0_515] : memref<48x128xf32, #tpu.memory_space<vmem>>, vector<16x128xf32>
    %c31_516 = arith.constant 31 : index
    %c0_517 = arith.constant 0 : index
    %821 = vector.load %arg4[%c31_516, %c0_517] : memref<48x128xf32, #tpu.memory_space<vmem>>, vector<16x128xf32>
    %c7_518 = arith.constant 7 : index
    %c0_519 = arith.constant 0 : index
    %822 = vector.load %arg4[%c7_518, %c0_519] : memref<48x128xf32, #tpu.memory_space<vmem>>, vector<16x128xf32>
    %cst_520 = arith.constant -1.000000e+00 : f32
    %823 = vector.broadcast %cst_520 : f32 to vector<16x128xf32>
    %824 = arith.mulf %822, %823 : vector<16x128xf32>
    %cst_521 = arith.constant -1.000000e+00 : f32
    %825 = vector.broadcast %cst_521 : f32 to vector<16x128xf32>
    %826 = arith.mulf %821, %825 : vector<16x128xf32>
    %cst_522 = arith.constant -1.000000e+00 : f32
    %827 = vector.broadcast %cst_522 : f32 to vector<16x128xf32>
    %828 = arith.mulf %820, %827 : vector<16x128xf32>
    %829 = arith.maximumf %824, %826 : vector<16x128xf32>
    %830 = arith.maximumf %829, %828 : vector<16x128xf32>
    %831 = arith.subf %824, %830 : vector<16x128xf32>
    %832 = math.exp %831 : vector<16x128xf32>
    %833 = arith.subf %826, %830 : vector<16x128xf32>
    %834 = math.exp %833 : vector<16x128xf32>
    %835 = arith.addf %832, %834 : vector<16x128xf32>
    %836 = arith.subf %828, %830 : vector<16x128xf32>
    %837 = math.exp %836 : vector<16x128xf32>
    %838 = arith.addf %835, %837 : vector<16x128xf32>
    %839 = math.log %838 : vector<16x128xf32>
    %840 = arith.addf %839, %830 : vector<16x128xf32>
    %cst_523 = arith.constant -1.000000e+00 : f32
    %841 = vector.broadcast %cst_523 : f32 to vector<16x128xf32>
    %842 = arith.mulf %840, %841 : vector<16x128xf32>
    %cst_524 = arith.constant 0.000000e+00 : f32
    %843 = vector.broadcast %cst_524 : f32 to vector<16x128xf32>
    %c0_525 = arith.constant 0 : index
    %c0_526 = arith.constant 0 : index
    %c0_527 = arith.constant 0 : index
    %844 = vector.load %arg1[%c0_525, %c0_526, %c0_527] : memref<4x16x128xf32, #tpu.memory_space<vmem>>, vector<1x16x128xf32>
    %845 = vector.shape_cast %844 : vector<1x16x128xf32> to vector<16x128xf32>
    %c0_528 = arith.constant 0 : index
    %c0_529 = arith.constant 0 : index
    %c0_530 = arith.constant 0 : index
    %846 = vector.load %arg2[%c0_528, %c0_529, %c0_530] : memref<4x32x128xf32, #tpu.memory_space<vmem>>, vector<1x16x128xf32>
    %847 = vector.shape_cast %846 : vector<1x16x128xf32> to vector<16x128xf32>
    %848 = arith.subf %845, %847 : vector<16x128xf32>
    %849 = arith.mulf %848, %848 : vector<16x128xf32>
    %850 = arith.addf %843, %849 : vector<16x128xf32>
    %c1_531 = arith.constant 1 : index
    %c0_532 = arith.constant 0 : index
    %c0_533 = arith.constant 0 : index
    %851 = vector.load %arg1[%c1_531, %c0_532, %c0_533] : memref<4x16x128xf32, #tpu.memory_space<vmem>>, vector<1x16x128xf32>
    %852 = vector.shape_cast %851 : vector<1x16x128xf32> to vector<16x128xf32>
    %c1_534 = arith.constant 1 : index
    %c0_535 = arith.constant 0 : index
    %c0_536 = arith.constant 0 : index
    %853 = vector.load %arg2[%c1_534, %c0_535, %c0_536] : memref<4x32x128xf32, #tpu.memory_space<vmem>>, vector<1x16x128xf32>
    %854 = vector.shape_cast %853 : vector<1x16x128xf32> to vector<16x128xf32>
    %855 = arith.subf %852, %854 : vector<16x128xf32>
    %856 = arith.mulf %855, %855 : vector<16x128xf32>
    %857 = arith.addf %850, %856 : vector<16x128xf32>
    %c2_537 = arith.constant 2 : index
    %c0_538 = arith.constant 0 : index
    %c0_539 = arith.constant 0 : index
    %858 = vector.load %arg1[%c2_537, %c0_538, %c0_539] : memref<4x16x128xf32, #tpu.memory_space<vmem>>, vector<1x16x128xf32>
    %859 = vector.shape_cast %858 : vector<1x16x128xf32> to vector<16x128xf32>
    %c2_540 = arith.constant 2 : index
    %c0_541 = arith.constant 0 : index
    %c0_542 = arith.constant 0 : index
    %860 = vector.load %arg2[%c2_540, %c0_541, %c0_542] : memref<4x32x128xf32, #tpu.memory_space<vmem>>, vector<1x16x128xf32>
    %861 = vector.shape_cast %860 : vector<1x16x128xf32> to vector<16x128xf32>
    %862 = arith.subf %859, %861 : vector<16x128xf32>
    %863 = arith.mulf %862, %862 : vector<16x128xf32>
    %864 = arith.addf %857, %863 : vector<16x128xf32>
    %c3_543 = arith.constant 3 : index
    %c0_544 = arith.constant 0 : index
    %c0_545 = arith.constant 0 : index
    %865 = vector.load %arg1[%c3_543, %c0_544, %c0_545] : memref<4x16x128xf32, #tpu.memory_space<vmem>>, vector<1x16x128xf32>
    %866 = vector.shape_cast %865 : vector<1x16x128xf32> to vector<16x128xf32>
    %c3_546 = arith.constant 3 : index
    %c0_547 = arith.constant 0 : index
    %c0_548 = arith.constant 0 : index
    %867 = vector.load %arg2[%c3_546, %c0_547, %c0_548] : memref<4x32x128xf32, #tpu.memory_space<vmem>>, vector<1x16x128xf32>
    %868 = vector.shape_cast %867 : vector<1x16x128xf32> to vector<16x128xf32>
    %869 = arith.subf %866, %868 : vector<16x128xf32>
    %870 = arith.mulf %869, %869 : vector<16x128xf32>
    %871 = arith.addf %864, %870 : vector<16x128xf32>
    %c8_i32_549 = arith.constant 8 : i32
    %872 = vector.broadcast %c8_i32_549 : i32 to vector<16x128xi32>
    %873 = arith.cmpi sge, %0, %872 : vector<16x128xi32>
    %874 = arith.andi %5, %873 : vector<16x128xi1>
    %875 = arith.addf %871, %842 : vector<16x128xf32>
    %876 = arith.select %874, %875, %6 : vector<16x128xi1>, vector<16x128xf32>
    %c8_550 = arith.constant 8 : index
    %c0_551 = arith.constant 0 : index
    %877 = vector.load %arg4[%c8_550, %c0_551] : memref<48x128xf32, #tpu.memory_space<vmem>>, vector<16x128xf32>
    tpu.vector_store %arg4[%c8_550, %c0_551], %876 {strides = array<i32>} : memref<48x128xf32, #tpu.memory_space<vmem>>, vector<16x128xf32>,
    %c16 = arith.constant 16 : index
    %c0_552 = arith.constant 0 : index
    %878 = vector.load %arg4[%c16, %c0_552] : memref<48x128xf32, #tpu.memory_space<vmem>>, vector<1x128xf32>
    %c0_553 = arith.constant 0 : index
    %c0_554 = arith.constant 0 : index
    %879 = vector.load %arg3[%c0_553, %c0_554] : memref<1x128xf32, #tpu.memory_space<vmem>>, vector<1x128xf32>
    tpu.vector_store %arg3[%c0_553, %c0_554], %878 {strides = array<i32>} : memref<1x128xf32, #tpu.memory_space<vmem>>, vector<1x128xf32>,
    return
  }
  func.func @transform_0(%arg0: i32) -> (i32, i32, i32) {
    %c0_i32 = arith.constant 0 : i32
    %c0_i32_0 = arith.constant 0 : i32
    %c0_i32_1 = arith.constant 0 : i32
    return %c0_i32, %c0_i32_0, %arg0 : i32, i32, i32
  }
  func.func @transform_1(%arg0: i32) -> (i32, i32, i32) {
    %c0_i32 = arith.constant 0 : i32
    %c0_i32_0 = arith.constant 0 : i32
    %c0_i32_1 = arith.constant 0 : i32
    return %c0_i32, %c0_i32_0, %arg0 : i32, i32, i32
  }
  func.func @transform_2(%arg0: i32) -> (i32, i32) {
    %c0_i32 = arith.constant 0 : i32
    %c0_i32_0 = arith.constant 0 : i32
    return %c0_i32, %arg0 : i32, i32
  }
}

</mosaic_0001>

<bundles_post_ra>
// kernel: tpu_custom_call.1
= control target key start
LH: loop header
LB: loop body
LE: loop exit
PB: predicated region body
PF: predicated region fallthrough
CT: control target
= control target key end

     0   :  { %6 = vsyncpa [#allocation3], 0  ;;  %s131_s0 = inlined_call_operand.hbm [shape: f32[16,128], index: 0, kind: input, shape index: {}]   ;;  %s132_s1 = inlined_call_operand.hbm [shape: f32[16,128], index: 1, kind: output, shape index: {}]  }
   0x1   :  { %7 = vsyncpa [#allocation4], 0  ;;  %s12_s8 = sshll.u32 %s131_s0, 4  ;;  %s111_s9 = smov [#allocation2]   ;;  %s13_s8 = int_to_ptr.hbm [resolvable:$true] %s12_s8 }
   0x2   :  { %s14_s10 = sshll.u32 %s111_s9, 4  ;;  %s112_s11 = smov 128   ;;  %s15_s10 = int_to_ptr.vmem [resolvable:$true] %s14_s10 }
   0x3   :  { %s113_s12 = smov 8  }
   0x4   :  { %20 = dma.hbm_to_vmem [thread:$0]  %s13_s8, 256, %s15_s10, [#allocation3], %s112_s11, %s112_s11, %s113_s12  }
   0x5   :  { %107 = dma.done.wait [#allocation3], 256  }
   0x6   :  { %108 = vsyncadd [#allocation3], 4294967040  ;;  %v29_v0 = vlaneseq  ;;  %v25_v2 = vld [vmem:[#allocation2] sm:$0xff]  ;;  %v26_v3 = vld [vmem:[#allocation2 + $0x8] sm:$0xff]  ;;  %s114_s13 = smov [#allocation5]   ;;  %s42_s0 = sshll.u32 %s132_s1, 4  ;;  %s43_s0 = int_to_ptr.hbm [resolvable:$true] %s42_s0 }
   0x7   :  { %s40_s14 = sshll.u32 %s114_s13, 4  ;;  %v27_v4 = vrot.slane %v25_v2, 7  ;;  %v28_v5 = vrot.slane %v26_v3, 7  ;;  %s41_s14 = int_to_ptr.vmem [resolvable:$true] %s40_s14 }
   0x8   :  { %v30_v1 = vshrl.u32 %v29_v0, 7 }
   0xa   :  { %vm31_vm0 = vcmp.lt.s32.totalorder %v30_v1, 1 }
   0xb   :  { %v33_v6 = vsel %vm31_vm0, %v28_v5, %v27_v4  ;;  %v32_v7 = vsel %vm31_vm0, %v27_v4, %v28_v5 }
   0xc   :  { %34 = vst [vmem:[#allocation5] sm:$0xff] %v33_v6 }
   0xd   :  { %35 = vst [vmem:[#allocation5 + $0x8] sm:$0xff] %v32_v7 }
   0xe   :  { %48 = dma.vmem_to_hbm [thread:$0]  %s41_s14, 256, %s43_s0, [#allocation4], %s112_s11, %s112_s11, %s113_s12  }
   0xf   :  { %109 = dma.done.wait [#allocation4], 256  }
  0x10   :  { %110 = vsyncadd [#allocation4], 4294967040 }
  0x11   :  { %53 = vsyncpa [#allocation3], 1 }
  0x12   :  { %54 = vsyncpa [#allocation4], 1 }

// kernel: tpu_custom_call.1
= control target key start
LH: loop header
LB: loop body
LE: loop exit
PB: predicated region body
PF: predicated region fallthrough
CT: control target
= control target key end

     0   :  { %7 = vsyncpa [#allocation4], 0  ;;  %s2148_s0 = inlined_call_operand.hbm [shape: f32[4,16,128], index: 0, kind: input, shape index: {}]   ;;  %s2149_s1 = inlined_call_operand.hbm [shape: f32[4,32,128], index: 1, kind: input, shape index: {}]   ;;  %s2150_s2 = inlined_call_operand.hbm [shape: f32[1,128], index: 2, kind: output, shape index: {}]  }
   0x1   :  { %8 = vsyncpa [#allocation7], 0 }
   0x2   :  { %9 = vsyncpa [#allocation5], 0  ;;  %s14_s11 = sshll.u32 %s2148_s0, 4  ;;  %s1790_s12 = smov [#allocation3]   ;;  %s15_s11 = int_to_ptr.hbm [resolvable:$true] %s14_s11 }
   0x3   :  { %s16_s13 = sshll.u32 %s1790_s12, 4  ;;  %s27_s16 = sshll.u32 %s2149_s1, 4  ;;  %s17_s13 = int_to_ptr.vmem [resolvable:$true] %s16_s13  ;;  %s28_s16 = int_to_ptr.hbm [resolvable:$true] %s27_s16 }
   0x4   :  { %s1791_s17 = smov 128   ;;  %s1792_s18 = smov 8  }
   0x5   :  { %22 = dma.hbm_to_vmem [thread:$0]  %s15_s11, 1024, %s17_s13, [#allocation4], %s1791_s17, %s1791_s17, %s1792_s18  }
   0x6   :  { %s1793_s19 = smov [#allocation6]  }
   0x7   :  { %s29_s20 = sshll.u32 %s1793_s19, 4  ;;  %s30_s20 = int_to_ptr.vmem [resolvable:$true] %s29_s20 }
   0x8   :  { %35 = dma.hbm_to_vmem [thread:$0]  %s28_s16, 2048, %s30_s20, [#allocation7], %s1791_s17, %s1791_s17, %s1792_s18  }
   0x9   :  { %1784 = dma.done.wait [#allocation4], 1024  }
   0xa   :  { %1785 = vsyncadd [#allocation4], 4294966272 }
   0xb   :  { %1786 = dma.done.wait [#allocation7], 2048  }
   0xc   :  { %1787 = vsyncadd [#allocation7], 4294965248  ;;  %v1794_v0 = vmov 1e+08   ;;  %v1795_v1 = vmov 0.0   ;;  %v1818_v14 = vld [vmem:[#allocation3] sm:$0xff]  ;;  %v44_v32 = vlaneseq }
   0xd   :  { %54 = vst [vmem:[#allocation2 + $0x8] sm:$0xff] %v1794_v0  ;;  %v108_v15 = vld [vmem:[#allocation6 + $0xe] sm:$0xff]  ;;  %v1824_v21 = vld [vmem:[#allocation3 + $0x20] sm:$0xff]  ;;  %s1796_s0 = smov [#allocation8]   ;;  %s1511_s23 = sshll.u32 %s2150_s2, 4  ;;  %s1512_s23 = int_to_ptr.hbm [resolvable:$true] %s1511_s23 }
   0xe   :  { %53 = vst [vmem:[#allocation2] sm:$0xff] %v1794_v0  ;;  %v1820_v16 = vld [vmem:[#allocation3 + $0x10] sm:$0xff]  ;;  %v110_v18 = vsub.f32 %v1818_v14, %v108_v15  ;;  %v1830_v36 = vshrl.u32 %v44_v32, 7  ;;  %s1509_s1 = sshll.u32 %s1796_s0, 4  ;;  %s1510_s1 = int_to_ptr.vmem [resolvable:$true] %s1509_s1 }
   0xf   :  { %56 = vst [vmem:[#allocation2 + $0x18] sm:$0xff] %v1794_v0  ;;  %v120_v17 = vld [vmem:[#allocation6 + $0x2e] sm:$0xff] }
  0x10   :  { %57 = vst [vmem:[#allocation2 + $0x20] sm:$0xff] %v1794_v0  ;;  %v122_v19 = vsub.f32 %v1820_v16, %v120_v17  ;;  %v132_v22 = vld [vmem:[#allocation6 + $0x4e] sm:$0xff]  ;;  %v112_v26 = vmul.f32 %v110_v18, %v110_v18  ;;  %vm47_vm0 = vcmp.ge.s32.totalorder %v1830_v36, 1  ;;  %vm152_vm1 = vcmp.lt.s32.totalorder %v1830_v36, 2 }
  0x11   :  { %641 = vst [vmem:[#allocation2 + $0x28] sm:$0xff] %v1794_v0  ;;  %v134_v28 = vsub.f32 %v1824_v21, %v132_v22  ;;  %v1827_v30 = vld [vmem:[#allocation3 + $0x30] sm:$0xff]  ;;  %vm154_vm2 = vmand %vm47_vm0, %vm152_vm1  ;;  %vm248_vm3 = vcmp.lt.s32.totalorder %v1830_v36, 3  ;;  %vm344_vm5 = vcmp.lt.s32.totalorder %v1830_v36, 4  ;;  %vm440_vm7 = vcmp.lt.s32.totalorder %v1830_v36, 5 }
  0x12   :  { %59 = vst [vmem:[#allocation2 + $0x8] sm:$0x1] %v1795_v1  ;;  %v124_v27 = vmul.f32 %v122_v19, %v122_v19  ;;  %v144_v31 = vld [vmem:[#allocation6 + $0x6e] sm:$0xff]  ;;  %vm250_vm4 = vmand %vm47_vm0, %vm248_vm3  ;;  %vm536_vm9 = vcmp.lt.s32.totalorder %v1830_v36, 6  ;;  %vm632_vm11 = vcmp.lt.s32.totalorder %v1830_v36, 7  ;;  %vm916_vm14 = vcmp.ge.s32.totalorder %v1830_v36, 2 }
  0x13   :  { %737 = vst [vmem:[#allocation2 + $0x10] sm:$0xff] %v1794_v0  ;;  %v136_v34 = vmul.f32 %v134_v28, %v134_v28  ;;  %v146_v35 = vsub.f32 %v1827_v30, %v144_v31  ;;  %v210_v57 = vld [vmem:[#allocation6 + $0xd] sm:$0xff]  ;;  %vm346_vm6 = vmand %vm47_vm0, %vm344_vm5  ;;  %vm1012_vm1 = vcmp.ge.s32.totalorder %v1830_v36, 3  ;;  %vm1108_vm3 = vcmp.ge.s32.totalorder %v1830_v36, 4 }
  0x14   :  { %v126_v33 = vadd.f32 %v124_v27, %v112_v26  ;;  %v220_v58 = vld [vmem:[#allocation6 + $0x2d] sm:$0xff]  ;;  %v212_v59 = vsub.f32 %v1818_v14, %v210_v57  ;;  %vm442_vm8 = vmand %vm47_vm0, %vm440_vm7  ;;  %vm1204_vm5 = vcmp.ge.s32.totalorder %v1830_v36, 5  ;;  %vm1300_vm7 = vcmp.ge.s32.totalorder %v1830_v36, 6 }
  0x15   :  { %v148_v38 = vmul.f32 %v146_v35, %v146_v35  ;;  %v222_v60 = vsub.f32 %v1820_v16, %v220_v58  ;;  %v230_v62 = vld [vmem:[#allocation6 + $0x4d] sm:$0xff]  ;;  %vm538_vm10 = vmand %vm47_vm0, %vm536_vm9  ;;  %vm1396_vm9 = vcmp.ge.s32.totalorder %v1830_v36, 7 }
  0x16   :  { %v138_v37 = vadd.f32 %v136_v34, %v126_v33  ;;  %v306_v34 = vld [vmem:[#allocation6 + $0xc] sm:$0xff]  ;;  %vm634_vm12 = vmand %vm47_vm0, %vm632_vm11 }
  0x17   :  { %v62_v2 = vld [vmem:[#allocation2 + $0x1f] sm:$0xff]  ;;  %vm918_vm15 = vmand %vm47_vm0, %vm916_vm14 }
  0x18   :  { %v68_v3 = vmul.f32 -1.0, %v62_v2  ;;  %v150_v42 = vadd.f32 %v148_v38, %v138_v37  ;;  %v214_v2 = vmul.f32 %v212_v59, %v212_v59  ;;  %v316_v35 = vld [vmem:[#allocation6 + $0x2c] sm:$0xff]  ;;  %v308_v37 = vsub.f32 %v1818_v14, %v306_v34 }
  0x19   :  { %v64_v4 = vld [vmem:[#allocation2 + $0x7] sm:$0xff]  ;;  %v318_v38 = vsub.f32 %v1820_v16, %v316_v35 }
  0x1a   :  { %v66_v5 = vmul.f32 -1.0, %v64_v4  ;;  %v232_v4 = vsub.f32 %v1824_v21, %v230_v62 }
  0x1c   :  { %v72_v6 = vmax.f32 %v66_v5, %v68_v3 }
  0x1e   :  { %v74_v7 = vmax.f32 %v72_v6, -1e+08  ;;  %v240_v6 = vld [vmem:[#allocation6 + $0x6d] sm:$0xff] }
  0x20   :  { %v76_v8 = vsub.f32 %v66_v5, %v74_v7  ;;  %v82_v9 = vsub.f32 %v68_v3, %v74_v7  ;;  %v90_v10 = vsub.f32 -1e+08, %v74_v7 }
  0x22   :  { %v78_v11 = vmul.f32 1.442695, %v76_v8  ;;  %v84_v12 = vmul.f32 1.442695, %v82_v9  ;;  %v92_v13 = vmul.f32 1.442695, %v90_v10  ;;  %v234_v8 = vmul.f32 %v232_v4, %v232_v4 }
  0x23   :  { %v242_v9 = vsub.f32 %v1827_v30, %v240_v6 }
  0x24   :  { %1529 = vpow2.f32 %v78_v11 }
  0x25   :  { %1531 = vpow2.f32 %v84_v12  ;;  %v244_v11 = vmul.f32 %v242_v9, %v242_v9  ;;  %v412_v9 = vld [vmem:[#allocation6 + $0x2b] sm:$0xff] }
  0x26   :  { %1533 = vpow2.f32 %v92_v13 }
  0x2a   :  { %v1530_v20 = vpop.eup %1529 }
  0x2b   :  { %v1532_v23 = vpop.eup %1531 }
  0x2c   :  { %v88_v24 = vadd.f32 %v1532_v23, %v1530_v20  ;;  %v1534_v25 = vpop.eup %1533 }
  0x2e   :  { %v96_v29 = vadd.f32 %v1534_v25, %v88_v24 }
  0x30   :  { %1535 = vlog2.f32 %v96_v29 }
  0x36   :  { %v1536_v39 = vpop.eup %1535 }
  0x37   :  { %v99_v40 = vmul.f32 0.6931472, %v1536_v39 }
  0x39   :  { %v102_v41 = vadd.f32 %v99_v40, %v74_v7  ;;  %v326_v40 = vld [vmem:[#allocation6 + $0x4c] sm:$0xff] }
  0x3b   :  { %v104_v43 = vmul.f32 -1.0, %v102_v41 }
  0x3d   :  { %v156_v44 = vadd.f32 %v150_v42, %v104_v43 }
  0x3f   :  { %v158_v45 = vsel %vm154_vm2, %v156_v44, 1e+08  ;;  %v310_v44 = vmul.f32 %v308_v37, %v308_v37  ;;  %vm1014_vm2 = vmand %vm47_vm0, %vm1012_vm1 }
  0x40   :  { %160 = vst [vmem:[#allocation2 + $0x8] sm:$0xff] %v158_v45  ;;  %v172_v48 = vmul.f32 -1.0, %v158_v45  ;;  %v320_v45 = vmul.f32 %v318_v38, %v318_v38 }
  0x47   :  { %v164_v46 = vld [vmem:[#allocation2 + $0x7] sm:$0xff] }
  0x48   :  { %v170_v47 = vmul.f32 -1.0, %v164_v46  ;;  %v328_v46 = vsub.f32 %v1824_v21, %v326_v40 }
  0x4a   :  { %v174_v49 = vmax.f32 %v68_v3, %v170_v47 }
  0x4c   :  { %v176_v50 = vmax.f32 %v174_v49, %v172_v48  ;;  %v322_v49 = vadd.f32 %v320_v45, %v310_v44 }
  0x4e   :  { %v178_v51 = vsub.f32 %v68_v3, %v176_v50  ;;  %v184_v52 = vsub.f32 %v170_v47, %v176_v50  ;;  %v192_v53 = vsub.f32 %v172_v48, %v176_v50  ;;  %v224_v3 = vmul.f32 %v222_v60, %v222_v60  ;;  %v336_v48 = vld [vmem:[#allocation6 + $0x6c] sm:$0xff] }
  0x50   :  { %v180_v54 = vmul.f32 1.442695, %v178_v51  ;;  %v186_v55 = vmul.f32 1.442695, %v184_v52  ;;  %v194_v56 = vmul.f32 1.442695, %v192_v53  ;;  %v226_v7 = vadd.f32 %v224_v3, %v214_v2 }
  0x51   :  { %v338_v51 = vsub.f32 %v1827_v30, %v336_v48 }
  0x52   :  { %1537 = vpow2.f32 %v180_v54  ;;  %v236_v10 = vadd.f32 %v234_v8, %v226_v7  ;;  %v402_v8 = vld [vmem:[#allocation6 + $0xb] sm:$0xff] }
  0x53   :  { %1539 = vpow2.f32 %v186_v55  ;;  %v340_v53 = vmul.f32 %v338_v51, %v338_v51  ;;  %v508_v51 = vld [vmem:[#allocation6 + $0x2a] sm:$0xff] }
  0x54   :  { %1541 = vpow2.f32 %v194_v56  ;;  %v246_v17 = vadd.f32 %v244_v11, %v236_v10  ;;  %v404_v10 = vsub.f32 %v1818_v14, %v402_v8  ;;  %v414_v11 = vsub.f32 %v1820_v16, %v412_v9 }
  0x58   :  { %v1538_v61 = vpop.eup %1537 }
  0x59   :  { %v1540_v63 = vpop.eup %1539 }
  0x5a   :  { %v190_v0 = vadd.f32 %v1540_v63, %v1538_v61  ;;  %v1542_v1 = vpop.eup %1541 }
  0x5c   :  { %v198_v5 = vadd.f32 %v1542_v1, %v190_v0 }
  0x5e   :  { %1543 = vlog2.f32 %v198_v5 }
  0x64   :  { %v1544_v12 = vpop.eup %1543 }
  0x65   :  { %v201_v13 = vmul.f32 0.6931472, %v1544_v12 }
  0x67   :  { %v204_v15 = vadd.f32 %v201_v13, %v176_v50  ;;  %v330_v50 = vmul.f32 %v328_v46, %v328_v46  ;;  %v422_v13 = vld [vmem:[#allocation6 + $0x4b] sm:$0xff] }
  0x69   :  { %v206_v18 = vmul.f32 -1.0, %v204_v15  ;;  %v332_v52 = vadd.f32 %v330_v50, %v322_v49  ;;  %v498_v50 = vld [vmem:[#allocation6 + $0xa] sm:$0xff] }
  0x6b   :  { %v252_v19 = vadd.f32 %v246_v17, %v206_v18  ;;  %v342_v57 = vadd.f32 %v340_v53, %v332_v52  ;;  %v500_v52 = vsub.f32 %v1818_v14, %v498_v50  ;;  %v510_v53 = vsub.f32 %v1820_v16, %v508_v51 }
  0x6d   :  { %v254_v20 = vsel %vm250_vm4, %v252_v19, 1e+08  ;;  %v406_v19 = vmul.f32 %v404_v10, %v404_v10  ;;  %vm1110_vm4 = vmand %vm47_vm0, %vm1108_vm3 }
  0x6e   :  { %256 = vst [vmem:[#allocation2 + $0x20] sm:$0xff] %v254_v20  ;;  %v268_v24 = vmul.f32 -1.0, %v254_v20  ;;  %v416_v20 = vmul.f32 %v414_v11, %v414_v11 }
  0x75   :  { %v260_v22 = vld [vmem:[#allocation2 + $0x1f] sm:$0xff] }
  0x76   :  { %v266_v23 = vmul.f32 -1.0, %v260_v22  ;;  %v424_v22 = vsub.f32 %v1824_v21, %v422_v13 }
  0x78   :  { %v270_v25 = vmax.f32 %v170_v47, %v266_v23 }
  0x7a   :  { %v272_v26 = vmax.f32 %v270_v25, %v268_v24  ;;  %v418_v25 = vadd.f32 %v416_v20, %v406_v19 }
  0x7c   :  { %v274_v27 = vsub.f32 %v170_v47, %v272_v26  ;;  %v280_v28 = vsub.f32 %v266_v23, %v272_v26  ;;  %v288_v29 = vsub.f32 %v268_v24, %v272_v26  ;;  %v432_v24 = vld [vmem:[#allocation6 + $0x6b] sm:$0xff] }
  0x7e   :  { %v276_v31 = vmul.f32 1.442695, %v274_v27  ;;  %v282_v32 = vmul.f32 1.442695, %v280_v28  ;;  %v290_v33 = vmul.f32 1.442695, %v288_v29  ;;  %v434_v27 = vsub.f32 %v1827_v30, %v432_v24 }
  0x80   :  { %1545 = vpow2.f32 %v276_v31  ;;  %v436_v29 = vmul.f32 %v434_v27, %v434_v27  ;;  %v604_v27 = vld [vmem:[#allocation6 + $0x29] sm:$0xff] }
  0x81   :  { %1547 = vpow2.f32 %v282_v32 }
  0x82   :  { %1549 = vpow2.f32 %v290_v33 }
  0x86   :  { %v1546_v39 = vpop.eup %1545 }
  0x87   :  { %v1548_v41 = vpop.eup %1547 }
  0x88   :  { %v286_v42 = vadd.f32 %v1548_v41, %v1546_v39  ;;  %v1550_v43 = vpop.eup %1549 }
  0x8a   :  { %v294_v47 = vadd.f32 %v1550_v43, %v286_v42 }
  0x8c   :  { %1551 = vlog2.f32 %v294_v47 }
  0x92   :  { %v1552_v54 = vpop.eup %1551 }
  0x93   :  { %v297_v55 = vmul.f32 0.6931472, %v1552_v54 }
  0x95   :  { %v300_v56 = vadd.f32 %v297_v55, %v272_v26  ;;  %v426_v26 = vmul.f32 %v424_v22, %v424_v22  ;;  %v518_v55 = vld [vmem:[#allocation6 + $0x4a] sm:$0xff] }
  0x97   :  { %v302_v58 = vmul.f32 -1.0, %v300_v56  ;;  %v428_v28 = vadd.f32 %v426_v26, %v418_v25  ;;  %v594_v26 = vld [vmem:[#allocation6 + $0x9] sm:$0xff] }
  0x99   :  { %v348_v59 = vadd.f32 %v342_v57, %v302_v58  ;;  %v438_v34 = vadd.f32 %v436_v29, %v428_v28  ;;  %v596_v28 = vsub.f32 %v1818_v14, %v594_v26  ;;  %v606_v29 = vsub.f32 %v1820_v16, %v604_v27 }
  0x9b   :  { %v350_v60 = vsel %vm346_vm6, %v348_v59, 1e+08  ;;  %v502_v59 = vmul.f32 %v500_v52, %v500_v52  ;;  %vm1206_vm6 = vmand %vm47_vm0, %vm1204_vm5 }
  0x9c   :  { %352 = vst [vmem:[#allocation2 + $0x8] sm:$0xff] %v350_v60  ;;  %v364_v63 = vmul.f32 -1.0, %v350_v60  ;;  %v512_v60 = vmul.f32 %v510_v53, %v510_v53 }
  0xa3   :  { %v356_v61 = vld [vmem:[#allocation2 + $0x7] sm:$0xff] }
  0xa4   :  { %v362_v62 = vmul.f32 -1.0, %v356_v61  ;;  %v520_v61 = vsub.f32 %v1824_v21, %v518_v55 }
  0xa6   :  { %v366_v0 = vmax.f32 %v266_v23, %v362_v62 }
  0xa8   :  { %v368_v1 = vmax.f32 %v366_v0, %v364_v63  ;;  %v514_v0 = vadd.f32 %v512_v60, %v502_v59 }
  0xaa   :  { %v370_v2 = vsub.f32 %v266_v23, %v368_v1  ;;  %v376_v3 = vsub.f32 %v362_v62, %v368_v1  ;;  %v384_v4 = vsub.f32 %v364_v63, %v368_v1  ;;  %v528_v63 = vld [vmem:[#allocation6 + $0x6a] sm:$0xff] }
  0xac   :  { %v372_v5 = vmul.f32 1.442695, %v370_v2  ;;  %v378_v6 = vmul.f32 1.442695, %v376_v3  ;;  %v386_v7 = vmul.f32 1.442695, %v384_v4  ;;  %v530_v2 = vsub.f32 %v1827_v30, %v528_v63 }
  0xae   :  { %1553 = vpow2.f32 %v372_v5  ;;  %v532_v4 = vmul.f32 %v530_v2, %v530_v2  ;;  %v700_v2 = vld [vmem:[#allocation6 + $0x28] sm:$0xff] }
  0xaf   :  { %1555 = vpow2.f32 %v378_v6 }
  0xb0   :  { %1557 = vpow2.f32 %v386_v7 }
  0xb4   :  { %v1554_v12 = vpop.eup %1553 }
  0xb5   :  { %v1556_v15 = vpop.eup %1555 }
  0xb6   :  { %v382_v17 = vadd.f32 %v1556_v15, %v1554_v12  ;;  %v1558_v18 = vpop.eup %1557 }
  0xb8   :  { %v390_v23 = vadd.f32 %v1558_v18, %v382_v17 }
  0xba   :  { %1559 = vlog2.f32 %v390_v23 }
  0xc0   :  { %v1560_v31 = vpop.eup %1559 }
  0xc1   :  { %v393_v32 = vmul.f32 0.6931472, %v1560_v31 }
  0xc3   :  { %v396_v33 = vadd.f32 %v393_v32, %v368_v1  ;;  %v522_v1 = vmul.f32 %v520_v61, %v520_v61  ;;  %v614_v32 = vld [vmem:[#allocation6 + $0x49] sm:$0xff] }
  0xc5   :  { %v398_v35 = vmul.f32 -1.0, %v396_v33  ;;  %v524_v3 = vadd.f32 %v522_v1, %v514_v0  ;;  %v690_v1 = vld [vmem:[#allocation6 + $0x8] sm:$0xff] }
  0xc7   :  { %v444_v37 = vadd.f32 %v438_v34, %v398_v35  ;;  %v534_v8 = vadd.f32 %v532_v4, %v524_v3  ;;  %v692_v3 = vsub.f32 %v1818_v14, %v690_v1  ;;  %v702_v4 = vsub.f32 %v1820_v16, %v700_v2 }
  0xc9   :  { %v446_v38 = vsel %vm442_vm8, %v444_v37, 1e+08  ;;  %v598_v37 = vmul.f32 %v596_v28, %v596_v28  ;;  %vm1302_vm8 = vmand %vm47_vm0, %vm1300_vm7 }
  0xca   :  { %448 = vst [vmem:[#allocation2 + $0x20] sm:$0xff] %v446_v38  ;;  %v460_v41 = vmul.f32 -1.0, %v446_v38  ;;  %v608_v38 = vmul.f32 %v606_v29, %v606_v29 }
  0xd1   :  { %v452_v39 = vld [vmem:[#allocation2 + $0x1f] sm:$0xff] }
  0xd2   :  { %v458_v40 = vmul.f32 -1.0, %v452_v39  ;;  %v616_v39 = vsub.f32 %v1824_v21, %v614_v32 }
  0xd4   :  { %v462_v42 = vmax.f32 %v362_v62, %v458_v40 }
  0xd6   :  { %v464_v43 = vmax.f32 %v462_v42, %v460_v41  ;;  %v610_v42 = vadd.f32 %v608_v38, %v598_v37 }
  0xd8   :  { %v466_v44 = vsub.f32 %v362_v62, %v464_v43  ;;  %v472_v45 = vsub.f32 %v458_v40, %v464_v43  ;;  %v480_v46 = vsub.f32 %v460_v41, %v464_v43  ;;  %v624_v41 = vld [vmem:[#allocation6 + $0x69] sm:$0xff] }
  0xda   :  { %v468_v47 = vmul.f32 1.442695, %v466_v44  ;;  %v474_v48 = vmul.f32 1.442695, %v472_v45  ;;  %v482_v49 = vmul.f32 1.442695, %v480_v46  ;;  %v626_v44 = vsub.f32 %v1827_v30, %v624_v41 }
  0xdc   :  { %1561 = vpow2.f32 %v468_v47  ;;  %v628_v46 = vmul.f32 %v626_v44, %v626_v44 }
  0xdd   :  { %1563 = vpow2.f32 %v474_v48 }
  0xde   :  { %1565 = vpow2.f32 %v482_v49 }
  0xe2   :  { %v1562_v54 = vpop.eup %1561 }
  0xe3   :  { %v1564_v56 = vpop.eup %1563 }
  0xe4   :  { %v478_v57 = vadd.f32 %v1564_v56, %v1562_v54  ;;  %v1566_v58 = vpop.eup %1565 }
  0xe6   :  { %v486_v62 = vadd.f32 %v1566_v58, %v478_v57 }
  0xe8   :  { %1567 = vlog2.f32 %v486_v62 }
  0xee   :  { %v1568_v5 = vpop.eup %1567 }
  0xef   :  { %v489_v6 = vmul.f32 0.6931472, %v1568_v5 }
  0xf1   :  { %v492_v7 = vadd.f32 %v489_v6, %v464_v43  ;;  %v618_v43 = vmul.f32 %v616_v39, %v616_v39  ;;  %v710_v6 = vld [vmem:[#allocation6 + $0x48] sm:$0xff] }
  0xf3   :  { %v494_v9 = vmul.f32 -1.0, %v492_v7  ;;  %v620_v45 = vadd.f32 %v618_v43, %v610_v42 }
  0xf5   :  { %v540_v10 = vadd.f32 %v534_v8, %v494_v9  ;;  %v630_v50 = vadd.f32 %v628_v46, %v620_v45 }
  0xf7   :  { %v542_v11 = vsel %vm538_vm10, %v540_v10, 1e+08  ;;  %v694_v10 = vmul.f32 %v692_v3, %v692_v3  ;;  %vm1398_vm10 = vmand %vm47_vm0, %vm1396_vm9 }
  0xf8   :  { %544 = vst [vmem:[#allocation2 + $0x8] sm:$0xff] %v542_v11  ;;  %v556_v15 = vmul.f32 -1.0, %v542_v11  ;;  %v704_v11 = vmul.f32 %v702_v4, %v702_v4 }
  0xff   :  { %v548_v12 = vld [vmem:[#allocation2 + $0x7] sm:$0xff] }
 0x100   :  { %v554_v13 = vmul.f32 -1.0, %v548_v12  ;;  %v712_v12 = vsub.f32 %v1824_v21, %v710_v6 }
 0x102   :  { %v558_v17 = vmax.f32 %v458_v40, %v554_v13 }
 0x104   :  { %v560_v18 = vmax.f32 %v558_v17, %v556_v15  ;;  %v706_v17 = vadd.f32 %v704_v11, %v694_v10  ;;  %v1904_v10 = vld [vmem:[#allocation3 + $0x28] sm:$0xff] }
 0x105   :  { %v807_v11 = vld [vmem:[#allocation6 + $0x4f] sm:$0xff] }
 0x106   :  { %v562_v19 = vsub.f32 %v458_v40, %v560_v18  ;;  %v568_v20 = vsub.f32 %v554_v13, %v560_v18  ;;  %v576_v22 = vsub.f32 %v556_v15, %v560_v18  ;;  %v720_v15 = vld [vmem:[#allocation6 + $0x68] sm:$0xff] }
 0x108   :  { %v564_v23 = vmul.f32 1.442695, %v562_v19  ;;  %v570_v24 = vmul.f32 1.442695, %v568_v20  ;;  %v578_v25 = vmul.f32 1.442695, %v576_v22  ;;  %v722_v19 = vsub.f32 %v1827_v30, %v720_v15 }
 0x109   :  { %v816_v15 = vld [vmem:[#allocation6 + $0x67] sm:$0xff] }
 0x10a   :  { %1569 = vpow2.f32 %v564_v23  ;;  %v724_v22 = vmul.f32 %v722_v19, %v722_v19 }
 0x10b   :  { %1571 = vpow2.f32 %v570_v24 }
 0x10c   :  { %1573 = vpow2.f32 %v578_v25 }
 0x110   :  { %v1570_v31 = vpop.eup %1569 }
 0x111   :  { %v1572_v33 = vpop.eup %1571 }
 0x112   :  { %v574_v34 = vadd.f32 %v1572_v33, %v1570_v31  ;;  %v1574_v35 = vpop.eup %1573 }
 0x114   :  { %v582_v40 = vadd.f32 %v1574_v35, %v574_v34 }
 0x116   :  { %1575 = vlog2.f32 %v582_v40 }
 0x11c   :  { %v1576_v47 = vpop.eup %1575 }
 0x11d   :  { %v585_v48 = vmul.f32 0.6931472, %v1576_v47 }
 0x11f   :  { %v588_v49 = vadd.f32 %v585_v48, %v560_v18  ;;  %v714_v18 = vmul.f32 %v712_v12, %v712_v12 }
 0x121   :  { %v590_v51 = vmul.f32 -1.0, %v588_v49  ;;  %v716_v20 = vadd.f32 %v714_v18, %v706_v17 }
 0x123   :  { %v636_v52 = vadd.f32 %v630_v50, %v590_v51  ;;  %v726_v26 = vadd.f32 %v724_v22, %v716_v20  ;;  %v809_v22 = vsub.f32 %v1904_v10, %v807_v11 }
 0x125   :  { %v638_v53 = vsel %vm634_vm12, %v636_v52, 1e+08 }
 0x126   :  { %640 = vst [vmem:[#allocation2 + $0x20] sm:$0xff] %v638_v53  ;;  %v652_v56 = vmul.f32 -1.0, %v638_v53 }
 0x12d   :  { %v644_v54 = vld [vmem:[#allocation2 + $0x1f] sm:$0xff]  ;;  %v743_v31 = vld [vmem:[#allocation2 + $0x27] sm:$0xff] }
 0x12e   :  { %v650_v55 = vmul.f32 -1.0, %v644_v54  ;;  %v745_v35 = vmul.f32 -1.0, %v743_v31  ;;  %v786_v54 = vld [vmem:[#allocation6 + $0x7] sm:$0xff]  ;;  %v811_v31 = vmul.f32 %v809_v22, %v809_v22 }
 0x12f   :  { %v889_v22 = vld [vmem:[#allocation6 + $0x2e] sm:$0xff] }
 0x130   :  { %v654_v57 = vmax.f32 %v554_v13, %v650_v55 }
 0x132   :  { %v656_v58 = vmax.f32 %v654_v57, %v652_v56  ;;  %v1895_v57 = vld [vmem:[#allocation3 + $0x8] sm:$0xff] }
 0x134   :  { %v658_v59 = vsub.f32 %v554_v13, %v656_v58  ;;  %v664_v60 = vsub.f32 %v650_v55, %v656_v58  ;;  %v672_v61 = vsub.f32 %v652_v56, %v656_v58 }
 0x136   :  { %v660_v62 = vmul.f32 1.442695, %v658_v59  ;;  %v666_v63 = vmul.f32 1.442695, %v664_v60  ;;  %v674_v0 = vmul.f32 1.442695, %v672_v61 }
 0x137   :  { %v787_v60 = vld [vmem:[#allocation6 + $0xf] sm:$0xff]  ;;  %v1899_v61 = vld [vmem:[#allocation3 + $0x18] sm:$0xff] }
 0x138   :  { %1577 = vpow2.f32 %v660_v62  ;;  %v797_v62 = vld [vmem:[#allocation6 + $0x2f] sm:$0xff]  ;;  %v789_v4 = vsub.f32 %v1895_v57, %v787_v60 }
 0x139   :  { %1579 = vpow2.f32 %v666_v63 }
 0x13a   :  { %1581 = vpow2.f32 %v674_v0  ;;  %v806_v0 = vld [vmem:[#allocation6 + $0x47] sm:$0xff]  ;;  %v791_v19 = vmul.f32 %v789_v4, %v789_v4 }
 0x13e   :  { %v1578_v5 = vpop.eup %1577 }
 0x13f   :  { %v1580_v7 = vpop.eup %1579 }
 0x140   :  { %v670_v8 = vadd.f32 %v1580_v7, %v1578_v5  ;;  %v1582_v9 = vpop.eup %1581  ;;  %v799_v5 = vsub.f32 %v1899_v61, %v797_v62 }
 0x142   :  { %v678_v13 = vadd.f32 %v1582_v9, %v670_v8  ;;  %v808_v9 = vsub.f32 %v1824_v21, %v806_v0  ;;  %v801_v20 = vmul.f32 %v799_v5, %v799_v5 }
 0x144   :  { %1583 = vlog2.f32 %v678_v13 }
 0x14a   :  { %v1584_v23 = vpop.eup %1583 }
 0x14b   :  { %v681_v24 = vmul.f32 0.6931472, %v1584_v23 }
 0x14d   :  { %v684_v25 = vadd.f32 %v681_v24, %v656_v58  ;;  %v788_v58 = vsub.f32 %v1818_v14, %v786_v54  ;;  %v810_v24 = vmul.f32 %v808_v9, %v808_v9 }
 0x14f   :  { %v686_v27 = vmul.f32 -1.0, %v684_v25  ;;  %v790_v7 = vmul.f32 %v788_v58, %v788_v58  ;;  %v818_v25 = vsub.f32 %v1827_v30, %v816_v15  ;;  %v878_v15 = vld [vmem:[#allocation6 + $0x6] sm:$0xff] }
 0x151   :  { %v732_v28 = vadd.f32 %v726_v26, %v686_v27  ;;  %v1908_v27 = vld [vmem:[#allocation3 + $0x38] sm:$0xff] }
 0x153   :  { %v734_v29 = vsel %vm47_vm0, %v732_v28, 1e+08  ;;  %v817_v28 = vld [vmem:[#allocation6 + $0x6f] sm:$0xff] }
 0x154   :  { %736 = vst [vmem:[#allocation2 + $0x8] sm:$0xff] %v734_v29  ;;  %v748_v38 = vmul.f32 -1.0, %v734_v29  ;;  %v803_v29 = vadd.f32 %v801_v20, %v791_v19  ;;  %v880_v19 = vsub.f32 %v1818_v14, %v878_v15 }
 0x15b   :  { %v740_v32 = vld [vmem:[#allocation2 + $0x7] sm:$0xff]  ;;  %v741_v33 = vld [vmem:[#allocation2 + $0xf] sm:$0xff] }
 0x15c   :  { %v1877_v34 = vmul.f32 -1.0, %v740_v32  ;;  %v1879_v37 = vmul.f32 -1.0, %v741_v33  ;;  %v819_v32 = vsub.f32 %v1908_v27, %v817_v28 }
 0x15e   :  { %v750_v39 = vmax.f32 %v650_v55, %v1877_v34  ;;  %v751_v40 = vmax.f32 %v745_v35, %v1879_v37 }
 0x160   :  { %v1883_v41 = vmax.f32 %v750_v39, %v748_v38  ;;  %v1885_v42 = vmax.f32 %v751_v40, -1e+08  ;;  %v813_v40 = vadd.f32 %v811_v31, %v803_v29  ;;  %v891_v31 = vsub.f32 %v1899_v61, %v889_v22 }
 0x162   :  { %v754_v43 = vsub.f32 %v650_v55, %v1883_v41  ;;  %v760_v44 = vsub.f32 %v1877_v34, %v1883_v41  ;;  %v768_v45 = vsub.f32 %v748_v38, %v1883_v41  ;;  %v755_v46 = vsub.f32 %v745_v35, %v1885_v42  ;;  %v796_v55 = vld [vmem:[#allocation6 + $0x27] sm:$0xff] }
 0x163   :  { %v761_v47 = vsub.f32 %v1879_v37, %v1885_v42  ;;  %v769_v51 = vsub.f32 -1e+08, %v1885_v42  ;;  %v798_v59 = vsub.f32 %v1820_v16, %v796_v55  ;;  %v820_v35 = vmul.f32 %v818_v25, %v818_v25 }
 0x164   :  { %v756_v48 = vmul.f32 1.442695, %v754_v43  ;;  %v762_v49 = vmul.f32 1.442695, %v760_v44  ;;  %v770_v50 = vmul.f32 1.442695, %v768_v45  ;;  %v821_v43 = vmul.f32 %v819_v32, %v819_v32 }
 0x165   :  { %v758_v52 = vmul.f32 1.442695, %v755_v46  ;;  %v764_v53 = vmul.f32 1.442695, %v761_v47  ;;  %v772_v56 = vmul.f32 1.442695, %v769_v51  ;;  %v800_v8 = vmul.f32 %v798_v59, %v798_v59 }
 0x166   :  { %1585 = vpow2.f32 %v756_v48  ;;  %v823_v51 = vadd.f32 %v821_v43, %v813_v40 }
 0x167   :  { %1587 = vpow2.f32 %v762_v49  ;;  %v802_v23 = vadd.f32 %v800_v8, %v790_v7  ;;  %v1913_v49 = vadd.s32 8, %v1830_v36 }
 0x168   :  { %1589 = vpow2.f32 %v770_v50 }
 0x169   :  { %1591 = vpow2.f32 %v758_v52  ;;  %v812_v33 = vadd.f32 %v810_v24, %v802_v23  ;;  %vm50_vm13 = vcmp.le.s32.totalorder %v1913_v49, 8  ;;  %v898_v24 = vld [vmem:[#allocation6 + $0x46] sm:$0xff] }
 0x16a   :  { %1593 = vpow2.f32 %v764_v53 }
 0x16b   :  { %1595 = vpow2.f32 %v772_v56  ;;  %v822_v46 = vadd.f32 %v820_v35, %v812_v33  ;;  %v882_v33 = vmul.f32 %v880_v19, %v880_v19 }
 0x16c   :  { %v1586_v63 = vpop.eup %1585 }
 0x16d   :  { %v1588_v1 = vpop.eup %1587 }
 0x16e   :  { %v1590_v2 = vpop.eup %1589  ;;  %v766_v3 = vadd.f32 %v1588_v1, %v1586_v63 }
 0x16f   :  { %v1592_v6 = vpop.eup %1591 }
 0x170   :  { %v1594_v12 = vpop.eup %1593  ;;  %v774_v13 = vadd.f32 %v1590_v2, %v766_v3 }
 0x171   :  { %v767_v17 = vadd.f32 %v1594_v12, %v1592_v6  ;;  %v1596_v18 = vpop.eup %1595 }
 0x172   :  { %1597 = vlog2.f32 %v774_v13 }
 0x173   :  { %v775_v26 = vadd.f32 %v1596_v18, %v767_v17  ;;  %v888_v17 = vld [vmem:[#allocation6 + $0x26] sm:$0xff] }
 0x174   :  { %v890_v20 = vsub.f32 %v1820_v16, %v888_v17 }
 0x175   :  { %1599 = vlog2.f32 %v775_v26 }
 0x176   :  { %v892_v35 = vmul.f32 %v890_v20, %v890_v20 }
 0x178   :  { %v1598_v38 = vpop.eup %1597 }
 0x179   :  { %v777_v39 = vmul.f32 0.6931472, %v1598_v38  ;;  %v900_v38 = vsub.f32 %v1824_v21, %v898_v24 }
 0x17b   :  { %v1600_v44 = vpop.eup %1599  ;;  %v780_v45 = vadd.f32 %v777_v39, %v1883_v41  ;;  %v899_v39 = vld [vmem:[#allocation6 + $0x4e] sm:$0xff] }
 0x17c   :  { %v779_v47 = vmul.f32 0.6931472, %v1600_v44  ;;  %v908_v44 = vld [vmem:[#allocation6 + $0x66] sm:$0xff] }
 0x17d   :  { %v782_v48 = vmul.f32 -1.0, %v780_v45 }
 0x17e   :  { %v781_v50 = vadd.f32 %v779_v47, %v1885_v42 }
 0x17f   :  { %v824_v52 = vadd.f32 %v822_v46, %v782_v48  ;;  %v893_v48 = vmul.f32 %v891_v31, %v891_v31 }
 0x180   :  { %v783_v53 = vmul.f32 -1.0, %v781_v50  ;;  %v901_v50 = vsub.f32 %v1904_v10, %v899_v39 }
 0x181   :  { %v826_v54 = vsel %vm47_vm0, %v824_v52, 1e+08  ;;  %v902_v52 = vmul.f32 %v900_v38, %v900_v38 }
 0x182   :  { %828 = vst [vmem:[#allocation2 + $0x20] sm:$0xff] %v826_v54  ;;  %v825_v55 = vadd.f32 %v823_v51, %v783_v53  ;;  %v840_v59 = vmul.f32 -1.0, %v826_v54  ;;  %v894_v51 = vadd.f32 %v892_v35, %v882_v33  ;;  %v910_v53 = vsub.f32 %v1827_v30, %v908_v44 }
 0x183   :  { %v903_v21 = vmul.f32 %v901_v50, %v901_v50  ;;  %v994_v50 = vld [vmem:[#allocation6 + $0x45] sm:$0xff] }
 0x184   :  { %v827_v41 = vsel %vm50_vm13, %v825_v55, 1e+08  ;;  %v909_v55 = vld [vmem:[#allocation6 + $0x6e] sm:$0xff] }
 0x185   :  { %829 = vst [vmem:[#allocation2 + $0x28] sm:$0xff] %v827_v41  ;;  %v841_v0 = vmul.f32 -1.0, %v827_v41 }
 0x189   :  { %v832_v56 = vld [vmem:[#allocation2 + $0x1f] sm:$0xff] }
 0x18a   :  { %v1921_v58 = vmul.f32 -1.0, %v832_v56  ;;  %v911_v56 = vsub.f32 %v1908_v27, %v909_v55 }
 0x18c   :  { %v842_v42 = vmax.f32 %v1877_v34, %v1921_v58  ;;  %v833_v60 = vld [vmem:[#allocation2 + $0x27] sm:$0xff] }
 0x18d   :  { %v1925_v62 = vmul.f32 -1.0, %v833_v60 }
 0x18e   :  { %v1927_v63 = vmax.f32 %v842_v42, %v840_v59  ;;  %v912_v42 = vmul.f32 %v910_v53, %v910_v53 }
 0x18f   :  { %v843_v1 = vmax.f32 %v1879_v37, %v1925_v62 }
 0x190   :  { %v846_v2 = vsub.f32 %v1877_v34, %v1927_v63  ;;  %v852_v3 = vsub.f32 %v1921_v58, %v1927_v63  ;;  %v860_v4 = vsub.f32 %v840_v59, %v1927_v63  ;;  %v904_v59 = vadd.f32 %v902_v52, %v894_v51 }
 0x191   :  { %v1936_v5 = vmax.f32 %v843_v1, %v841_v0 }
 0x192   :  { %v848_v6 = vmul.f32 1.442695, %v846_v2  ;;  %v854_v7 = vmul.f32 1.442695, %v852_v3  ;;  %v862_v8 = vmul.f32 1.442695, %v860_v4  ;;  %v913_v2 = vmul.f32 %v911_v56, %v911_v56 }
 0x193   :  { %v847_v9 = vsub.f32 %v1879_v37, %v1936_v5  ;;  %v853_v11 = vsub.f32 %v1925_v62, %v1936_v5  ;;  %v861_v12 = vsub.f32 %v841_v0, %v1936_v5  ;;  %v879_v37 = vld [vmem:[#allocation6 + $0xe] sm:$0xff] }
 0x194   :  { %1601 = vpow2.f32 %v848_v6  ;;  %v881_v29 = vsub.f32 %v1895_v57, %v879_v37  ;;  %v914_v6 = vadd.f32 %v912_v42, %v904_v59  ;;  %v1705_v59 = vld [vmem:[#allocation3 + $0x20] sm:$0xff] }
 0x195   :  { %1603 = vpow2.f32 %v854_v7  ;;  %v850_v34 = vmul.f32 1.442695, %v847_v9  ;;  %v856_v13 = vmul.f32 1.442695, %v853_v11  ;;  %v864_v18 = vmul.f32 1.442695, %v861_v12 }
 0x196   :  { %1605 = vpow2.f32 %v862_v8  ;;  %v883_v47 = vmul.f32 %v881_v29, %v881_v29  ;;  %v996_v42 = vsub.f32 %v1705_v59, %v994_v50 }
 0x197   :  { %1607 = vpow2.f32 %v850_v34 }
 0x198   :  { %1609 = vpow2.f32 %v856_v13  ;;  %v895_v41 = vadd.f32 %v893_v48, %v883_v47  ;;  %v985_v47 = vld [vmem:[#allocation6 + $0x2d] sm:$0xff] }
 0x199   :  { %1611 = vpow2.f32 %v864_v18  ;;  %v987_v55 = vsub.f32 %v1899_v61, %v985_v47 }
 0x19a   :  { %v1602_v23 = vpop.eup %1601  ;;  %v905_v1 = vadd.f32 %v903_v21, %v895_v41 }
 0x19b   :  { %v1604_v25 = vpop.eup %1603 }
 0x19c   :  { %v1606_v26 = vpop.eup %1605  ;;  %v858_v28 = vadd.f32 %v1604_v25, %v1602_v23  ;;  %v915_v9 = vadd.f32 %v913_v2, %v905_v1 }
 0x19d   :  { %v1608_v32 = vpop.eup %1607 }
 0x19e   :  { %v1610_v40 = vpop.eup %1609  ;;  %v866_v43 = vadd.f32 %v1606_v26, %v858_v28 }
 0x19f   :  { %v859_v45 = vadd.f32 %v1610_v40, %v1608_v32  ;;  %v1612_v46 = vpop.eup %1611  ;;  %v974_v40 = vld [vmem:[#allocation6 + $0x5] sm:$0xff] }
 0x1a0   :  { %1613 = vlog2.f32 %v866_v43  ;;  %v984_v43 = vld [vmem:[#allocation6 + $0x25] sm:$0xff] }
 0x1a1   :  { %v867_v54 = vadd.f32 %v1612_v46, %v859_v45  ;;  %v976_v45 = vsub.f32 %v1818_v14, %v974_v40  ;;  %v986_v46 = vsub.f32 %v1820_v16, %v984_v43  ;;  %v995_v14 = vld [vmem:[#allocation6 + $0x4d] sm:$0xff] }
 0x1a3   :  { %1615 = vlog2.f32 %v867_v54  ;;  %v978_v21 = vmul.f32 %v976_v45, %v976_v45  ;;  %v988_v56 = vmul.f32 %v986_v46, %v986_v46 }
 0x1a6   :  { %v1614_v60 = vpop.eup %1613 }
 0x1a7   :  { %v869_v0 = vmul.f32 0.6931472, %v1614_v60 }
 0x1a9   :  { %v1616_v3 = vpop.eup %1615  ;;  %v872_v4 = vadd.f32 %v869_v0, %v1927_v63  ;;  %v1004_v0 = vld [vmem:[#allocation6 + $0x65] sm:$0xff] }
 0x1aa   :  { %v871_v30 = vmul.f32 0.6931472, %v1616_v3 }
 0x1ab   :  { %v874_v7 = vmul.f32 -1.0, %v872_v4  ;;  %v989_v4 = vmul.f32 %v987_v55, %v987_v55 }
 0x1ac   :  { %v873_v8 = vadd.f32 %v871_v30, %v1936_v5  ;;  %v990_v30 = vadd.f32 %v988_v56, %v978_v21 }
 0x1ad   :  { %v920_v11 = vadd.f32 %v914_v6, %v874_v7  ;;  %v997_v6 = vsub.f32 %v1904_v10, %v995_v14  ;;  %v998_v7 = vmul.f32 %v996_v42, %v996_v42 }
 0x1ae   :  { %v875_v12 = vmul.f32 -1.0, %v873_v8  ;;  %v1706_v8 = vld [vmem:[#allocation3 + $0x30] sm:$0xff] }
 0x1af   :  { %v922_v34 = vsel %vm918_vm15, %v920_v11, 1e+08 }
 0x1b0   :  { %924 = vst [vmem:[#allocation2 + $0x8] sm:$0xff] %v922_v34  ;;  %v921_v13 = vadd.f32 %v915_v9, %v875_v12  ;;  %v936_v18 = vmul.f32 -1.0, %v922_v34  ;;  %v1006_v9 = vsub.f32 %v1706_v8, %v1004_v0  ;;  %v1005_v12 = vld [vmem:[#allocation6 + $0x6d] sm:$0xff]  ;;  %v1080_v0 = vld [vmem:[#allocation6 + $0x24] sm:$0xff] }
 0x1b2   :  { %v923_v15 = vsel %vm50_vm13, %v921_v13, 1e+08  ;;  %v999_v13 = vmul.f32 %v997_v6, %v997_v6 }
 0x1b3   :  { %925 = vst [vmem:[#allocation2 + $0x10] sm:$0xff] %v923_v15  ;;  %v937_v22 = vmul.f32 -1.0, %v923_v15  ;;  %v1007_v15 = vsub.f32 %v1908_v27, %v1005_v12 }
 0x1b7   :  { %v928_v63 = vld [vmem:[#allocation2 + $0x7] sm:$0xff] }
 0x1b8   :  { %v1958_v17 = vmul.f32 -1.0, %v928_v63  ;;  %v1000_v63 = vadd.f32 %v998_v7, %v990_v30  ;;  %v2021_v30 = vld [vmem:[#allocation3 + $0x20] sm:$0xff] }
 0x1b9   :  { %v1090_v7 = vld [vmem:[#allocation6 + $0x44] sm:$0xff] }
 0x1ba   :  { %v938_v19 = vmax.f32 %v1921_v58, %v1958_v17  ;;  %v929_v20 = vld [vmem:[#allocation2 + $0xf] sm:$0xff] }
 0x1bb   :  { %v1962_v37 = vmul.f32 -1.0, %v929_v20 }
 0x1bc   :  { %v1964_v5 = vmax.f32 %v938_v19, %v936_v18 }
 0x1bd   :  { %v939_v23 = vmax.f32 %v1925_v62, %v1962_v37 }
 0x1be   :  { %v942_v24 = vsub.f32 %v1921_v58, %v1964_v5  ;;  %v948_v25 = vsub.f32 %v1958_v17, %v1964_v5  ;;  %v956_v26 = vsub.f32 %v936_v18, %v1964_v5  ;;  %v1008_v18 = vmul.f32 %v1006_v9, %v1006_v9 }
 0x1bf   :  { %v1973_v28 = vmax.f32 %v939_v23, %v937_v22  ;;  %v1009_v23 = vmul.f32 %v1007_v15, %v1007_v15 }
 0x1c0   :  { %v944_v29 = vmul.f32 1.442695, %v942_v24  ;;  %v950_v31 = vmul.f32 1.442695, %v948_v25  ;;  %v958_v32 = vmul.f32 1.442695, %v956_v26  ;;  %v1010_v26 = vadd.f32 %v1008_v18, %v1000_v63 }
 0x1c1   :  { %v943_v33 = vsub.f32 %v1925_v62, %v1973_v28  ;;  %v949_v35 = vsub.f32 %v1962_v37, %v1973_v28  ;;  %v957_v38 = vsub.f32 %v937_v22, %v1973_v28  ;;  %v975_v62 = vld [vmem:[#allocation6 + $0xd] sm:$0xff]  ;;  %v1092_v18 = vsub.f32 %v2021_v30, %v1090_v7 }
 0x1c2   :  { %1617 = vpow2.f32 %v944_v29  ;;  %v977_v54 = vsub.f32 %v1895_v57, %v975_v62 }
 0x1c3   :  { %1619 = vpow2.f32 %v950_v31  ;;  %v946_v58 = vmul.f32 1.442695, %v943_v33  ;;  %v952_v39 = vmul.f32 1.442695, %v949_v35  ;;  %v960_v44 = vmul.f32 1.442695, %v957_v38 }
 0x1c4   :  { %1621 = vpow2.f32 %v958_v32  ;;  %v979_v3 = vmul.f32 %v977_v54, %v977_v54 }
 0x1c5   :  { %1623 = vpow2.f32 %v946_v58 }
 0x1c6   :  { %1625 = vpow2.f32 %v952_v39  ;;  %v991_v34 = vadd.f32 %v989_v4, %v979_v3  ;;  %v1071_v3 = vld [vmem:[#allocation6 + $0xc] sm:$0xff] }
 0x1c7   :  { %1627 = vpow2.f32 %v960_v44  ;;  %v1081_v4 = vld [vmem:[#allocation6 + $0x2c] sm:$0xff]  ;;  %v1073_v12 = vsub.f32 %v1895_v57, %v1071_v3 }
 0x1c8   :  { %v1618_v48 = vpop.eup %1617  ;;  %v1001_v22 = vadd.f32 %v999_v13, %v991_v34  ;;  %v1083_v34 = vsub.f32 %v1899_v61, %v1081_v4 }
 0x1c9   :  { %v1620_v51 = vpop.eup %1619 }
 0x1ca   :  { %v1622_v52 = vpop.eup %1621  ;;  %v954_v53 = vadd.f32 %v1620_v51, %v1618_v48  ;;  %v1011_v33 = vadd.f32 %v1009_v23, %v1001_v22  ;;  %v2026_v23 = vld [vmem:[#allocation3 + $0x30] sm:$0xff] }
 0x1cb   :  { %v1624_v41 = vpop.eup %1623 }
 0x1cc   :  { %v1626_v60 = vpop.eup %1625  ;;  %v962_v16 = vadd.f32 %v1622_v52, %v954_v53 }
 0x1cd   :  { %v955_v1 = vadd.f32 %v1626_v60, %v1624_v41  ;;  %v1628_v2 = vpop.eup %1627  ;;  %v1070_v60 = vld [vmem:[#allocation6 + $0x4] sm:$0xff] }
 0x1ce   :  { %1629 = vlog2.f32 %v962_v16  ;;  %v2017_v16 = vld [vmem:[#allocation3 + $0x10] sm:$0xff] }
 0x1cf   :  { %v963_v11 = vadd.f32 %v1628_v2, %v955_v1  ;;  %v1082_v2 = vsub.f32 %v2017_v16, %v1080_v0 }
 0x1d1   :  { %1631 = vlog2.f32 %v963_v11  ;;  %v1084_v63 = vmul.f32 %v1082_v2, %v1082_v2 }
 0x1d4   :  { %v1630_v19 = vpop.eup %1629 }
 0x1d5   :  { %v965_v20 = vmul.f32 0.6931472, %v1630_v19  ;;  %v1091_v19 = vld [vmem:[#allocation6 + $0x4c] sm:$0xff] }
 0x1d7   :  { %v1632_v24 = vpop.eup %1631  ;;  %v968_v25 = vadd.f32 %v965_v20, %v1964_v5 }
 0x1d8   :  { %v967_v29 = vmul.f32 0.6931472, %v1632_v24  ;;  %v1100_v24 = vld [vmem:[#allocation6 + $0x64] sm:$0xff] }
 0x1d9   :  { %v970_v31 = vmul.f32 -1.0, %v968_v25 }
 0x1da   :  { %v969_v32 = vadd.f32 %v967_v29, %v1973_v28  ;;  %v1075_v29 = vmul.f32 %v1073_v12, %v1073_v12 }
 0x1db   :  { %v1016_v35 = vadd.f32 %v1010_v26, %v970_v31  ;;  %v1085_v31 = vmul.f32 %v1083_v34, %v1083_v34 }
 0x1dc   :  { %v971_v38 = vmul.f32 -1.0, %v969_v32  ;;  %v1093_v32 = vsub.f32 %v1904_v10, %v1091_v19 }
 0x1dd   :  { %v1018_v58 = vsel %vm1014_vm2, %v1016_v35, 1e+08  ;;  %v1094_v35 = vmul.f32 %v1092_v18, %v1092_v18 }
 0x1de   :  { %1020 = vst [vmem:[#allocation2 + $0x20] sm:$0xff] %v1018_v58  ;;  %v1017_v39 = vadd.f32 %v1011_v33, %v971_v38  ;;  %v1032_v44 = vmul.f32 -1.0, %v1018_v58  ;;  %v1102_v38 = vsub.f32 %v2026_v23, %v1100_v24  ;;  %v1166_v24 = vld [vmem:[#allocation6 + $0x3] sm:$0xff] }
 0x1e0   :  { %v1019_v40 = vsel %vm50_vm13, %v1017_v39, 1e+08  ;;  %v1101_v39 = vld [vmem:[#allocation6 + $0x6c] sm:$0xff] }
 0x1e1   :  { %1021 = vst [vmem:[#allocation2 + $0x28] sm:$0xff] %v1019_v40  ;;  %v1033_v47 = vmul.f32 -1.0, %v1019_v40  ;;  %v1087_v40 = vadd.f32 %v1085_v31, %v1075_v29 }
 0x1e5   :  { %v1024_v5 = vld [vmem:[#allocation2 + $0x1f] sm:$0xff] }
 0x1e6   :  { %v1993_v43 = vmul.f32 -1.0, %v1024_v5  ;;  %v1095_v5 = vmul.f32 %v1093_v32, %v1093_v32  ;;  %v1177_v32 = vld [vmem:[#allocation6 + $0x2b] sm:$0xff] }
 0x1e8   :  { %v1034_v45 = vmax.f32 %v1958_v17, %v1993_v43  ;;  %v1025_v46 = vld [vmem:[#allocation2 + $0x27] sm:$0xff] }
 0x1e9   :  { %v1997_v62 = vmul.f32 -1.0, %v1025_v46  ;;  %v1104_v46 = vmul.f32 %v1102_v38, %v1102_v38 }
 0x1ea   :  { %v1999_v28 = vmax.f32 %v1034_v45, %v1032_v44 }
 0x1eb   :  { %v1035_v48 = vmax.f32 %v1962_v37, %v1997_v62 }
 0x1ec   :  { %v1038_v50 = vsub.f32 %v1958_v17, %v1999_v28  ;;  %v1044_v51 = vsub.f32 %v1993_v43, %v1999_v28  ;;  %v1052_v52 = vsub.f32 %v1032_v44, %v1999_v28  ;;  %v2015_v17 = vld [vmem:[#allocation3] sm:$0xff]  ;;  %v1103_v44 = vsub.f32 %v1908_v27, %v1101_v39 }
 0x1ed   :  { %v2008_v53 = vmax.f32 %v1035_v48, %v1033_v47  ;;  %v1168_v29 = vsub.f32 %v2015_v17, %v1166_v24 }
 0x1ee   :  { %v1040_v54 = vmul.f32 1.442695, %v1038_v50  ;;  %v1046_v55 = vmul.f32 1.442695, %v1044_v51  ;;  %v1054_v41 = vmul.f32 1.442695, %v1052_v52  ;;  %v1097_v50 = vadd.f32 %v1095_v5, %v1087_v40 }
 0x1ef   :  { %v1039_v21 = vsub.f32 %v1962_v37, %v2008_v53  ;;  %v1045_v56 = vsub.f32 %v1997_v62, %v2008_v53  ;;  %v1053_v59 = vsub.f32 %v1033_v47, %v2008_v53  ;;  %v1072_v37 = vsub.f32 %v2015_v17, %v1070_v60 }
 0x1f0   :  { %1633 = vpow2.f32 %v1040_v54  ;;  %v1105_v51 = vmul.f32 %v1103_v44, %v1103_v44  ;;  %v1179_v5 = vsub.f32 %v1899_v61, %v1177_v32 }
 0x1f1   :  { %1635 = vpow2.f32 %v1046_v55  ;;  %v1042_v42 = vmul.f32 1.442695, %v1039_v21  ;;  %v1048_v14 = vmul.f32 1.442695, %v1045_v56  ;;  %v1056_v1 = vmul.f32 1.442695, %v1053_v59 }
 0x1f2   :  { %1637 = vpow2.f32 %v1054_v41  ;;  %v1074_v15 = vmul.f32 %v1072_v37, %v1072_v37  ;;  %v1107_v59 = vadd.f32 %v1105_v51, %v1097_v50 }
 0x1f3   :  { %1639 = vpow2.f32 %v1042_v42 }
 0x1f4   :  { %1641 = vpow2.f32 %v1048_v14  ;;  %v1086_v33 = vadd.f32 %v1084_v63, %v1074_v15 }
 0x1f5   :  { %1643 = vpow2.f32 %v1056_v1 }
 0x1f6   :  { %v1634_v6 = vpop.eup %1633  ;;  %v1096_v45 = vadd.f32 %v1094_v35, %v1086_v33  ;;  %v1186_v35 = vld [vmem:[#allocation6 + $0x43] sm:$0xff] }
 0x1f7   :  { %v1636_v8 = vpop.eup %1635 }
 0x1f8   :  { %v1638_v9 = vpop.eup %1637  ;;  %v1050_v11 = vadd.f32 %v1636_v8, %v1634_v6  ;;  %v1106_v55 = vadd.f32 %v1104_v46, %v1096_v45  ;;  %v1170_v45 = vmul.f32 %v1168_v29, %v1168_v29 }
 0x1f9   :  { %v1640_v13 = vpop.eup %1639 }
 0x1fa   :  { %v1642_v20 = vpop.eup %1641  ;;  %v1058_v22 = vadd.f32 %v1638_v9, %v1050_v11 }
 0x1fb   :  { %v1051_v25 = vadd.f32 %v1642_v20, %v1640_v13  ;;  %v1644_v26 = vpop.eup %1643 }
 0x1fc   :  { %1645 = vlog2.f32 %v1058_v22 }
 0x1fd   :  { %v1059_v58 = vadd.f32 %v1644_v26, %v1051_v25  ;;  %v1176_v25 = vld [vmem:[#allocation6 + $0x23] sm:$0xff] }
 0x1fe   :  { %v1178_v31 = vsub.f32 %v2017_v16, %v1176_v25 }
 0x1ff   :  { %1647 = vlog2.f32 %v1059_v58 }
 0x200   :  { %v1180_v46 = vmul.f32 %v1178_v31, %v1178_v31 }
 0x202   :  { %v1646_v47 = vpop.eup %1645 }
 0x203   :  { %v1061_v48 = vmul.f32 0.6931472, %v1646_v47  ;;  %v1188_v47 = vsub.f32 %v2021_v30, %v1186_v35 }
 0x205   :  { %v1648_v52 = vpop.eup %1647  ;;  %v1064_v54 = vadd.f32 %v1061_v48, %v1999_v28  ;;  %v1187_v48 = vld [vmem:[#allocation6 + $0x4b] sm:$0xff] }
 0x206   :  { %v1063_v41 = vmul.f32 0.6931472, %v1648_v52  ;;  %v1196_v52 = vld [vmem:[#allocation6 + $0x63] sm:$0xff] }
 0x207   :  { %v1066_v21 = vmul.f32 -1.0, %v1064_v54 }
 0x208   :  { %v1065_v56 = vadd.f32 %v1063_v41, %v2008_v53 }
 0x209   :  { %v1112_v42 = vadd.f32 %v1106_v55, %v1066_v21  ;;  %v1181_v21 = vmul.f32 %v1179_v5, %v1179_v5 }
 0x20a   :  { %v1067_v14 = vmul.f32 -1.0, %v1065_v56  ;;  %v1189_v56 = vsub.f32 %v1904_v10, %v1187_v48 }
 0x20b   :  { %v1114_v60 = vsel %vm1110_vm4, %v1112_v42, 1e+08  ;;  %v1190_v42 = vmul.f32 %v1188_v47, %v1188_v47 }
 0x20c   :  { %1116 = vst [vmem:[#allocation2 + $0x8] sm:$0xff] %v1114_v60  ;;  %v1113_v0 = vadd.f32 %v1107_v59, %v1067_v14  ;;  %v1128_v2 = vmul.f32 -1.0, %v1114_v60  ;;  %v1182_v59 = vadd.f32 %v1180_v46, %v1170_v45  ;;  %v1198_v14 = vsub.f32 %v2026_v23, %v1196_v52  ;;  %v1262_v52 = vld [vmem:[#allocation6 + $0x2] sm:$0xff] }
 0x20e   :  { %v1115_v1 = vsel %vm50_vm13, %v1113_v0, 1e+08  ;;  %v1197_v0 = vld [vmem:[#allocation6 + $0x6b] sm:$0xff] }
 0x20f   :  { %1117 = vst [vmem:[#allocation2 + $0x10] sm:$0xff] %v1115_v1  ;;  %v1129_v7 = vmul.f32 -1.0, %v1115_v1 }
 0x213   :  { %v1120_v28 = vld [vmem:[#allocation2 + $0x7] sm:$0xff] }
 0x214   :  { %v2038_v37 = vmul.f32 -1.0, %v1120_v28  ;;  %v1191_v28 = vmul.f32 %v1189_v56, %v1189_v56  ;;  %v1273_v56 = vld [vmem:[#allocation6 + $0x2a] sm:$0xff] }
 0x216   :  { %v1130_v3 = vmax.f32 %v1993_v43, %v2038_v37  ;;  %v1121_v4 = vld [vmem:[#allocation2 + $0xf] sm:$0xff] }
 0x217   :  { %v2042_v6 = vmul.f32 -1.0, %v1121_v4  ;;  %v1200_v4 = vmul.f32 %v1198_v14, %v1198_v14 }
 0x218   :  { %v2044_v53 = vmax.f32 %v1130_v3, %v1128_v2  ;;  %v1192_v3 = vadd.f32 %v1190_v42, %v1182_v59  ;;  %v1282_v42 = vld [vmem:[#allocation6 + $0x42] sm:$0xff] }
 0x219   :  { %v1131_v8 = vmax.f32 %v1997_v62, %v2042_v6 }
 0x21a   :  { %v1134_v9 = vsub.f32 %v1993_v43, %v2044_v53  ;;  %v1140_v11 = vsub.f32 %v2038_v37, %v2044_v53  ;;  %v1148_v12 = vsub.f32 %v1128_v2, %v2044_v53  ;;  %v1199_v2 = vsub.f32 %v1908_v27, %v1197_v0 }
 0x21b   :  { %v2053_v34 = vmax.f32 %v1131_v8, %v1129_v7 }
 0x21c   :  { %v1136_v13 = vmul.f32 1.442695, %v1134_v9  ;;  %v1142_v15 = vmul.f32 1.442695, %v1140_v11  ;;  %v1150_v63 = vmul.f32 1.442695, %v1148_v12  ;;  %v1201_v11 = vmul.f32 %v1199_v2, %v1199_v2 }
 0x21d   :  { %v1135_v18 = vsub.f32 %v1997_v62, %v2053_v34  ;;  %v1141_v19 = vsub.f32 %v2042_v6, %v2053_v34  ;;  %v1149_v20 = vsub.f32 %v1129_v7, %v2053_v34  ;;  %v1167_v62 = vld [vmem:[#allocation6 + $0xb] sm:$0xff] }
 0x21e   :  { %1649 = vpow2.f32 %v1136_v13  ;;  %v1169_v40 = vsub.f32 %v1895_v57, %v1167_v62 }
 0x21f   :  { %1651 = vpow2.f32 %v1142_v15  ;;  %v1138_v43 = vmul.f32 1.442695, %v1135_v18  ;;  %v1144_v22 = vmul.f32 1.442695, %v1141_v19  ;;  %v1152_v26 = vmul.f32 1.442695, %v1149_v20 }
 0x220   :  { %1653 = vpow2.f32 %v1150_v63  ;;  %v1171_v41 = vmul.f32 %v1169_v40, %v1169_v40  ;;  %v1202_v15 = vadd.f32 %v1200_v4, %v1192_v3 }
 0x221   :  { %1655 = vpow2.f32 %v1138_v43 }
 0x222   :  { %1657 = vpow2.f32 %v1144_v22  ;;  %v1183_v1 = vadd.f32 %v1181_v21, %v1171_v41  ;;  %v1264_v41 = vsub.f32 %v2015_v17, %v1262_v52 }
 0x223   :  { %1659 = vpow2.f32 %v1152_v26 }
 0x224   :  { %v1650_v33 = vpop.eup %1649  ;;  %v1193_v9 = vadd.f32 %v1191_v28, %v1183_v1  ;;  %v1275_v28 = vsub.f32 %v1899_v61, %v1273_v56  ;;  %v1266_v3 = vmul.f32 %v1264_v41, %v1264_v41 }
 0x225   :  { %v1652_v38 = vpop.eup %1651 }
 0x226   :  { %v1654_v58 = vpop.eup %1653  ;;  %v1146_v39 = vadd.f32 %v1652_v38, %v1650_v33  ;;  %v1203_v20 = vadd.f32 %v1201_v11, %v1193_v9 }
 0x227   :  { %v1656_v44 = vpop.eup %1655 }
 0x228   :  { %v1658_v50 = vpop.eup %1657  ;;  %v1154_v51 = vadd.f32 %v1654_v58, %v1146_v39 }
 0x229   :  { %v1147_v54 = vadd.f32 %v1658_v50, %v1656_v44  ;;  %v1660_v55 = vpop.eup %1659 }
 0x22a   :  { %1661 = vlog2.f32 %v1154_v51 }
 0x22b   :  { %v1155_v60 = vadd.f32 %v1660_v55, %v1147_v54  ;;  %v1272_v54 = vld [vmem:[#allocation6 + $0x22] sm:$0xff] }
 0x22c   :  { %v1274_v21 = vsub.f32 %v2017_v16, %v1272_v54 }
 0x22d   :  { %1663 = vlog2.f32 %v1155_v60 }
 0x22e   :  { %v1276_v4 = vmul.f32 %v1274_v21, %v1274_v21  ;;  %v1707_v21 = vld [vmem:[#allocation2] sm:$0xff] }
 0x230   :  { %v1662_v7 = vpop.eup %1661 }
 0x231   :  { %v1157_v8 = vmul.f32 0.6931472, %v1662_v7  ;;  %v1284_v7 = vsub.f32 %v2021_v30, %v1282_v42 }
 0x233   :  { %v1664_v12 = vpop.eup %1663  ;;  %v1160_v13 = vadd.f32 %v1157_v8, %v2044_v53  ;;  %v1283_v8 = vld [vmem:[#allocation6 + $0x4a] sm:$0xff] }
 0x234   :  { %v1159_v63 = vmul.f32 0.6931472, %v1664_v12  ;;  %v1292_v12 = vld [vmem:[#allocation6 + $0x62] sm:$0xff] }
 0x235   :  { %v1162_v18 = vmul.f32 -1.0, %v1160_v13  ;;  %v1294_v61 = vsub.f32 %v2026_v23, %v1292_v12 }
 0x236   :  { %v1161_v19 = vadd.f32 %v1159_v63, %v2053_v34 }
 0x237   :  { %v1208_v43 = vadd.f32 %v1202_v15, %v1162_v18  ;;  %v1277_v18 = vmul.f32 %v1275_v28, %v1275_v28 }
 0x238   :  { %v1163_v22 = vmul.f32 -1.0, %v1161_v19  ;;  %v1285_v19 = vsub.f32 %v1904_v10, %v1283_v8  ;;  %v1358_v8 = vld [vmem:[#allocation6 + $0x1] sm:$0xff] }
 0x239   :  { %v1210_v24 = vsel %vm1206_vm6, %v1208_v43, 1e+08  ;;  %v1360_v12 = vsub.f32 %v2015_v17, %v1358_v8  ;;  %v1379_v17 = vld [vmem:[#allocation6 + $0x49] sm:$0xff] }
 0x23a   :  { %1212 = vst [vmem:[#allocation2 + $0x20] sm:$0xff] %v1210_v24  ;;  %v1209_v25 = vadd.f32 %v1203_v20, %v1163_v22  ;;  %v1224_v31 = vmul.f32 -1.0, %v1210_v24  ;;  %v1278_v20 = vadd.f32 %v1276_v4, %v1266_v3  ;;  %v1293_v22 = vld [vmem:[#allocation6 + $0x6a] sm:$0xff] }
 0x23c   :  { %v1211_v26 = vsel %vm50_vm13, %v1209_v25, 1e+08  ;;  %v1287_v25 = vmul.f32 %v1285_v19, %v1285_v19 }
 0x23d   :  { %1213 = vst [vmem:[#allocation2 + $0x28] sm:$0xff] %v1211_v26  ;;  %v1225_v35 = vmul.f32 -1.0, %v1211_v26  ;;  %v1295_v26 = vsub.f32 %v1908_v27, %v1293_v22  ;;  %v1709_v22 = vld [vmem:[#allocation3 + $0x18] sm:$0xff] }
 0x241   :  { %v1216_v53 = vld [vmem:[#allocation2 + $0x1f] sm:$0xff] }
 0x242   :  { %v2075_v29 = vmul.f32 -1.0, %v1216_v53 }
 0x244   :  { %v1226_v62 = vmax.f32 %v2038_v37, %v2075_v29  ;;  %v1217_v32 = vld [vmem:[#allocation2 + $0x27] sm:$0xff] }
 0x245   :  { %v2079_v33 = vmul.f32 -1.0, %v1217_v32 }
 0x246   :  { %v2081_v34 = vmax.f32 %v1226_v62, %v1224_v31 }
 0x247   :  { %v1227_v38 = vmax.f32 %v2042_v6, %v2079_v33 }
 0x248   :  { %v1230_v58 = vsub.f32 %v2038_v37, %v2081_v34  ;;  %v1236_v39 = vsub.f32 %v2075_v29, %v2081_v34  ;;  %v1244_v40 = vsub.f32 %v1224_v31, %v2081_v34  ;;  %v1296_v31 = vmul.f32 %v1294_v61, %v1294_v61  ;;  %v1708_v61 = vld [vmem:[#allocation3 + $0x8] sm:$0xff] }
 0x249   :  { %v2090_v5 = vmax.f32 %v1227_v38, %v1225_v35  ;;  %v1297_v38 = vmul.f32 %v1295_v26, %v1295_v26  ;;  %v1362_v26 = vmul.f32 %v1360_v12, %v1360_v12 }
 0x24a   :  { %v1232_v44 = vmul.f32 1.442695, %v1230_v58  ;;  %v1238_v45 = vmul.f32 1.442695, %v1236_v39  ;;  %v1246_v46 = vmul.f32 1.442695, %v1244_v40 }
 0x24b   :  { %v1231_v47 = vsub.f32 %v2042_v6, %v2090_v5  ;;  %v1237_v48 = vsub.f32 %v2079_v33, %v2090_v5  ;;  %v1245_v50 = vsub.f32 %v1225_v35, %v2090_v5  ;;  %v1263_v6 = vld [vmem:[#allocation6 + $0xa] sm:$0xff] }
 0x24c   :  { %1665 = vpow2.f32 %v1232_v44  ;;  %v1265_v1 = vsub.f32 %v1895_v57, %v1263_v6  ;;  %v1286_v57 = vmul.f32 %v1284_v7, %v1284_v7 }
 0x24d   :  { %1667 = vpow2.f32 %v1238_v45  ;;  %v1234_v37 = vmul.f32 1.442695, %v1231_v47  ;;  %v1240_v51 = vmul.f32 1.442695, %v1237_v48  ;;  %v1248_v55 = vmul.f32 1.442695, %v1245_v50 }
 0x24e   :  { %1669 = vpow2.f32 %v1246_v46  ;;  %v1267_v63 = vmul.f32 %v1265_v1, %v1265_v1  ;;  %v1288_v53 = vadd.f32 %v1286_v57, %v1278_v20 }
 0x24f   :  { %1671 = vpow2.f32 %v1234_v37 }
 0x250   :  { %1673 = vpow2.f32 %v1240_v51  ;;  %v1279_v24 = vadd.f32 %v1277_v18, %v1267_v63  ;;  %v1298_v39 = vadd.f32 %v1296_v31, %v1288_v53  ;;  %v1378_v18 = vld [vmem:[#allocation6 + $0x41] sm:$0xff] }
 0x251   :  { %1675 = vpow2.f32 %v1248_v55  ;;  %v1380_v31 = vsub.f32 %v2021_v30, %v1378_v18  ;;  %v1463_v18 = vld [vmem:[#allocation3 + $0x18] sm:$0xff] }
 0x252   :  { %v1666_v59 = vpop.eup %1665  ;;  %v1289_v35 = vadd.f32 %v1287_v25, %v1279_v24 }
 0x253   :  { %v1668_v14 = vpop.eup %1667 }
 0x254   :  { %v1670_v60 = vpop.eup %1669  ;;  %v1242_v0 = vadd.f32 %v1668_v14, %v1666_v59  ;;  %v1299_v27 = vadd.f32 %v1297_v38, %v1289_v35 }
 0x255   :  { %v1672_v2 = vpop.eup %1671 }
 0x256   :  { %v1674_v9 = vpop.eup %1673  ;;  %v1250_v11 = vadd.f32 %v1670_v60, %v1242_v0 }
 0x257   :  { %v1243_v13 = vadd.f32 %v1674_v9, %v1672_v2  ;;  %v1676_v15 = vpop.eup %1675  ;;  %v1368_v9 = vld [vmem:[#allocation6 + $0x21] sm:$0xff] }
 0x258   :  { %1677 = vlog2.f32 %v1250_v11 }
 0x259   :  { %v1251_v43 = vadd.f32 %v1676_v15, %v1243_v13  ;;  %v1370_v13 = vsub.f32 %v2017_v16, %v1368_v9  ;;  %v1369_v15 = vld [vmem:[#allocation6 + $0x29] sm:$0xff] }
 0x25a   :  { %v1371_v24 = vsub.f32 %v1709_v22, %v1369_v15  ;;  %v1453_v15 = vld [vmem:[#allocation3 + $0x8] sm:$0xff] }
 0x25b   :  { %1679 = vlog2.f32 %v1251_v43  ;;  %v1372_v53 = vmul.f32 %v1370_v13, %v1370_v13  ;;  %v1475_v22 = vld [vmem:[#allocation6 + $0x48] sm:$0xff] }
 0x25e   :  { %v1678_v62 = vpop.eup %1677 }
 0x25f   :  { %v1253_v32 = vmul.f32 0.6931472, %v1678_v62 }
 0x261   :  { %v1680_v58 = vpop.eup %1679  ;;  %v1256_v10 = vadd.f32 %v1253_v32, %v2081_v34  ;;  %v1388_v32 = vld [vmem:[#allocation6 + $0x61] sm:$0xff] }
 0x262   :  { %v1255_v40 = vmul.f32 0.6931472, %v1680_v58 }
 0x263   :  { %v1258_v44 = vmul.f32 -1.0, %v1256_v10  ;;  %v1373_v10 = vmul.f32 %v1371_v24, %v1371_v24 }
 0x264   :  { %v1257_v45 = vadd.f32 %v1255_v40, %v2090_v5 }
 0x265   :  { %v1304_v46 = vadd.f32 %v1298_v39, %v1258_v44  ;;  %v1710_v39 = vld [vmem:[#allocation3 + $0x28] sm:$0xff]  ;;  %v1374_v44 = vadd.f32 %v1372_v53, %v1362_v26 }
 0x266   :  { %v1259_v47 = vmul.f32 -1.0, %v1257_v45  ;;  %v1381_v40 = vsub.f32 %v1710_v39, %v1379_v17  ;;  %v1382_v45 = vmul.f32 %v1380_v31, %v1380_v31 }
 0x267   :  { %v1306_v48 = vsel %vm1302_vm8, %v1304_v46, 1e+08 }
 0x268   :  { %1308 = vst [vmem:[#allocation2 + $0x8] sm:$0xff] %v1306_v48  ;;  %v1305_v50 = vadd.f32 %v1299_v27, %v1259_v47  ;;  %v1320_v52 = vmul.f32 -1.0, %v1306_v48  ;;  %v1390_v27 = vsub.f32 %v2026_v23, %v1388_v32  ;;  %v1389_v47 = vld [vmem:[#allocation6 + $0x69] sm:$0xff]  ;;  %v1383_v30 = vmul.f32 %v1381_v40, %v1381_v40 }
 0x26a   :  { %v1307_v37 = vsel %vm50_vm13, %v1305_v50, 1e+08  ;;  %v1711_v50 = vld [vmem:[#allocation3 + $0x38] sm:$0xff] }
 0x26b   :  { %1309 = vst [vmem:[#allocation2 + $0x10] sm:$0xff] %v1307_v37  ;;  %v1321_v6 = vmul.f32 -1.0, %v1307_v37  ;;  %v1391_v37 = vsub.f32 %v1711_v50, %v1389_v47 }
 0x26f   :  { %v1312_v34 = vld [vmem:[#allocation2 + $0x7] sm:$0xff] }
 0x270   :  { %v1318_v51 = vmul.f32 -1.0, %v1312_v34  ;;  %v1384_v34 = vadd.f32 %v1382_v45, %v1374_v44 }
 0x272   :  { %v1322_v54 = vmax.f32 %v2075_v29, %v1318_v51  ;;  %v1313_v55 = vld [vmem:[#allocation2 + $0xf] sm:$0xff] }
 0x273   :  { %v2113_v41 = vmul.f32 -1.0, %v1313_v55  ;;  %1500 = vst [vmem:[#allocation2 + $0x8] sm:$0xff] %v1707_v21  ;;  %v1393_v21 = vmul.f32 %v1391_v37, %v1391_v37 }
 0x274   :  { %v2115_v5 = vmax.f32 %v1322_v54, %v1320_v52 }
 0x275   :  { %v1323_v56 = vmax.f32 %v2079_v33, %v2113_v41 }
 0x276   :  { %v1326_v59 = vsub.f32 %v2075_v29, %v2115_v5  ;;  %v1332_v42 = vsub.f32 %v1318_v51, %v2115_v5  ;;  %v1340_v14 = vsub.f32 %v1320_v52, %v2115_v5  ;;  %v1392_v51 = vmul.f32 %v1390_v27, %v1390_v27 }
 0x277   :  { %v2123_v60 = vmax.f32 %v1323_v56, %v1321_v6 }
 0x278   :  { %v1328_v0 = vmul.f32 1.442695, %v1326_v59  ;;  %v1334_v1 = vmul.f32 1.442695, %v1332_v42  ;;  %v1342_v28 = vmul.f32 1.442695, %v1340_v14  ;;  %v1394_v59 = vadd.f32 %v1392_v51, %v1384_v34 }
 0x279   :  { %v1327_v2 = vsub.f32 %v2079_v33, %v2123_v60  ;;  %v1333_v3 = vsub.f32 %v2113_v41, %v2123_v60  ;;  %v1341_v4 = vsub.f32 %v1321_v6, %v2123_v60  ;;  %v1359_v33 = vld [vmem:[#allocation6 + $0x9] sm:$0xff] }
 0x27a   :  { %1681 = vpow2.f32 %v1328_v0  ;;  %v1361_v43 = vsub.f32 %v1708_v61, %v1359_v33 }
 0x27b   :  { %1683 = vpow2.f32 %v1334_v1  ;;  %v1330_v29 = vmul.f32 1.442695, %v1327_v2  ;;  %v1336_v7 = vmul.f32 1.442695, %v1333_v3  ;;  %v1344_v11 = vmul.f32 1.442695, %v1341_v4 }
 0x27c   :  { %1685 = vpow2.f32 %v1342_v28  ;;  %v1363_v58 = vmul.f32 %v1361_v43, %v1361_v43  ;;  %v1473_v43 = vld [vmem:[#allocation3 + $0x28] sm:$0xff] }
 0x27d   :  { %1687 = vpow2.f32 %v1330_v29  ;;  %v1477_v31 = vsub.f32 %v1473_v43, %v1475_v22 }
 0x27e   :  { %1689 = vpow2.f32 %v1336_v7  ;;  %v1375_v48 = vadd.f32 %v1373_v10, %v1363_v58 }
 0x27f   :  { %1691 = vpow2.f32 %v1344_v11 }
 0x280   :  { %v1682_v63 = vpop.eup %1681  ;;  %v1385_v55 = vadd.f32 %v1383_v30, %v1375_v48 }
 0x281   :  { %v1684_v19 = vpop.eup %1683 }
 0x282   :  { %v1686_v20 = vpop.eup %1685  ;;  %v1338_v57 = vadd.f32 %v1684_v19, %v1682_v63  ;;  %v1395_v0 = vadd.f32 %v1393_v21, %v1385_v55  ;;  %v1455_v63 = vld [vmem:[#allocation6 + $0x8] sm:$0xff] }
 0x283   :  { %v1688_v25 = vpop.eup %1687  ;;  %v1465_v19 = vld [vmem:[#allocation6 + $0x28] sm:$0xff] }
 0x284   :  { %v1690_v62 = vpop.eup %1689  ;;  %v1346_v16 = vadd.f32 %v1686_v20, %v1338_v57  ;;  %v1457_v20 = vsub.f32 %v1453_v15, %v1455_v63  ;;  %v1467_v57 = vsub.f32 %v1463_v18, %v1465_v19 }
 0x285   :  { %v1339_v35 = vadd.f32 %v1690_v62, %v1688_v25  ;;  %v1692_v38 = vpop.eup %1691  ;;  %v1483_v62 = vld [vmem:[#allocation3 + $0x38] sm:$0xff] }
 0x286   :  { %1693 = vlog2.f32 %v1346_v16  ;;  %v1459_v26 = vmul.f32 %v1457_v20, %v1457_v20  ;;  %v1469_v53 = vmul.f32 %v1467_v57, %v1467_v57  ;;  %v1485_v16 = vld [vmem:[#allocation6 + $0x68] sm:$0xff] }
 0x287   :  { %v1347_v46 = vadd.f32 %v1692_v38, %v1339_v35  ;;  %v1479_v35 = vmul.f32 %v1477_v31, %v1477_v31  ;;  %v1487_v38 = vsub.f32 %v1483_v62, %v1485_v16 }
 0x288   :  { %v1471_v32 = vadd.f32 %v1469_v53, %v1459_v26 }
 0x289   :  { %1695 = vlog2.f32 %v1347_v46  ;;  %v1489_v10 = vmul.f32 %v1487_v38, %v1487_v38 }
 0x28a   :  { %v1481_v58 = vadd.f32 %v1479_v35, %v1471_v32 }
 0x28c   :  { %v1694_v52 = vpop.eup %1693  ;;  %v1491_v45 = vadd.f32 %v1489_v10, %v1481_v58 }
 0x28d   :  { %v1349_v54 = vmul.f32 0.6931472, %v1694_v52 }
 0x28f   :  { %v1696_v6 = vpop.eup %1695  ;;  %v1352_v56 = vadd.f32 %v1349_v54, %v2115_v5 }
 0x290   :  { %v1351_v23 = vmul.f32 0.6931472, %v1696_v6 }
 0x291   :  { %v1354_v42 = vmul.f32 -1.0, %v1352_v56 }
 0x292   :  { %v1353_v14 = vadd.f32 %v1351_v23, %v2123_v60 }
 0x293   :  { %v1400_v1 = vadd.f32 %v1394_v59, %v1354_v42 }
 0x294   :  { %v1355_v28 = vmul.f32 -1.0, %v1353_v14 }
 0x295   :  { %v1402_v2 = vsel %vm1398_vm10, %v1400_v1, 1e+08 }
 0x296   :  { %1404 = vst [vmem:[#allocation2 + $0x20] sm:$0xff] %v1402_v2  ;;  %v1401_v3 = vadd.f32 %v1395_v0, %v1355_v28 }
 0x298   :  { %v1403_v4 = vsel %vm50_vm13, %v1401_v3, 1e+08 }
 0x299   :  { %1405 = vst [vmem:[#allocation2 + $0x28] sm:$0xff] %v1403_v4  ;;  %v1417_v7 = vmul.f32 -1.0, %v1403_v4 }
 0x2a0   :  { %v1409_v5 = vld [vmem:[#allocation2 + $0x27] sm:$0xff] }
 0x2a1   :  { %v1415_v29 = vmul.f32 -1.0, %v1409_v5 }
 0x2a3   :  { %v1419_v8 = vmax.f32 %v2113_v41, %v1415_v29 }
 0x2a5   :  { %v1421_v9 = vmax.f32 %v1419_v8, %v1417_v7 }
 0x2a7   :  { %v1423_v36 = vsub.f32 %v2113_v41, %v1421_v9  ;;  %v1429_v11 = vsub.f32 %v1415_v29, %v1421_v9  ;;  %v1437_v60 = vsub.f32 %v1417_v7, %v1421_v9 }
 0x2a9   :  { %v1426_v12 = vmul.f32 1.442695, %v1423_v36  ;;  %v1432_v13 = vmul.f32 1.442695, %v1429_v11  ;;  %v1440_v33 = vmul.f32 1.442695, %v1437_v60 }
 0x2ab   :  { %1697 = vpow2.f32 %v1426_v12 }
 0x2ac   :  { %1699 = vpow2.f32 %v1432_v13 }
 0x2ad   :  { %1701 = vpow2.f32 %v1440_v33 }
 0x2b1   :  { %v1698_v61 = vpop.eup %1697 }
 0x2b2   :  { %v1700_v24 = vpop.eup %1699 }
 0x2b3   :  { %v1435_v25 = vadd.f32 %v1700_v24, %v1698_v61  ;;  %v1702_v41 = vpop.eup %1701 }
 0x2b5   :  { %v1443_v17 = vadd.f32 %v1702_v41, %v1435_v25 }
 0x2b7   :  { %1703 = vlog2.f32 %v1443_v17 }
 0x2bd   :  { %v1704_v39 = vpop.eup %1703 }
 0x2be   :  { %v1447_v40 = vmul.f32 0.6931472, %v1704_v39 }
 0x2c0   :  { %v1449_v44 = vadd.f32 %v1447_v40, %v1421_v9 }
 0x2c2   :  { %v1451_v27 = vmul.f32 -1.0, %v1449_v44 }
 0x2c4   :  { %v1497_v46 = vadd.f32 %v1491_v45, %v1451_v27 }
 0x2c6   :  { %v1499_v47 = vsel %vm50_vm13, %v1497_v46, 1e+08 }
 0x2c7   :  { %1501 = vst [vmem:[#allocation2 + $0x10] sm:$0xff] %v1499_v47 }
 0x2ce   :  { %v1502_v48 = vld [vmem:[#allocation2 + $0x10] sm:$0x1] }
 0x2cf   :  { %1503 = vst [vmem:[#allocation8] sm:$0x1] %v1502_v48 }
 0x2d0   :  { %1514 = dma.vmem_to_hbm [thread:$0]  %s1510_s1, 16, %s1512_s23, [#allocation5]  }
 0x2d1   :  { %1788 = dma.done.wait [#allocation5], 16  }
 0x2d2   :  { %1789 = vsyncadd [#allocation5], 4294967280 }
 0x2d3   :  { %1519 = vsyncpa [#allocation4], 1 }
 0x2d4   :  { %1520 = vsyncpa [#allocation7], 1 }
 0x2d5   :  { %1521 = vsyncpa [#allocation5], 1 }

</bundles_post_ra>
